<compile_context>
chip_gen: v7x
topology: tpu7x:2x2x1
jax: 0.10.0
libtpu: 0.0.40
codegen_flags: <defaults>
</compile_context>

<pallas_src>
import functools

import jax
import jax.numpy as jnp
from jax.experimental import pallas as pl
from jax.experimental.pallas import tpu as pltpu

# ----------------------------- model config ---------------------------------
VOCAB = 50
EMB_DIM = 32
HIDDEN = 32
NUM_OUTER_LAYERS = 2          # RNNModel.num_layers (outer ModuleList)
INNER_LAYERS_PER_GRU = 2      # each nn.GRU itself has num_layers=2
BATCH = 8
SEQ = 8


# ----------------------------- fused model kernel ---------------------------
def _fused_rnn_kernel(ids_ref, emb_ref, *refs, hidden, num_gru_layers,
                      seq_len, batch):
    """refs = [(w_ih, w_hh, b_ih, b_hh) * L, w1, b1, w2, b2, out].

    ids_ref: (S*B, 1) int32 time-major token ids (row t*B + b).
    emb_ref: (V, E) embedding table.
    w_ih:    (Din, 3H), w_hh: (H, 3H), biases (1, 3H); PyTorch gate order (r,z,n).
    out:     (B, 1) float32.
    Everything is VMEM-resident; the whole forward pass runs in one invocation.
    """
    H = hidden
    S = seq_len
    B = batch

    idx = 0
    layer_refs = []
    for _ in range(num_gru_layers):
        layer_refs.append(refs[idx:idx + 4])
        idx += 4
    w1_ref, b1_ref, w2_ref, b2_ref = refs[idx:idx + 4]
    o_ref = refs[idx + 4]

    # ---- fused embedding lookup: one-hot @ table on the MXU (exact) ----
    emb = emb_ref[...]                                   # (V, E)
    V = emb.shape[0]
    ids = ids_ref[...]                                   # (S*B, 1) int32
    iota = jax.lax.broadcasted_iota(jnp.int32, (S * B, V), 1)
    onehot = (ids == iota).astype(jnp.float32)           # (S*B, V)
    x_cat = jnp.dot(onehot, emb,
                    preferred_element_type=jnp.float32)  # (S*B, E) time-major

    h = None
    for (wih_ref, whh_ref, bih_ref, bhh_ref) in layer_refs:
        w_ih = wih_ref[...]                              # (Din, 3H)
        w_hh = whh_ref[...]                              # (H, 3H)
        b_ih = bih_ref[...]                              # (1, 3H)
        b_hh = bhh_ref[...]                              # (1, 3H)

        # Hoisted input projection: one matmul for all time steps at once.
        gi = jnp.dot(x_cat, w_ih,
                     preferred_element_type=jnp.float32) + b_ih   # (S*B, 3H)
        # Fold recurrent biases of r/z gates in ONCE (outside the time loop);
        # the n-gate recurrent bias must stay inside r * (.) per GRU math,
        # so hoist its broadcast instead.
        gi_r = gi[:, 0:H] + b_hh[:, 0:H]
        gi_z = gi[:, H:2 * H] + b_hh[:, H:2 * H]
        gi_n = gi[:, 2 * H:3 * H]
        bhn = jnp.broadcast_to(b_hh[:, 2 * H:3 * H], (B, H))

        h = jnp.zeros((B, H), jnp.float32)
        ys = []
        for t in range(S):                               # static -> fully unrolled
            gh = jnp.dot(h, w_hh,
                         preferred_element_type=jnp.float32)      # (B, 3H)
            sl = slice(t * B, (t + 1) * B)               # aligned sublane slice
            r = jax.nn.sigmoid(gi_r[sl] + gh[:, 0:H])
            z = jax.nn.sigmoid(gi_z[sl] + gh[:, H:2 * H])
            n = jnp.tanh(gi_n[sl] + r * (gh[:, 2 * H:3 * H] + bhn))
            h = (1.0 - z) * n + z * h
            ys.append(h)
        x_cat = jnp.concatenate(ys, axis=0)              # (S*B, H) -> next layer

    # Head: fc1 -> relu -> fc2 on the last time step of the last layer.
    z1 = jnp.dot(h, w1_ref[...], preferred_element_type=jnp.float32) + b1_ref[...]
    z1 = jnp.maximum(z1, 0.0)
    out = jnp.dot(z1, w2_ref[...], preferred_element_type=jnp.float32) + b2_ref[...]
    o_ref[...] = out.astype(o_ref.dtype)


def fused_rnn_forward(token_ids, embedding, gru_layers, w1, b1, w2, b2, hidden):
    """token_ids: (B, S) int32. Returns (B, 1) float32."""
    B, S = token_ids.shape
    ids_tm = token_ids.T.reshape(S * B, 1)               # time-major flat ids

    flat = [ids_tm, embedding]
    for (w_ih, w_hh, b_ih, b_hh) in gru_layers:
        flat += [w_ih, w_hh, b_ih, b_hh]
    flat += [w1, b1, w2, b2]

    kernel = functools.partial(_fused_rnn_kernel, hidden=hidden,
                               num_gru_layers=len(gru_layers),
                               seq_len=S, batch=B)
    vmem_spec = pl.BlockSpec(memory_space=pltpu.MemorySpace.VMEM)
    return pl.pallas_call(
        kernel,
        out_shape=jax.ShapeDtypeStruct((B, 1), jnp.float32),
        in_specs=[vmem_spec] * len(flat),
        out_specs=vmem_spec,
    )(*flat)


# ----------------------------- parameters -----------------------------------
def init_params(key):
    keys = jax.random.split(key, 64)
    ki = iter(keys)
    params = {}
    # nn.Embedding default init: N(0, 1)
    params["embedding"] = jax.random.normal(next(ki), (VOCAB, EMB_DIM), jnp.float32)

    bound = 1.0 / jnp.sqrt(HIDDEN)
    gru_layers = []
    for outer in range(NUM_OUTER_LAYERS):
        for inner in range(INNER_LAYERS_PER_GRU):
            d_in = EMB_DIM if (outer == 0 and inner == 0) else HIDDEN
            w_ih = jax.random.uniform(next(ki), (d_in, 3 * HIDDEN), jnp.float32,
                                      -bound, bound)
            w_hh = jax.random.uniform(next(ki), (HIDDEN, 3 * HIDDEN), jnp.float32,
                                      -bound, bound)
            b_ih = jax.random.uniform(next(ki), (1, 3 * HIDDEN), jnp.float32,
                                      -bound, bound)
            b_hh = jax.random.uniform(next(ki), (1, 3 * HIDDEN), jnp.float32,
                                      -bound, bound)
            gru_layers.append((w_ih, w_hh, b_ih, b_hh))
    params["gru_layers"] = gru_layers

    params["w1"] = jax.random.uniform(next(ki), (HIDDEN, HIDDEN), jnp.float32,
                                      -bound, bound)
    params["b1"] = jax.random.uniform(next(ki), (1, HIDDEN), jnp.float32,
                                      -bound, bound)
    params["w2"] = jax.random.uniform(next(ki), (HIDDEN, 1), jnp.float32,
                                      -bound, bound)
    params["b2"] = jax.random.uniform(next(ki), (1, 1), jnp.float32,
                                      -bound, bound)
    return params


# ----------------------------- forward (Pallas) -----------------------------
def rnn_model_forward(token_ids, params):
    return fused_rnn_forward(token_ids, params["embedding"],
                             params["gru_layers"],
                             params["w1"], params["b1"],
                             params["w2"], params["b2"], HIDDEN)


# ----------------------------- pure-JAX reference ---------------------------
def rnn_model_reference(token_ids, params):
    x = params["embedding"][token_ids]                   # (B, S, E) gather-based
    B, S, _ = x.shape
    for (w_ih, w_hh, b_ih, b_hh) in params["gru_layers"]:
        H = w_hh.shape[0]
        h = jnp.zeros((B, H), jnp.float32)
        ys = []
        for t in range(S):
            gi = x[:, t, :] @ w_ih + b_ih
            gh = h @ w_hh + b_hh
            r = jax.nn.sigmoid(gi[:, :H] + gh[:, :H])
            z = jax.nn.sigmoid(gi[:, H:2 * H] + gh[:, H:2 * H])
            n = jnp.tanh(gi[:, 2 * H:] + r * gh[:, 2 * H:])
            h = (1.0 - z) * n + z * h
            ys.append(h)
        x = jnp.stack(ys, axis=1)
    hl = x[:, -1, :]
    z = jnp.maximum(hl @ params["w1"] + params["b1"], 0.0)
    return z @ params["w2"] + params["b2"]


# ----------------------------- main ------------------------------------------
if __name__ == "__main__":
    key = jax.random.PRNGKey(0)
    pkey, xkey = jax.random.split(key)
    params = init_params(pkey)

    token_ids = jax.random.randint(xkey, (BATCH, SEQ), 0, VOCAB, dtype=jnp.int32)

    out = rnn_model_forward(token_ids, params)
    out = jax.block_until_ready(out)
    assert out.shape == (BATCH, 1), out.shape

    ref = rnn_model_reference(token_ids, params)
    assert jnp.allclose(out, ref, atol=1e-4, rtol=1e-4), (out, ref)

    print("KERNEL_OK")
</pallas_src>

<mosaic_0001>
module attributes {stable_mosaic.version = 11 : i64} {
  func.func @_fused_rnn_kernel(%arg0: memref<64x1xi32, #tpu.memory_space<vmem>>, %arg1: memref<50x32xf32, #tpu.memory_space<vmem>>, %arg2: memref<32x96xf32, #tpu.memory_space<vmem>>, %arg3: memref<32x96xf32, #tpu.memory_space<vmem>>, %arg4: memref<1x96xf32, #tpu.memory_space<vmem>>, %arg5: memref<1x96xf32, #tpu.memory_space<vmem>>, %arg6: memref<32x96xf32, #tpu.memory_space<vmem>>, %arg7: memref<32x96xf32, #tpu.memory_space<vmem>>, %arg8: memref<1x96xf32, #tpu.memory_space<vmem>>, %arg9: memref<1x96xf32, #tpu.memory_space<vmem>>, %arg10: memref<32x96xf32, #tpu.memory_space<vmem>>, %arg11: memref<32x96xf32, #tpu.memory_space<vmem>>, %arg12: memref<1x96xf32, #tpu.memory_space<vmem>>, %arg13: memref<1x96xf32, #tpu.memory_space<vmem>>, %arg14: memref<32x96xf32, #tpu.memory_space<vmem>>, %arg15: memref<32x96xf32, #tpu.memory_space<vmem>>, %arg16: memref<1x96xf32, #tpu.memory_space<vmem>>, %arg17: memref<1x96xf32, #tpu.memory_space<vmem>>, %arg18: memref<32x32xf32, #tpu.memory_space<vmem>>, %arg19: memref<1x32xf32, #tpu.memory_space<vmem>>, %arg20: memref<32x1xf32, #tpu.memory_space<vmem>>, %arg21: memref<1x1xf32, #tpu.memory_space<vmem>>, %arg22: memref<8x1xf32, #tpu.memory_space<vmem>>) attributes {dimension_semantics = [], scalar_prefetch = 0 : i64, scratch_operands = 0 : i64, tpu.core_type = #tpu.core_type<tc>} {
    %c0 = arith.constant 0 : index
    %c0_0 = arith.constant 0 : index
    %0 = vector.load %arg1[%c0, %c0_0] : memref<50x32xf32, #tpu.memory_space<vmem>>, vector<50x32xf32>
    %c0_1 = arith.constant 0 : index
    %c0_2 = arith.constant 0 : index
    %1 = vector.load %arg0[%c0_1, %c0_2] : memref<64x1xi32, #tpu.memory_space<vmem>>, vector<64x1xi32>
    %2 = tpu.iota {dimensions = array<i32: 1>} : vector<64x50xi32>
    %3 = vector.broadcast %1 : vector<64x1xi32> to vector<64x50xi32>
    %4 = arith.cmpi eq, %3, %2 : vector<64x50xi32>
    %5 = arith.extui %4 : vector<64x50xi1> to vector<64x50xi32>
    %6 = arith.sitofp %5 : vector<64x50xi32> to vector<64x50xf32>
    %cst = arith.constant dense<0.000000e+00> : vector<64x32xf32>
    %7 = tpu.matmul %6, %0, %cst {dimension_numbers = #tpu.dot_dimension_numbers<[1], [0], [0], [1], [0, 0, 1, 1], [], []>} : vector<64x50xf32>, vector<50x32xf32>, vector<64x32xf32> -> vector<64x32xf32>
    %c0_3 = arith.constant 0 : index
    %c0_4 = arith.constant 0 : index
    %8 = vector.load %arg2[%c0_3, %c0_4] : memref<32x96xf32, #tpu.memory_space<vmem>>, vector<32x96xf32>
    %c0_5 = arith.constant 0 : index
    %c0_6 = arith.constant 0 : index
    %9 = vector.load %arg3[%c0_5, %c0_6] : memref<32x96xf32, #tpu.memory_space<vmem>>, vector<32x96xf32>
    %c0_7 = arith.constant 0 : index
    %c0_8 = arith.constant 0 : index
    %10 = vector.load %arg4[%c0_7, %c0_8] : memref<1x96xf32, #tpu.memory_space<vmem>>, vector<1x96xf32>
    %c0_9 = arith.constant 0 : index
    %c0_10 = arith.constant 0 : index
    %11 = vector.load %arg5[%c0_9, %c0_10] : memref<1x96xf32, #tpu.memory_space<vmem>>, vector<1x96xf32>
    %cst_11 = arith.constant dense<0.000000e+00> : vector<64x96xf32>
    %12 = tpu.matmul %7, %8, %cst_11 {dimension_numbers = #tpu.dot_dimension_numbers<[1], [0], [0], [1], [0, 0, 1, 1], [], []>} : vector<64x32xf32>, vector<32x96xf32>, vector<64x96xf32> -> vector<64x96xf32>
    %13 = vector.broadcast %10 : vector<1x96xf32> to vector<64x96xf32>
    %14 = arith.addf %12, %13 : vector<64x96xf32>
    %15 = vector.extract_strided_slice %14 {offsets = [0, 0], sizes = [64, 32], strides = [1, 1]} : vector<64x96xf32> to vector<64x32xf32>
    %16 = vector.extract_strided_slice %11 {offsets = [0, 0], sizes = [1, 32], strides = [1, 1]} : vector<1x96xf32> to vector<1x32xf32>
    %17 = vector.broadcast %16 : vector<1x32xf32> to vector<64x32xf32>
    %18 = arith.addf %15, %17 : vector<64x32xf32>
    %19 = vector.extract_strided_slice %14 {offsets = [0, 32], sizes = [64, 32], strides = [1, 1]} : vector<64x96xf32> to vector<64x32xf32>
    %20 = vector.extract_strided_slice %11 {offsets = [0, 32], sizes = [1, 32], strides = [1, 1]} : vector<1x96xf32> to vector<1x32xf32>
    %21 = vector.broadcast %20 : vector<1x32xf32> to vector<64x32xf32>
    %22 = arith.addf %19, %21 : vector<64x32xf32>
    %23 = vector.extract_strided_slice %14 {offsets = [0, 64], sizes = [64, 32], strides = [1, 1]} : vector<64x96xf32> to vector<64x32xf32>
    %24 = vector.extract_strided_slice %11 {offsets = [0, 64], sizes = [1, 32], strides = [1, 1]} : vector<1x96xf32> to vector<1x32xf32>
    %25 = vector.shape_cast %24 : vector<1x32xf32> to vector<1x32xf32>
    %26 = vector.broadcast %25 : vector<1x32xf32> to vector<8x32xf32>
    %cst_12 = arith.constant 0.000000e+00 : f32
    %27 = vector.broadcast %cst_12 : f32 to vector<8x32xf32>
    %cst_13 = arith.constant dense<0.000000e+00> : vector<8x96xf32>
    %28 = tpu.matmul %27, %9, %cst_13 {dimension_numbers = #tpu.dot_dimension_numbers<[1], [0], [0], [1], [0, 0, 1, 1], [], []>} : vector<8x32xf32>, vector<32x96xf32>, vector<8x96xf32> -> vector<8x96xf32>
    %29 = vector.extract_strided_slice %18 {offsets = [0, 0], sizes = [8, 32], strides = [1, 1]} : vector<64x32xf32> to vector<8x32xf32>
    %30 = vector.extract_strided_slice %28 {offsets = [0, 0], sizes = [8, 32], strides = [1, 1]} : vector<8x96xf32> to vector<8x32xf32>
    %31 = arith.addf %29, %30 : vector<8x32xf32>
    %32 = arith.negf %31 : vector<8x32xf32>
    %33 = math.exp %32 : vector<8x32xf32>
    %cst_14 = arith.constant 1.000000e+00 : f32
    %34 = vector.broadcast %cst_14 : f32 to vector<8x32xf32>
    %35 = arith.addf %34, %33 : vector<8x32xf32>
    %36 = arith.divf %34, %35 : vector<8x32xf32>
    %37 = vector.extract_strided_slice %22 {offsets = [0, 0], sizes = [8, 32], strides = [1, 1]} : vector<64x32xf32> to vector<8x32xf32>
    %38 = vector.extract_strided_slice %28 {offsets = [0, 32], sizes = [8, 32], strides = [1, 1]} : vector<8x96xf32> to vector<8x32xf32>
    %39 = arith.addf %37, %38 : vector<8x32xf32>
    %40 = arith.negf %39 : vector<8x32xf32>
    %41 = math.exp %40 : vector<8x32xf32>
    %cst_15 = arith.constant 1.000000e+00 : f32
    %42 = vector.broadcast %cst_15 : f32 to vector<8x32xf32>
    %43 = arith.addf %42, %41 : vector<8x32xf32>
    %44 = arith.divf %42, %43 : vector<8x32xf32>
    %45 = vector.extract_strided_slice %23 {offsets = [0, 0], sizes = [8, 32], strides = [1, 1]} : vector<64x32xf32> to vector<8x32xf32>
    %46 = vector.extract_strided_slice %28 {offsets = [0, 64], sizes = [8, 32], strides = [1, 1]} : vector<8x96xf32> to vector<8x32xf32>
    %47 = arith.addf %46, %26 : vector<8x32xf32>
    %48 = arith.mulf %36, %47 : vector<8x32xf32>
    %49 = arith.addf %45, %48 : vector<8x32xf32>
    %50 = math.tanh %49 : vector<8x32xf32>
    %cst_16 = arith.constant 1.000000e+00 : f32
    %51 = vector.broadcast %cst_16 : f32 to vector<8x32xf32>
    %52 = arith.subf %51, %44 : vector<8x32xf32>
    %53 = arith.mulf %52, %50 : vector<8x32xf32>
    %54 = arith.mulf %44, %27 : vector<8x32xf32>
    %55 = arith.addf %53, %54 : vector<8x32xf32>
    %cst_17 = arith.constant dense<0.000000e+00> : vector<8x96xf32>
    %56 = tpu.matmul %55, %9, %cst_17 {dimension_numbers = #tpu.dot_dimension_numbers<[1], [0], [0], [1], [0, 0, 1, 1], [], []>} : vector<8x32xf32>, vector<32x96xf32>, vector<8x96xf32> -> vector<8x96xf32>
    %57 = vector.extract_strided_slice %18 {offsets = [8, 0], sizes = [8, 32], strides = [1, 1]} : vector<64x32xf32> to vector<8x32xf32>
    %58 = vector.extract_strided_slice %56 {offsets = [0, 0], sizes = [8, 32], strides = [1, 1]} : vector<8x96xf32> to vector<8x32xf32>
    %59 = arith.addf %57, %58 : vector<8x32xf32>
    %60 = arith.negf %59 : vector<8x32xf32>
    %61 = math.exp %60 : vector<8x32xf32>
    %cst_18 = arith.constant 1.000000e+00 : f32
    %62 = vector.broadcast %cst_18 : f32 to vector<8x32xf32>
    %63 = arith.addf %62, %61 : vector<8x32xf32>
    %64 = arith.divf %62, %63 : vector<8x32xf32>
    %65 = vector.extract_strided_slice %22 {offsets = [8, 0], sizes = [8, 32], strides = [1, 1]} : vector<64x32xf32> to vector<8x32xf32>
    %66 = vector.extract_strided_slice %56 {offsets = [0, 32], sizes = [8, 32], strides = [1, 1]} : vector<8x96xf32> to vector<8x32xf32>
    %67 = arith.addf %65, %66 : vector<8x32xf32>
    %68 = arith.negf %67 : vector<8x32xf32>
    %69 = math.exp %68 : vector<8x32xf32>
    %cst_19 = arith.constant 1.000000e+00 : f32
    %70 = vector.broadcast %cst_19 : f32 to vector<8x32xf32>
    %71 = arith.addf %70, %69 : vector<8x32xf32>
    %72 = arith.divf %70, %71 : vector<8x32xf32>
    %73 = vector.extract_strided_slice %23 {offsets = [8, 0], sizes = [8, 32], strides = [1, 1]} : vector<64x32xf32> to vector<8x32xf32>
    %74 = vector.extract_strided_slice %56 {offsets = [0, 64], sizes = [8, 32], strides = [1, 1]} : vector<8x96xf32> to vector<8x32xf32>
    %75 = arith.addf %74, %26 : vector<8x32xf32>
    %76 = arith.mulf %64, %75 : vector<8x32xf32>
    %77 = arith.addf %73, %76 : vector<8x32xf32>
    %78 = math.tanh %77 : vector<8x32xf32>
    %cst_20 = arith.constant 1.000000e+00 : f32
    %79 = vector.broadcast %cst_20 : f32 to vector<8x32xf32>
    %80 = arith.subf %79, %72 : vector<8x32xf32>
    %81 = arith.mulf %80, %78 : vector<8x32xf32>
    %82 = arith.mulf %72, %55 : vector<8x32xf32>
    %83 = arith.addf %81, %82 : vector<8x32xf32>
    %cst_21 = arith.constant dense<0.000000e+00> : vector<8x96xf32>
    %84 = tpu.matmul %83, %9, %cst_21 {dimension_numbers = #tpu.dot_dimension_numbers<[1], [0], [0], [1], [0, 0, 1, 1], [], []>} : vector<8x32xf32>, vector<32x96xf32>, vector<8x96xf32> -> vector<8x96xf32>
    %85 = vector.extract_strided_slice %18 {offsets = [16, 0], sizes = [8, 32], strides = [1, 1]} : vector<64x32xf32> to vector<8x32xf32>
    %86 = vector.extract_strided_slice %84 {offsets = [0, 0], sizes = [8, 32], strides = [1, 1]} : vector<8x96xf32> to vector<8x32xf32>
    %87 = arith.addf %85, %86 : vector<8x32xf32>
    %88 = arith.negf %87 : vector<8x32xf32>
    %89 = math.exp %88 : vector<8x32xf32>
    %cst_22 = arith.constant 1.000000e+00 : f32
    %90 = vector.broadcast %cst_22 : f32 to vector<8x32xf32>
    %91 = arith.addf %90, %89 : vector<8x32xf32>
    %92 = arith.divf %90, %91 : vector<8x32xf32>
    %93 = vector.extract_strided_slice %22 {offsets = [16, 0], sizes = [8, 32], strides = [1, 1]} : vector<64x32xf32> to vector<8x32xf32>
    %94 = vector.extract_strided_slice %84 {offsets = [0, 32], sizes = [8, 32], strides = [1, 1]} : vector<8x96xf32> to vector<8x32xf32>
    %95 = arith.addf %93, %94 : vector<8x32xf32>
    %96 = arith.negf %95 : vector<8x32xf32>
    %97 = math.exp %96 : vector<8x32xf32>
    %cst_23 = arith.constant 1.000000e+00 : f32
    %98 = vector.broadcast %cst_23 : f32 to vector<8x32xf32>
    %99 = arith.addf %98, %97 : vector<8x32xf32>
    %100 = arith.divf %98, %99 : vector<8x32xf32>
    %101 = vector.extract_strided_slice %23 {offsets = [16, 0], sizes = [8, 32], strides = [1, 1]} : vector<64x32xf32> to vector<8x32xf32>
    %102 = vector.extract_strided_slice %84 {offsets = [0, 64], sizes = [8, 32], strides = [1, 1]} : vector<8x96xf32> to vector<8x32xf32>
    %103 = arith.addf %102, %26 : vector<8x32xf32>
    %104 = arith.mulf %92, %103 : vector<8x32xf32>
    %105 = arith.addf %101, %104 : vector<8x32xf32>
    %106 = math.tanh %105 : vector<8x32xf32>
    %cst_24 = arith.constant 1.000000e+00 : f32
    %107 = vector.broadcast %cst_24 : f32 to vector<8x32xf32>
    %108 = arith.subf %107, %100 : vector<8x32xf32>
    %109 = arith.mulf %108, %106 : vector<8x32xf32>
    %110 = arith.mulf %100, %83 : vector<8x32xf32>
    %111 = arith.addf %109, %110 : vector<8x32xf32>
    %cst_25 = arith.constant dense<0.000000e+00> : vector<8x96xf32>
    %112 = tpu.matmul %111, %9, %cst_25 {dimension_numbers = #tpu.dot_dimension_numbers<[1], [0], [0], [1], [0, 0, 1, 1], [], []>} : vector<8x32xf32>, vector<32x96xf32>, vector<8x96xf32> -> vector<8x96xf32>
    %113 = vector.extract_strided_slice %18 {offsets = [24, 0], sizes = [8, 32], strides = [1, 1]} : vector<64x32xf32> to vector<8x32xf32>
    %114 = vector.extract_strided_slice %112 {offsets = [0, 0], sizes = [8, 32], strides = [1, 1]} : vector<8x96xf32> to vector<8x32xf32>
    %115 = arith.addf %113, %114 : vector<8x32xf32>
    %116 = arith.negf %115 : vector<8x32xf32>
    %117 = math.exp %116 : vector<8x32xf32>
    %cst_26 = arith.constant 1.000000e+00 : f32
    %118 = vector.broadcast %cst_26 : f32 to vector<8x32xf32>
    %119 = arith.addf %118, %117 : vector<8x32xf32>
    %120 = arith.divf %118, %119 : vector<8x32xf32>
    %121 = vector.extract_strided_slice %22 {offsets = [24, 0], sizes = [8, 32], strides = [1, 1]} : vector<64x32xf32> to vector<8x32xf32>
    %122 = vector.extract_strided_slice %112 {offsets = [0, 32], sizes = [8, 32], strides = [1, 1]} : vector<8x96xf32> to vector<8x32xf32>
    %123 = arith.addf %121, %122 : vector<8x32xf32>
    %124 = arith.negf %123 : vector<8x32xf32>
    %125 = math.exp %124 : vector<8x32xf32>
    %cst_27 = arith.constant 1.000000e+00 : f32
    %126 = vector.broadcast %cst_27 : f32 to vector<8x32xf32>
    %127 = arith.addf %126, %125 : vector<8x32xf32>
    %128 = arith.divf %126, %127 : vector<8x32xf32>
    %129 = vector.extract_strided_slice %23 {offsets = [24, 0], sizes = [8, 32], strides = [1, 1]} : vector<64x32xf32> to vector<8x32xf32>
    %130 = vector.extract_strided_slice %112 {offsets = [0, 64], sizes = [8, 32], strides = [1, 1]} : vector<8x96xf32> to vector<8x32xf32>
    %131 = arith.addf %130, %26 : vector<8x32xf32>
    %132 = arith.mulf %120, %131 : vector<8x32xf32>
    %133 = arith.addf %129, %132 : vector<8x32xf32>
    %134 = math.tanh %133 : vector<8x32xf32>
    %cst_28 = arith.constant 1.000000e+00 : f32
    %135 = vector.broadcast %cst_28 : f32 to vector<8x32xf32>
    %136 = arith.subf %135, %128 : vector<8x32xf32>
    %137 = arith.mulf %136, %134 : vector<8x32xf32>
    %138 = arith.mulf %128, %111 : vector<8x32xf32>
    %139 = arith.addf %137, %138 : vector<8x32xf32>
    %cst_29 = arith.constant dense<0.000000e+00> : vector<8x96xf32>
    %140 = tpu.matmul %139, %9, %cst_29 {dimension_numbers = #tpu.dot_dimension_numbers<[1], [0], [0], [1], [0, 0, 1, 1], [], []>} : vector<8x32xf32>, vector<32x96xf32>, vector<8x96xf32> -> vector<8x96xf32>
    %141 = vector.extract_strided_slice %18 {offsets = [32, 0], sizes = [8, 32], strides = [1, 1]} : vector<64x32xf32> to vector<8x32xf32>
    %142 = vector.extract_strided_slice %140 {offsets = [0, 0], sizes = [8, 32], strides = [1, 1]} : vector<8x96xf32> to vector<8x32xf32>
    %143 = arith.addf %141, %142 : vector<8x32xf32>
    %144 = arith.negf %143 : vector<8x32xf32>
    %145 = math.exp %144 : vector<8x32xf32>
    %cst_30 = arith.constant 1.000000e+00 : f32
    %146 = vector.broadcast %cst_30 : f32 to vector<8x32xf32>
    %147 = arith.addf %146, %145 : vector<8x32xf32>
    %148 = arith.divf %146, %147 : vector<8x32xf32>
    %149 = vector.extract_strided_slice %22 {offsets = [32, 0], sizes = [8, 32], strides = [1, 1]} : vector<64x32xf32> to vector<8x32xf32>
    %150 = vector.extract_strided_slice %140 {offsets = [0, 32], sizes = [8, 32], strides = [1, 1]} : vector<8x96xf32> to vector<8x32xf32>
    %151 = arith.addf %149, %150 : vector<8x32xf32>
    %152 = arith.negf %151 : vector<8x32xf32>
    %153 = math.exp %152 : vector<8x32xf32>
    %cst_31 = arith.constant 1.000000e+00 : f32
    %154 = vector.broadcast %cst_31 : f32 to vector<8x32xf32>
    %155 = arith.addf %154, %153 : vector<8x32xf32>
    %156 = arith.divf %154, %155 : vector<8x32xf32>
    %157 = vector.extract_strided_slice %23 {offsets = [32, 0], sizes = [8, 32], strides = [1, 1]} : vector<64x32xf32> to vector<8x32xf32>
    %158 = vector.extract_strided_slice %140 {offsets = [0, 64], sizes = [8, 32], strides = [1, 1]} : vector<8x96xf32> to vector<8x32xf32>
    %159 = arith.addf %158, %26 : vector<8x32xf32>
    %160 = arith.mulf %148, %159 : vector<8x32xf32>
    %161 = arith.addf %157, %160 : vector<8x32xf32>
    %162 = math.tanh %161 : vector<8x32xf32>
    %cst_32 = arith.constant 1.000000e+00 : f32
    %163 = vector.broadcast %cst_32 : f32 to vector<8x32xf32>
    %164 = arith.subf %163, %156 : vector<8x32xf32>
    %165 = arith.mulf %164, %162 : vector<8x32xf32>
    %166 = arith.mulf %156, %139 : vector<8x32xf32>
    %167 = arith.addf %165, %166 : vector<8x32xf32>
    %cst_33 = arith.constant dense<0.000000e+00> : vector<8x96xf32>
    %168 = tpu.matmul %167, %9, %cst_33 {dimension_numbers = #tpu.dot_dimension_numbers<[1], [0], [0], [1], [0, 0, 1, 1], [], []>} : vector<8x32xf32>, vector<32x96xf32>, vector<8x96xf32> -> vector<8x96xf32>
    %169 = vector.extract_strided_slice %18 {offsets = [40, 0], sizes = [8, 32], strides = [1, 1]} : vector<64x32xf32> to vector<8x32xf32>
    %170 = vector.extract_strided_slice %168 {offsets = [0, 0], sizes = [8, 32], strides = [1, 1]} : vector<8x96xf32> to vector<8x32xf32>
    %171 = arith.addf %169, %170 : vector<8x32xf32>
    %172 = arith.negf %171 : vector<8x32xf32>
    %173 = math.exp %172 : vector<8x32xf32>
    %cst_34 = arith.constant 1.000000e+00 : f32
    %174 = vector.broadcast %cst_34 : f32 to vector<8x32xf32>
    %175 = arith.addf %174, %173 : vector<8x32xf32>
    %176 = arith.divf %174, %175 : vector<8x32xf32>
    %177 = vector.extract_strided_slice %22 {offsets = [40, 0], sizes = [8, 32], strides = [1, 1]} : vector<64x32xf32> to vector<8x32xf32>
    %178 = vector.extract_strided_slice %168 {offsets = [0, 32], sizes = [8, 32], strides = [1, 1]} : vector<8x96xf32> to vector<8x32xf32>
    %179 = arith.addf %177, %178 : vector<8x32xf32>
    %180 = arith.negf %179 : vector<8x32xf32>
    %181 = math.exp %180 : vector<8x32xf32>
    %cst_35 = arith.constant 1.000000e+00 : f32
    %182 = vector.broadcast %cst_35 : f32 to vector<8x32xf32>
    %183 = arith.addf %182, %181 : vector<8x32xf32>
    %184 = arith.divf %182, %183 : vector<8x32xf32>
    %185 = vector.extract_strided_slice %23 {offsets = [40, 0], sizes = [8, 32], strides = [1, 1]} : vector<64x32xf32> to vector<8x32xf32>
    %186 = vector.extract_strided_slice %168 {offsets = [0, 64], sizes = [8, 32], strides = [1, 1]} : vector<8x96xf32> to vector<8x32xf32>
    %187 = arith.addf %186, %26 : vector<8x32xf32>
    %188 = arith.mulf %176, %187 : vector<8x32xf32>
    %189 = arith.addf %185, %188 : vector<8x32xf32>
    %190 = math.tanh %189 : vector<8x32xf32>
    %cst_36 = arith.constant 1.000000e+00 : f32
    %191 = vector.broadcast %cst_36 : f32 to vector<8x32xf32>
    %192 = arith.subf %191, %184 : vector<8x32xf32>
    %193 = arith.mulf %192, %190 : vector<8x32xf32>
    %194 = arith.mulf %184, %167 : vector<8x32xf32>
    %195 = arith.addf %193, %194 : vector<8x32xf32>
    %cst_37 = arith.constant dense<0.000000e+00> : vector<8x96xf32>
    %196 = tpu.matmul %195, %9, %cst_37 {dimension_numbers = #tpu.dot_dimension_numbers<[1], [0], [0], [1], [0, 0, 1, 1], [], []>} : vector<8x32xf32>, vector<32x96xf32>, vector<8x96xf32> -> vector<8x96xf32>
    %197 = vector.extract_strided_slice %18 {offsets = [48, 0], sizes = [8, 32], strides = [1, 1]} : vector<64x32xf32> to vector<8x32xf32>
    %198 = vector.extract_strided_slice %196 {offsets = [0, 0], sizes = [8, 32], strides = [1, 1]} : vector<8x96xf32> to vector<8x32xf32>
    %199 = arith.addf %197, %198 : vector<8x32xf32>
    %200 = arith.negf %199 : vector<8x32xf32>
    %201 = math.exp %200 : vector<8x32xf32>
    %cst_38 = arith.constant 1.000000e+00 : f32
    %202 = vector.broadcast %cst_38 : f32 to vector<8x32xf32>
    %203 = arith.addf %202, %201 : vector<8x32xf32>
    %204 = arith.divf %202, %203 : vector<8x32xf32>
    %205 = vector.extract_strided_slice %22 {offsets = [48, 0], sizes = [8, 32], strides = [1, 1]} : vector<64x32xf32> to vector<8x32xf32>
    %206 = vector.extract_strided_slice %196 {offsets = [0, 32], sizes = [8, 32], strides = [1, 1]} : vector<8x96xf32> to vector<8x32xf32>
    %207 = arith.addf %205, %206 : vector<8x32xf32>
    %208 = arith.negf %207 : vector<8x32xf32>
    %209 = math.exp %208 : vector<8x32xf32>
    %cst_39 = arith.constant 1.000000e+00 : f32
    %210 = vector.broadcast %cst_39 : f32 to vector<8x32xf32>
    %211 = arith.addf %210, %209 : vector<8x32xf32>
    %212 = arith.divf %210, %211 : vector<8x32xf32>
    %213 = vector.extract_strided_slice %23 {offsets = [48, 0], sizes = [8, 32], strides = [1, 1]} : vector<64x32xf32> to vector<8x32xf32>
    %214 = vector.extract_strided_slice %196 {offsets = [0, 64], sizes = [8, 32], strides = [1, 1]} : vector<8x96xf32> to vector<8x32xf32>
    %215 = arith.addf %214, %26 : vector<8x32xf32>
    %216 = arith.mulf %204, %215 : vector<8x32xf32>
    %217 = arith.addf %213, %216 : vector<8x32xf32>
    %218 = math.tanh %217 : vector<8x32xf32>
    %cst_40 = arith.constant 1.000000e+00 : f32
    %219 = vector.broadcast %cst_40 : f32 to vector<8x32xf32>
    %220 = arith.subf %219, %212 : vector<8x32xf32>
    %221 = arith.mulf %220, %218 : vector<8x32xf32>
    %222 = arith.mulf %212, %195 : vector<8x32xf32>
    %223 = arith.addf %221, %222 : vector<8x32xf32>
    %cst_41 = arith.constant dense<0.000000e+00> : vector<8x96xf32>
    %224 = tpu.matmul %223, %9, %cst_41 {dimension_numbers = #tpu.dot_dimension_numbers<[1], [0], [0], [1], [0, 0, 1, 1], [], []>} : vector<8x32xf32>, vector<32x96xf32>, vector<8x96xf32> -> vector<8x96xf32>
    %225 = vector.extract_strided_slice %18 {offsets = [56, 0], sizes = [8, 32], strides = [1, 1]} : vector<64x32xf32> to vector<8x32xf32>
    %226 = vector.extract_strided_slice %224 {offsets = [0, 0], sizes = [8, 32], strides = [1, 1]} : vector<8x96xf32> to vector<8x32xf32>
    %227 = arith.addf %225, %226 : vector<8x32xf32>
    %228 = arith.negf %227 : vector<8x32xf32>
    %229 = math.exp %228 : vector<8x32xf32>
    %cst_42 = arith.constant 1.000000e+00 : f32
    %230 = vector.broadcast %cst_42 : f32 to vector<8x32xf32>
    %231 = arith.addf %230, %229 : vector<8x32xf32>
    %232 = arith.divf %230, %231 : vector<8x32xf32>
    %233 = vector.extract_strided_slice %22 {offsets = [56, 0], sizes = [8, 32], strides = [1, 1]} : vector<64x32xf32> to vector<8x32xf32>
    %234 = vector.extract_strided_slice %224 {offsets = [0, 32], sizes = [8, 32], strides = [1, 1]} : vector<8x96xf32> to vector<8x32xf32>
    %235 = arith.addf %233, %234 : vector<8x32xf32>
    %236 = arith.negf %235 : vector<8x32xf32>
    %237 = math.exp %236 : vector<8x32xf32>
    %cst_43 = arith.constant 1.000000e+00 : f32
    %238 = vector.broadcast %cst_43 : f32 to vector<8x32xf32>
    %239 = arith.addf %238, %237 : vector<8x32xf32>
    %240 = arith.divf %238, %239 : vector<8x32xf32>
    %241 = vector.extract_strided_slice %23 {offsets = [56, 0], sizes = [8, 32], strides = [1, 1]} : vector<64x32xf32> to vector<8x32xf32>
    %242 = vector.extract_strided_slice %224 {offsets = [0, 64], sizes = [8, 32], strides = [1, 1]} : vector<8x96xf32> to vector<8x32xf32>
    %243 = arith.addf %242, %26 : vector<8x32xf32>
    %244 = arith.mulf %232, %243 : vector<8x32xf32>
    %245 = arith.addf %241, %244 : vector<8x32xf32>
    %246 = math.tanh %245 : vector<8x32xf32>
    %cst_44 = arith.constant 1.000000e+00 : f32
    %247 = vector.broadcast %cst_44 : f32 to vector<8x32xf32>
    %248 = arith.subf %247, %240 : vector<8x32xf32>
    %249 = arith.mulf %248, %246 : vector<8x32xf32>
    %250 = arith.mulf %240, %223 : vector<8x32xf32>
    %251 = arith.addf %249, %250 : vector<8x32xf32>
    %252 = tpu.concatenate %55, %83, %111, %139, %167, %195, %223, %251 in 0 : vector<8x32xf32>, vector<8x32xf32>, vector<8x32xf32>, vector<8x32xf32>, vector<8x32xf32>, vector<8x32xf32>, vector<8x32xf32>, vector<8x32xf32> -> vector<64x32xf32>
    %c0_45 = arith.constant 0 : index
    %c0_46 = arith.constant 0 : index
    %253 = vector.load %arg6[%c0_45, %c0_46] : memref<32x96xf32, #tpu.memory_space<vmem>>, vector<32x96xf32>
    %c0_47 = arith.constant 0 : index
    %c0_48 = arith.constant 0 : index
    %254 = vector.load %arg7[%c0_47, %c0_48] : memref<32x96xf32, #tpu.memory_space<vmem>>, vector<32x96xf32>
    %c0_49 = arith.constant 0 : index
    %c0_50 = arith.constant 0 : index
    %255 = vector.load %arg8[%c0_49, %c0_50] : memref<1x96xf32, #tpu.memory_space<vmem>>, vector<1x96xf32>
    %c0_51 = arith.constant 0 : index
    %c0_52 = arith.constant 0 : index
    %256 = vector.load %arg9[%c0_51, %c0_52] : memref<1x96xf32, #tpu.memory_space<vmem>>, vector<1x96xf32>
    %cst_53 = arith.constant dense<0.000000e+00> : vector<64x96xf32>
    %257 = tpu.matmul %252, %253, %cst_53 {dimension_numbers = #tpu.dot_dimension_numbers<[1], [0], [0], [1], [0, 0, 1, 1], [], []>} : vector<64x32xf32>, vector<32x96xf32>, vector<64x96xf32> -> vector<64x96xf32>
    %258 = vector.broadcast %255 : vector<1x96xf32> to vector<64x96xf32>
    %259 = arith.addf %257, %258 : vector<64x96xf32>
    %260 = vector.extract_strided_slice %259 {offsets = [0, 0], sizes = [64, 32], strides = [1, 1]} : vector<64x96xf32> to vector<64x32xf32>
    %261 = vector.extract_strided_slice %256 {offsets = [0, 0], sizes = [1, 32], strides = [1, 1]} : vector<1x96xf32> to vector<1x32xf32>
    %262 = vector.broadcast %261 : vector<1x32xf32> to vector<64x32xf32>
    %263 = arith.addf %260, %262 : vector<64x32xf32>
    %264 = vector.extract_strided_slice %259 {offsets = [0, 32], sizes = [64, 32], strides = [1, 1]} : vector<64x96xf32> to vector<64x32xf32>
    %265 = vector.extract_strided_slice %256 {offsets = [0, 32], sizes = [1, 32], strides = [1, 1]} : vector<1x96xf32> to vector<1x32xf32>
    %266 = vector.broadcast %265 : vector<1x32xf32> to vector<64x32xf32>
    %267 = arith.addf %264, %266 : vector<64x32xf32>
    %268 = vector.extract_strided_slice %259 {offsets = [0, 64], sizes = [64, 32], strides = [1, 1]} : vector<64x96xf32> to vector<64x32xf32>
    %269 = vector.extract_strided_slice %256 {offsets = [0, 64], sizes = [1, 32], strides = [1, 1]} : vector<1x96xf32> to vector<1x32xf32>
    %270 = vector.shape_cast %269 : vector<1x32xf32> to vector<1x32xf32>
    %271 = vector.broadcast %270 : vector<1x32xf32> to vector<8x32xf32>
    %cst_54 = arith.constant 0.000000e+00 : f32
    %272 = vector.broadcast %cst_54 : f32 to vector<8x32xf32>
    %cst_55 = arith.constant dense<0.000000e+00> : vector<8x96xf32>
    %273 = tpu.matmul %272, %254, %cst_55 {dimension_numbers = #tpu.dot_dimension_numbers<[1], [0], [0], [1], [0, 0, 1, 1], [], []>} : vector<8x32xf32>, vector<32x96xf32>, vector<8x96xf32> -> vector<8x96xf32>
    %274 = vector.extract_strided_slice %263 {offsets = [0, 0], sizes = [8, 32], strides = [1, 1]} : vector<64x32xf32> to vector<8x32xf32>
    %275 = vector.extract_strided_slice %273 {offsets = [0, 0], sizes = [8, 32], strides = [1, 1]} : vector<8x96xf32> to vector<8x32xf32>
    %276 = arith.addf %274, %275 : vector<8x32xf32>
    %277 = arith.negf %276 : vector<8x32xf32>
    %278 = math.exp %277 : vector<8x32xf32>
    %cst_56 = arith.constant 1.000000e+00 : f32
    %279 = vector.broadcast %cst_56 : f32 to vector<8x32xf32>
    %280 = arith.addf %279, %278 : vector<8x32xf32>
    %281 = arith.divf %279, %280 : vector<8x32xf32>
    %282 = vector.extract_strided_slice %267 {offsets = [0, 0], sizes = [8, 32], strides = [1, 1]} : vector<64x32xf32> to vector<8x32xf32>
    %283 = vector.extract_strided_slice %273 {offsets = [0, 32], sizes = [8, 32], strides = [1, 1]} : vector<8x96xf32> to vector<8x32xf32>
    %284 = arith.addf %282, %283 : vector<8x32xf32>
    %285 = arith.negf %284 : vector<8x32xf32>
    %286 = math.exp %285 : vector<8x32xf32>
    %cst_57 = arith.constant 1.000000e+00 : f32
    %287 = vector.broadcast %cst_57 : f32 to vector<8x32xf32>
    %288 = arith.addf %287, %286 : vector<8x32xf32>
    %289 = arith.divf %287, %288 : vector<8x32xf32>
    %290 = vector.extract_strided_slice %268 {offsets = [0, 0], sizes = [8, 32], strides = [1, 1]} : vector<64x32xf32> to vector<8x32xf32>
    %291 = vector.extract_strided_slice %273 {offsets = [0, 64], sizes = [8, 32], strides = [1, 1]} : vector<8x96xf32> to vector<8x32xf32>
    %292 = arith.addf %291, %271 : vector<8x32xf32>
    %293 = arith.mulf %281, %292 : vector<8x32xf32>
    %294 = arith.addf %290, %293 : vector<8x32xf32>
    %295 = math.tanh %294 : vector<8x32xf32>
    %cst_58 = arith.constant 1.000000e+00 : f32
    %296 = vector.broadcast %cst_58 : f32 to vector<8x32xf32>
    %297 = arith.subf %296, %289 : vector<8x32xf32>
    %298 = arith.mulf %297, %295 : vector<8x32xf32>
    %299 = arith.mulf %289, %272 : vector<8x32xf32>
    %300 = arith.addf %298, %299 : vector<8x32xf32>
    %cst_59 = arith.constant dense<0.000000e+00> : vector<8x96xf32>
    %301 = tpu.matmul %300, %254, %cst_59 {dimension_numbers = #tpu.dot_dimension_numbers<[1], [0], [0], [1], [0, 0, 1, 1], [], []>} : vector<8x32xf32>, vector<32x96xf32>, vector<8x96xf32> -> vector<8x96xf32>
    %302 = vector.extract_strided_slice %263 {offsets = [8, 0], sizes = [8, 32], strides = [1, 1]} : vector<64x32xf32> to vector<8x32xf32>
    %303 = vector.extract_strided_slice %301 {offsets = [0, 0], sizes = [8, 32], strides = [1, 1]} : vector<8x96xf32> to vector<8x32xf32>
    %304 = arith.addf %302, %303 : vector<8x32xf32>
    %305 = arith.negf %304 : vector<8x32xf32>
    %306 = math.exp %305 : vector<8x32xf32>
    %cst_60 = arith.constant 1.000000e+00 : f32
    %307 = vector.broadcast %cst_60 : f32 to vector<8x32xf32>
    %308 = arith.addf %307, %306 : vector<8x32xf32>
    %309 = arith.divf %307, %308 : vector<8x32xf32>
    %310 = vector.extract_strided_slice %267 {offsets = [8, 0], sizes = [8, 32], strides = [1, 1]} : vector<64x32xf32> to vector<8x32xf32>
    %311 = vector.extract_strided_slice %301 {offsets = [0, 32], sizes = [8, 32], strides = [1, 1]} : vector<8x96xf32> to vector<8x32xf32>
    %312 = arith.addf %310, %311 : vector<8x32xf32>
    %313 = arith.negf %312 : vector<8x32xf32>
    %314 = math.exp %313 : vector<8x32xf32>
    %cst_61 = arith.constant 1.000000e+00 : f32
    %315 = vector.broadcast %cst_61 : f32 to vector<8x32xf32>
    %316 = arith.addf %315, %314 : vector<8x32xf32>
    %317 = arith.divf %315, %316 : vector<8x32xf32>
    %318 = vector.extract_strided_slice %268 {offsets = [8, 0], sizes = [8, 32], strides = [1, 1]} : vector<64x32xf32> to vector<8x32xf32>
    %319 = vector.extract_strided_slice %301 {offsets = [0, 64], sizes = [8, 32], strides = [1, 1]} : vector<8x96xf32> to vector<8x32xf32>
    %320 = arith.addf %319, %271 : vector<8x32xf32>
    %321 = arith.mulf %309, %320 : vector<8x32xf32>
    %322 = arith.addf %318, %321 : vector<8x32xf32>
    %323 = math.tanh %322 : vector<8x32xf32>
    %cst_62 = arith.constant 1.000000e+00 : f32
    %324 = vector.broadcast %cst_62 : f32 to vector<8x32xf32>
    %325 = arith.subf %324, %317 : vector<8x32xf32>
    %326 = arith.mulf %325, %323 : vector<8x32xf32>
    %327 = arith.mulf %317, %300 : vector<8x32xf32>
    %328 = arith.addf %326, %327 : vector<8x32xf32>
    %cst_63 = arith.constant dense<0.000000e+00> : vector<8x96xf32>
    %329 = tpu.matmul %328, %254, %cst_63 {dimension_numbers = #tpu.dot_dimension_numbers<[1], [0], [0], [1], [0, 0, 1, 1], [], []>} : vector<8x32xf32>, vector<32x96xf32>, vector<8x96xf32> -> vector<8x96xf32>
    %330 = vector.extract_strided_slice %263 {offsets = [16, 0], sizes = [8, 32], strides = [1, 1]} : vector<64x32xf32> to vector<8x32xf32>
    %331 = vector.extract_strided_slice %329 {offsets = [0, 0], sizes = [8, 32], strides = [1, 1]} : vector<8x96xf32> to vector<8x32xf32>
    %332 = arith.addf %330, %331 : vector<8x32xf32>
    %333 = arith.negf %332 : vector<8x32xf32>
    %334 = math.exp %333 : vector<8x32xf32>
    %cst_64 = arith.constant 1.000000e+00 : f32
    %335 = vector.broadcast %cst_64 : f32 to vector<8x32xf32>
    %336 = arith.addf %335, %334 : vector<8x32xf32>
    %337 = arith.divf %335, %336 : vector<8x32xf32>
    %338 = vector.extract_strided_slice %267 {offsets = [16, 0], sizes = [8, 32], strides = [1, 1]} : vector<64x32xf32> to vector<8x32xf32>
    %339 = vector.extract_strided_slice %329 {offsets = [0, 32], sizes = [8, 32], strides = [1, 1]} : vector<8x96xf32> to vector<8x32xf32>
    %340 = arith.addf %338, %339 : vector<8x32xf32>
    %341 = arith.negf %340 : vector<8x32xf32>
    %342 = math.exp %341 : vector<8x32xf32>
    %cst_65 = arith.constant 1.000000e+00 : f32
    %343 = vector.broadcast %cst_65 : f32 to vector<8x32xf32>
    %344 = arith.addf %343, %342 : vector<8x32xf32>
    %345 = arith.divf %343, %344 : vector<8x32xf32>
    %346 = vector.extract_strided_slice %268 {offsets = [16, 0], sizes = [8, 32], strides = [1, 1]} : vector<64x32xf32> to vector<8x32xf32>
    %347 = vector.extract_strided_slice %329 {offsets = [0, 64], sizes = [8, 32], strides = [1, 1]} : vector<8x96xf32> to vector<8x32xf32>
    %348 = arith.addf %347, %271 : vector<8x32xf32>
    %349 = arith.mulf %337, %348 : vector<8x32xf32>
    %350 = arith.addf %346, %349 : vector<8x32xf32>
    %351 = math.tanh %350 : vector<8x32xf32>
    %cst_66 = arith.constant 1.000000e+00 : f32
    %352 = vector.broadcast %cst_66 : f32 to vector<8x32xf32>
    %353 = arith.subf %352, %345 : vector<8x32xf32>
    %354 = arith.mulf %353, %351 : vector<8x32xf32>
    %355 = arith.mulf %345, %328 : vector<8x32xf32>
    %356 = arith.addf %354, %355 : vector<8x32xf32>
    %cst_67 = arith.constant dense<0.000000e+00> : vector<8x96xf32>
    %357 = tpu.matmul %356, %254, %cst_67 {dimension_numbers = #tpu.dot_dimension_numbers<[1], [0], [0], [1], [0, 0, 1, 1], [], []>} : vector<8x32xf32>, vector<32x96xf32>, vector<8x96xf32> -> vector<8x96xf32>
    %358 = vector.extract_strided_slice %263 {offsets = [24, 0], sizes = [8, 32], strides = [1, 1]} : vector<64x32xf32> to vector<8x32xf32>
    %359 = vector.extract_strided_slice %357 {offsets = [0, 0], sizes = [8, 32], strides = [1, 1]} : vector<8x96xf32> to vector<8x32xf32>
    %360 = arith.addf %358, %359 : vector<8x32xf32>
    %361 = arith.negf %360 : vector<8x32xf32>
    %362 = math.exp %361 : vector<8x32xf32>
    %cst_68 = arith.constant 1.000000e+00 : f32
    %363 = vector.broadcast %cst_68 : f32 to vector<8x32xf32>
    %364 = arith.addf %363, %362 : vector<8x32xf32>
    %365 = arith.divf %363, %364 : vector<8x32xf32>
    %366 = vector.extract_strided_slice %267 {offsets = [24, 0], sizes = [8, 32], strides = [1, 1]} : vector<64x32xf32> to vector<8x32xf32>
    %367 = vector.extract_strided_slice %357 {offsets = [0, 32], sizes = [8, 32], strides = [1, 1]} : vector<8x96xf32> to vector<8x32xf32>
    %368 = arith.addf %366, %367 : vector<8x32xf32>
    %369 = arith.negf %368 : vector<8x32xf32>
    %370 = math.exp %369 : vector<8x32xf32>
    %cst_69 = arith.constant 1.000000e+00 : f32
    %371 = vector.broadcast %cst_69 : f32 to vector<8x32xf32>
    %372 = arith.addf %371, %370 : vector<8x32xf32>
    %373 = arith.divf %371, %372 : vector<8x32xf32>
    %374 = vector.extract_strided_slice %268 {offsets = [24, 0], sizes = [8, 32], strides = [1, 1]} : vector<64x32xf32> to vector<8x32xf32>
    %375 = vector.extract_strided_slice %357 {offsets = [0, 64], sizes = [8, 32], strides = [1, 1]} : vector<8x96xf32> to vector<8x32xf32>
    %376 = arith.addf %375, %271 : vector<8x32xf32>
    %377 = arith.mulf %365, %376 : vector<8x32xf32>
    %378 = arith.addf %374, %377 : vector<8x32xf32>
    %379 = math.tanh %378 : vector<8x32xf32>
    %cst_70 = arith.constant 1.000000e+00 : f32
    %380 = vector.broadcast %cst_70 : f32 to vector<8x32xf32>
    %381 = arith.subf %380, %373 : vector<8x32xf32>
    %382 = arith.mulf %381, %379 : vector<8x32xf32>
    %383 = arith.mulf %373, %356 : vector<8x32xf32>
    %384 = arith.addf %382, %383 : vector<8x32xf32>
    %cst_71 = arith.constant dense<0.000000e+00> : vector<8x96xf32>
    %385 = tpu.matmul %384, %254, %cst_71 {dimension_numbers = #tpu.dot_dimension_numbers<[1], [0], [0], [1], [0, 0, 1, 1], [], []>} : vector<8x32xf32>, vector<32x96xf32>, vector<8x96xf32> -> vector<8x96xf32>
    %386 = vector.extract_strided_slice %263 {offsets = [32, 0], sizes = [8, 32], strides = [1, 1]} : vector<64x32xf32> to vector<8x32xf32>
    %387 = vector.extract_strided_slice %385 {offsets = [0, 0], sizes = [8, 32], strides = [1, 1]} : vector<8x96xf32> to vector<8x32xf32>
    %388 = arith.addf %386, %387 : vector<8x32xf32>
    %389 = arith.negf %388 : vector<8x32xf32>
    %390 = math.exp %389 : vector<8x32xf32>
    %cst_72 = arith.constant 1.000000e+00 : f32
    %391 = vector.broadcast %cst_72 : f32 to vector<8x32xf32>
    %392 = arith.addf %391, %390 : vector<8x32xf32>
    %393 = arith.divf %391, %392 : vector<8x32xf32>
    %394 = vector.extract_strided_slice %267 {offsets = [32, 0], sizes = [8, 32], strides = [1, 1]} : vector<64x32xf32> to vector<8x32xf32>
    %395 = vector.extract_strided_slice %385 {offsets = [0, 32], sizes = [8, 32], strides = [1, 1]} : vector<8x96xf32> to vector<8x32xf32>
    %396 = arith.addf %394, %395 : vector<8x32xf32>
    %397 = arith.negf %396 : vector<8x32xf32>
    %398 = math.exp %397 : vector<8x32xf32>
    %cst_73 = arith.constant 1.000000e+00 : f32
    %399 = vector.broadcast %cst_73 : f32 to vector<8x32xf32>
    %400 = arith.addf %399, %398 : vector<8x32xf32>
    %401 = arith.divf %399, %400 : vector<8x32xf32>
    %402 = vector.extract_strided_slice %268 {offsets = [32, 0], sizes = [8, 32], strides = [1, 1]} : vector<64x32xf32> to vector<8x32xf32>
    %403 = vector.extract_strided_slice %385 {offsets = [0, 64], sizes = [8, 32], strides = [1, 1]} : vector<8x96xf32> to vector<8x32xf32>
    %404 = arith.addf %403, %271 : vector<8x32xf32>
    %405 = arith.mulf %393, %404 : vector<8x32xf32>
    %406 = arith.addf %402, %405 : vector<8x32xf32>
    %407 = math.tanh %406 : vector<8x32xf32>
    %cst_74 = arith.constant 1.000000e+00 : f32
    %408 = vector.broadcast %cst_74 : f32 to vector<8x32xf32>
    %409 = arith.subf %408, %401 : vector<8x32xf32>
    %410 = arith.mulf %409, %407 : vector<8x32xf32>
    %411 = arith.mulf %401, %384 : vector<8x32xf32>
    %412 = arith.addf %410, %411 : vector<8x32xf32>
    %cst_75 = arith.constant dense<0.000000e+00> : vector<8x96xf32>
    %413 = tpu.matmul %412, %254, %cst_75 {dimension_numbers = #tpu.dot_dimension_numbers<[1], [0], [0], [1], [0, 0, 1, 1], [], []>} : vector<8x32xf32>, vector<32x96xf32>, vector<8x96xf32> -> vector<8x96xf32>
    %414 = vector.extract_strided_slice %263 {offsets = [40, 0], sizes = [8, 32], strides = [1, 1]} : vector<64x32xf32> to vector<8x32xf32>
    %415 = vector.extract_strided_slice %413 {offsets = [0, 0], sizes = [8, 32], strides = [1, 1]} : vector<8x96xf32> to vector<8x32xf32>
    %416 = arith.addf %414, %415 : vector<8x32xf32>
    %417 = arith.negf %416 : vector<8x32xf32>
    %418 = math.exp %417 : vector<8x32xf32>
    %cst_76 = arith.constant 1.000000e+00 : f32
    %419 = vector.broadcast %cst_76 : f32 to vector<8x32xf32>
    %420 = arith.addf %419, %418 : vector<8x32xf32>
    %421 = arith.divf %419, %420 : vector<8x32xf32>
    %422 = vector.extract_strided_slice %267 {offsets = [40, 0], sizes = [8, 32], strides = [1, 1]} : vector<64x32xf32> to vector<8x32xf32>
    %423 = vector.extract_strided_slice %413 {offsets = [0, 32], sizes = [8, 32], strides = [1, 1]} : vector<8x96xf32> to vector<8x32xf32>
    %424 = arith.addf %422, %423 : vector<8x32xf32>
    %425 = arith.negf %424 : vector<8x32xf32>
    %426 = math.exp %425 : vector<8x32xf32>
    %cst_77 = arith.constant 1.000000e+00 : f32
    %427 = vector.broadcast %cst_77 : f32 to vector<8x32xf32>
    %428 = arith.addf %427, %426 : vector<8x32xf32>
    %429 = arith.divf %427, %428 : vector<8x32xf32>
    %430 = vector.extract_strided_slice %268 {offsets = [40, 0], sizes = [8, 32], strides = [1, 1]} : vector<64x32xf32> to vector<8x32xf32>
    %431 = vector.extract_strided_slice %413 {offsets = [0, 64], sizes = [8, 32], strides = [1, 1]} : vector<8x96xf32> to vector<8x32xf32>
    %432 = arith.addf %431, %271 : vector<8x32xf32>
    %433 = arith.mulf %421, %432 : vector<8x32xf32>
    %434 = arith.addf %430, %433 : vector<8x32xf32>
    %435 = math.tanh %434 : vector<8x32xf32>
    %cst_78 = arith.constant 1.000000e+00 : f32
    %436 = vector.broadcast %cst_78 : f32 to vector<8x32xf32>
    %437 = arith.subf %436, %429 : vector<8x32xf32>
    %438 = arith.mulf %437, %435 : vector<8x32xf32>
    %439 = arith.mulf %429, %412 : vector<8x32xf32>
    %440 = arith.addf %438, %439 : vector<8x32xf32>
    %cst_79 = arith.constant dense<0.000000e+00> : vector<8x96xf32>
    %441 = tpu.matmul %440, %254, %cst_79 {dimension_numbers = #tpu.dot_dimension_numbers<[1], [0], [0], [1], [0, 0, 1, 1], [], []>} : vector<8x32xf32>, vector<32x96xf32>, vector<8x96xf32> -> vector<8x96xf32>
    %442 = vector.extract_strided_slice %263 {offsets = [48, 0], sizes = [8, 32], strides = [1, 1]} : vector<64x32xf32> to vector<8x32xf32>
    %443 = vector.extract_strided_slice %441 {offsets = [0, 0], sizes = [8, 32], strides = [1, 1]} : vector<8x96xf32> to vector<8x32xf32>
    %444 = arith.addf %442, %443 : vector<8x32xf32>
    %445 = arith.negf %444 : vector<8x32xf32>
    %446 = math.exp %445 : vector<8x32xf32>
    %cst_80 = arith.constant 1.000000e+00 : f32
    %447 = vector.broadcast %cst_80 : f32 to vector<8x32xf32>
    %448 = arith.addf %447, %446 : vector<8x32xf32>
    %449 = arith.divf %447, %448 : vector<8x32xf32>
    %450 = vector.extract_strided_slice %267 {offsets = [48, 0], sizes = [8, 32], strides = [1, 1]} : vector<64x32xf32> to vector<8x32xf32>
    %451 = vector.extract_strided_slice %441 {offsets = [0, 32], sizes = [8, 32], strides = [1, 1]} : vector<8x96xf32> to vector<8x32xf32>
    %452 = arith.addf %450, %451 : vector<8x32xf32>
    %453 = arith.negf %452 : vector<8x32xf32>
    %454 = math.exp %453 : vector<8x32xf32>
    %cst_81 = arith.constant 1.000000e+00 : f32
    %455 = vector.broadcast %cst_81 : f32 to vector<8x32xf32>
    %456 = arith.addf %455, %454 : vector<8x32xf32>
    %457 = arith.divf %455, %456 : vector<8x32xf32>
    %458 = vector.extract_strided_slice %268 {offsets = [48, 0], sizes = [8, 32], strides = [1, 1]} : vector<64x32xf32> to vector<8x32xf32>
    %459 = vector.extract_strided_slice %441 {offsets = [0, 64], sizes = [8, 32], strides = [1, 1]} : vector<8x96xf32> to vector<8x32xf32>
    %460 = arith.addf %459, %271 : vector<8x32xf32>
    %461 = arith.mulf %449, %460 : vector<8x32xf32>
    %462 = arith.addf %458, %461 : vector<8x32xf32>
    %463 = math.tanh %462 : vector<8x32xf32>
    %cst_82 = arith.constant 1.000000e+00 : f32
    %464 = vector.broadcast %cst_82 : f32 to vector<8x32xf32>
    %465 = arith.subf %464, %457 : vector<8x32xf32>
    %466 = arith.mulf %465, %463 : vector<8x32xf32>
    %467 = arith.mulf %457, %440 : vector<8x32xf32>
    %468 = arith.addf %466, %467 : vector<8x32xf32>
    %cst_83 = arith.constant dense<0.000000e+00> : vector<8x96xf32>
    %469 = tpu.matmul %468, %254, %cst_83 {dimension_numbers = #tpu.dot_dimension_numbers<[1], [0], [0], [1], [0, 0, 1, 1], [], []>} : vector<8x32xf32>, vector<32x96xf32>, vector<8x96xf32> -> vector<8x96xf32>
    %470 = vector.extract_strided_slice %263 {offsets = [56, 0], sizes = [8, 32], strides = [1, 1]} : vector<64x32xf32> to vector<8x32xf32>
    %471 = vector.extract_strided_slice %469 {offsets = [0, 0], sizes = [8, 32], strides = [1, 1]} : vector<8x96xf32> to vector<8x32xf32>
    %472 = arith.addf %470, %471 : vector<8x32xf32>
    %473 = arith.negf %472 : vector<8x32xf32>
    %474 = math.exp %473 : vector<8x32xf32>
    %cst_84 = arith.constant 1.000000e+00 : f32
    %475 = vector.broadcast %cst_84 : f32 to vector<8x32xf32>
    %476 = arith.addf %475, %474 : vector<8x32xf32>
    %477 = arith.divf %475, %476 : vector<8x32xf32>
    %478 = vector.extract_strided_slice %267 {offsets = [56, 0], sizes = [8, 32], strides = [1, 1]} : vector<64x32xf32> to vector<8x32xf32>
    %479 = vector.extract_strided_slice %469 {offsets = [0, 32], sizes = [8, 32], strides = [1, 1]} : vector<8x96xf32> to vector<8x32xf32>
    %480 = arith.addf %478, %479 : vector<8x32xf32>
    %481 = arith.negf %480 : vector<8x32xf32>
    %482 = math.exp %481 : vector<8x32xf32>
    %cst_85 = arith.constant 1.000000e+00 : f32
    %483 = vector.broadcast %cst_85 : f32 to vector<8x32xf32>
    %484 = arith.addf %483, %482 : vector<8x32xf32>
    %485 = arith.divf %483, %484 : vector<8x32xf32>
    %486 = vector.extract_strided_slice %268 {offsets = [56, 0], sizes = [8, 32], strides = [1, 1]} : vector<64x32xf32> to vector<8x32xf32>
    %487 = vector.extract_strided_slice %469 {offsets = [0, 64], sizes = [8, 32], strides = [1, 1]} : vector<8x96xf32> to vector<8x32xf32>
    %488 = arith.addf %487, %271 : vector<8x32xf32>
    %489 = arith.mulf %477, %488 : vector<8x32xf32>
    %490 = arith.addf %486, %489 : vector<8x32xf32>
    %491 = math.tanh %490 : vector<8x32xf32>
    %cst_86 = arith.constant 1.000000e+00 : f32
    %492 = vector.broadcast %cst_86 : f32 to vector<8x32xf32>
    %493 = arith.subf %492, %485 : vector<8x32xf32>
    %494 = arith.mulf %493, %491 : vector<8x32xf32>
    %495 = arith.mulf %485, %468 : vector<8x32xf32>
    %496 = arith.addf %494, %495 : vector<8x32xf32>
    %497 = tpu.concatenate %300, %328, %356, %384, %412, %440, %468, %496 in 0 : vector<8x32xf32>, vector<8x32xf32>, vector<8x32xf32>, vector<8x32xf32>, vector<8x32xf32>, vector<8x32xf32>, vector<8x32xf32>, vector<8x32xf32> -> vector<64x32xf32>
    %c0_87 = arith.constant 0 : index
    %c0_88 = arith.constant 0 : index
    %498 = vector.load %arg10[%c0_87, %c0_88] : memref<32x96xf32, #tpu.memory_space<vmem>>, vector<32x96xf32>
    %c0_89 = arith.constant 0 : index
    %c0_90 = arith.constant 0 : index
    %499 = vector.load %arg11[%c0_89, %c0_90] : memref<32x96xf32, #tpu.memory_space<vmem>>, vector<32x96xf32>
    %c0_91 = arith.constant 0 : index
    %c0_92 = arith.constant 0 : index
    %500 = vector.load %arg12[%c0_91, %c0_92] : memref<1x96xf32, #tpu.memory_space<vmem>>, vector<1x96xf32>
    %c0_93 = arith.constant 0 : index
    %c0_94 = arith.constant 0 : index
    %501 = vector.load %arg13[%c0_93, %c0_94] : memref<1x96xf32, #tpu.memory_space<vmem>>, vector<1x96xf32>
    %cst_95 = arith.constant dense<0.000000e+00> : vector<64x96xf32>
    %502 = tpu.matmul %497, %498, %cst_95 {dimension_numbers = #tpu.dot_dimension_numbers<[1], [0], [0], [1], [0, 0, 1, 1], [], []>} : vector<64x32xf32>, vector<32x96xf32>, vector<64x96xf32> -> vector<64x96xf32>
    %503 = vector.broadcast %500 : vector<1x96xf32> to vector<64x96xf32>
    %504 = arith.addf %502, %503 : vector<64x96xf32>
    %505 = vector.extract_strided_slice %504 {offsets = [0, 0], sizes = [64, 32], strides = [1, 1]} : vector<64x96xf32> to vector<64x32xf32>
    %506 = vector.extract_strided_slice %501 {offsets = [0, 0], sizes = [1, 32], strides = [1, 1]} : vector<1x96xf32> to vector<1x32xf32>
    %507 = vector.broadcast %506 : vector<1x32xf32> to vector<64x32xf32>
    %508 = arith.addf %505, %507 : vector<64x32xf32>
    %509 = vector.extract_strided_slice %504 {offsets = [0, 32], sizes = [64, 32], strides = [1, 1]} : vector<64x96xf32> to vector<64x32xf32>
    %510 = vector.extract_strided_slice %501 {offsets = [0, 32], sizes = [1, 32], strides = [1, 1]} : vector<1x96xf32> to vector<1x32xf32>
    %511 = vector.broadcast %510 : vector<1x32xf32> to vector<64x32xf32>
    %512 = arith.addf %509, %511 : vector<64x32xf32>
    %513 = vector.extract_strided_slice %504 {offsets = [0, 64], sizes = [64, 32], strides = [1, 1]} : vector<64x96xf32> to vector<64x32xf32>
    %514 = vector.extract_strided_slice %501 {offsets = [0, 64], sizes = [1, 32], strides = [1, 1]} : vector<1x96xf32> to vector<1x32xf32>
    %515 = vector.shape_cast %514 : vector<1x32xf32> to vector<1x32xf32>
    %516 = vector.broadcast %515 : vector<1x32xf32> to vector<8x32xf32>
    %cst_96 = arith.constant 0.000000e+00 : f32
    %517 = vector.broadcast %cst_96 : f32 to vector<8x32xf32>
    %cst_97 = arith.constant dense<0.000000e+00> : vector<8x96xf32>
    %518 = tpu.matmul %517, %499, %cst_97 {dimension_numbers = #tpu.dot_dimension_numbers<[1], [0], [0], [1], [0, 0, 1, 1], [], []>} : vector<8x32xf32>, vector<32x96xf32>, vector<8x96xf32> -> vector<8x96xf32>
    %519 = vector.extract_strided_slice %508 {offsets = [0, 0], sizes = [8, 32], strides = [1, 1]} : vector<64x32xf32> to vector<8x32xf32>
    %520 = vector.extract_strided_slice %518 {offsets = [0, 0], sizes = [8, 32], strides = [1, 1]} : vector<8x96xf32> to vector<8x32xf32>
    %521 = arith.addf %519, %520 : vector<8x32xf32>
    %522 = arith.negf %521 : vector<8x32xf32>
    %523 = math.exp %522 : vector<8x32xf32>
    %cst_98 = arith.constant 1.000000e+00 : f32
    %524 = vector.broadcast %cst_98 : f32 to vector<8x32xf32>
    %525 = arith.addf %524, %523 : vector<8x32xf32>
    %526 = arith.divf %524, %525 : vector<8x32xf32>
    %527 = vector.extract_strided_slice %512 {offsets = [0, 0], sizes = [8, 32], strides = [1, 1]} : vector<64x32xf32> to vector<8x32xf32>
    %528 = vector.extract_strided_slice %518 {offsets = [0, 32], sizes = [8, 32], strides = [1, 1]} : vector<8x96xf32> to vector<8x32xf32>
    %529 = arith.addf %527, %528 : vector<8x32xf32>
    %530 = arith.negf %529 : vector<8x32xf32>
    %531 = math.exp %530 : vector<8x32xf32>
    %cst_99 = arith.constant 1.000000e+00 : f32
    %532 = vector.broadcast %cst_99 : f32 to vector<8x32xf32>
    %533 = arith.addf %532, %531 : vector<8x32xf32>
    %534 = arith.divf %532, %533 : vector<8x32xf32>
    %535 = vector.extract_strided_slice %513 {offsets = [0, 0], sizes = [8, 32], strides = [1, 1]} : vector<64x32xf32> to vector<8x32xf32>
    %536 = vector.extract_strided_slice %518 {offsets = [0, 64], sizes = [8, 32], strides = [1, 1]} : vector<8x96xf32> to vector<8x32xf32>
    %537 = arith.addf %536, %516 : vector<8x32xf32>
    %538 = arith.mulf %526, %537 : vector<8x32xf32>
    %539 = arith.addf %535, %538 : vector<8x32xf32>
    %540 = math.tanh %539 : vector<8x32xf32>
    %cst_100 = arith.constant 1.000000e+00 : f32
    %541 = vector.broadcast %cst_100 : f32 to vector<8x32xf32>
    %542 = arith.subf %541, %534 : vector<8x32xf32>
    %543 = arith.mulf %542, %540 : vector<8x32xf32>
    %544 = arith.mulf %534, %517 : vector<8x32xf32>
    %545 = arith.addf %543, %544 : vector<8x32xf32>
    %cst_101 = arith.constant dense<0.000000e+00> : vector<8x96xf32>
    %546 = tpu.matmul %545, %499, %cst_101 {dimension_numbers = #tpu.dot_dimension_numbers<[1], [0], [0], [1], [0, 0, 1, 1], [], []>} : vector<8x32xf32>, vector<32x96xf32>, vector<8x96xf32> -> vector<8x96xf32>
    %547 = vector.extract_strided_slice %508 {offsets = [8, 0], sizes = [8, 32], strides = [1, 1]} : vector<64x32xf32> to vector<8x32xf32>
    %548 = vector.extract_strided_slice %546 {offsets = [0, 0], sizes = [8, 32], strides = [1, 1]} : vector<8x96xf32> to vector<8x32xf32>
    %549 = arith.addf %547, %548 : vector<8x32xf32>
    %550 = arith.negf %549 : vector<8x32xf32>
    %551 = math.exp %550 : vector<8x32xf32>
    %cst_102 = arith.constant 1.000000e+00 : f32
    %552 = vector.broadcast %cst_102 : f32 to vector<8x32xf32>
    %553 = arith.addf %552, %551 : vector<8x32xf32>
    %554 = arith.divf %552, %553 : vector<8x32xf32>
    %555 = vector.extract_strided_slice %512 {offsets = [8, 0], sizes = [8, 32], strides = [1, 1]} : vector<64x32xf32> to vector<8x32xf32>
    %556 = vector.extract_strided_slice %546 {offsets = [0, 32], sizes = [8, 32], strides = [1, 1]} : vector<8x96xf32> to vector<8x32xf32>
    %557 = arith.addf %555, %556 : vector<8x32xf32>
    %558 = arith.negf %557 : vector<8x32xf32>
    %559 = math.exp %558 : vector<8x32xf32>
    %cst_103 = arith.constant 1.000000e+00 : f32
    %560 = vector.broadcast %cst_103 : f32 to vector<8x32xf32>
    %561 = arith.addf %560, %559 : vector<8x32xf32>
    %562 = arith.divf %560, %561 : vector<8x32xf32>
    %563 = vector.extract_strided_slice %513 {offsets = [8, 0], sizes = [8, 32], strides = [1, 1]} : vector<64x32xf32> to vector<8x32xf32>
    %564 = vector.extract_strided_slice %546 {offsets = [0, 64], sizes = [8, 32], strides = [1, 1]} : vector<8x96xf32> to vector<8x32xf32>
    %565 = arith.addf %564, %516 : vector<8x32xf32>
    %566 = arith.mulf %554, %565 : vector<8x32xf32>
    %567 = arith.addf %563, %566 : vector<8x32xf32>
    %568 = math.tanh %567 : vector<8x32xf32>
    %cst_104 = arith.constant 1.000000e+00 : f32
    %569 = vector.broadcast %cst_104 : f32 to vector<8x32xf32>
    %570 = arith.subf %569, %562 : vector<8x32xf32>
    %571 = arith.mulf %570, %568 : vector<8x32xf32>
    %572 = arith.mulf %562, %545 : vector<8x32xf32>
    %573 = arith.addf %571, %572 : vector<8x32xf32>
    %cst_105 = arith.constant dense<0.000000e+00> : vector<8x96xf32>
    %574 = tpu.matmul %573, %499, %cst_105 {dimension_numbers = #tpu.dot_dimension_numbers<[1], [0], [0], [1], [0, 0, 1, 1], [], []>} : vector<8x32xf32>, vector<32x96xf32>, vector<8x96xf32> -> vector<8x96xf32>
    %575 = vector.extract_strided_slice %508 {offsets = [16, 0], sizes = [8, 32], strides = [1, 1]} : vector<64x32xf32> to vector<8x32xf32>
    %576 = vector.extract_strided_slice %574 {offsets = [0, 0], sizes = [8, 32], strides = [1, 1]} : vector<8x96xf32> to vector<8x32xf32>
    %577 = arith.addf %575, %576 : vector<8x32xf32>
    %578 = arith.negf %577 : vector<8x32xf32>
    %579 = math.exp %578 : vector<8x32xf32>
    %cst_106 = arith.constant 1.000000e+00 : f32
    %580 = vector.broadcast %cst_106 : f32 to vector<8x32xf32>
    %581 = arith.addf %580, %579 : vector<8x32xf32>
    %582 = arith.divf %580, %581 : vector<8x32xf32>
    %583 = vector.extract_strided_slice %512 {offsets = [16, 0], sizes = [8, 32], strides = [1, 1]} : vector<64x32xf32> to vector<8x32xf32>
    %584 = vector.extract_strided_slice %574 {offsets = [0, 32], sizes = [8, 32], strides = [1, 1]} : vector<8x96xf32> to vector<8x32xf32>
    %585 = arith.addf %583, %584 : vector<8x32xf32>
    %586 = arith.negf %585 : vector<8x32xf32>
    %587 = math.exp %586 : vector<8x32xf32>
    %cst_107 = arith.constant 1.000000e+00 : f32
    %588 = vector.broadcast %cst_107 : f32 to vector<8x32xf32>
    %589 = arith.addf %588, %587 : vector<8x32xf32>
    %590 = arith.divf %588, %589 : vector<8x32xf32>
    %591 = vector.extract_strided_slice %513 {offsets = [16, 0], sizes = [8, 32], strides = [1, 1]} : vector<64x32xf32> to vector<8x32xf32>
    %592 = vector.extract_strided_slice %574 {offsets = [0, 64], sizes = [8, 32], strides = [1, 1]} : vector<8x96xf32> to vector<8x32xf32>
    %593 = arith.addf %592, %516 : vector<8x32xf32>
    %594 = arith.mulf %582, %593 : vector<8x32xf32>
    %595 = arith.addf %591, %594 : vector<8x32xf32>
    %596 = math.tanh %595 : vector<8x32xf32>
    %cst_108 = arith.constant 1.000000e+00 : f32
    %597 = vector.broadcast %cst_108 : f32 to vector<8x32xf32>
    %598 = arith.subf %597, %590 : vector<8x32xf32>
    %599 = arith.mulf %598, %596 : vector<8x32xf32>
    %600 = arith.mulf %590, %573 : vector<8x32xf32>
    %601 = arith.addf %599, %600 : vector<8x32xf32>
    %cst_109 = arith.constant dense<0.000000e+00> : vector<8x96xf32>
    %602 = tpu.matmul %601, %499, %cst_109 {dimension_numbers = #tpu.dot_dimension_numbers<[1], [0], [0], [1], [0, 0, 1, 1], [], []>} : vector<8x32xf32>, vector<32x96xf32>, vector<8x96xf32> -> vector<8x96xf32>
    %603 = vector.extract_strided_slice %508 {offsets = [24, 0], sizes = [8, 32], strides = [1, 1]} : vector<64x32xf32> to vector<8x32xf32>
    %604 = vector.extract_strided_slice %602 {offsets = [0, 0], sizes = [8, 32], strides = [1, 1]} : vector<8x96xf32> to vector<8x32xf32>
    %605 = arith.addf %603, %604 : vector<8x32xf32>
    %606 = arith.negf %605 : vector<8x32xf32>
    %607 = math.exp %606 : vector<8x32xf32>
    %cst_110 = arith.constant 1.000000e+00 : f32
    %608 = vector.broadcast %cst_110 : f32 to vector<8x32xf32>
    %609 = arith.addf %608, %607 : vector<8x32xf32>
    %610 = arith.divf %608, %609 : vector<8x32xf32>
    %611 = vector.extract_strided_slice %512 {offsets = [24, 0], sizes = [8, 32], strides = [1, 1]} : vector<64x32xf32> to vector<8x32xf32>
    %612 = vector.extract_strided_slice %602 {offsets = [0, 32], sizes = [8, 32], strides = [1, 1]} : vector<8x96xf32> to vector<8x32xf32>
    %613 = arith.addf %611, %612 : vector<8x32xf32>
    %614 = arith.negf %613 : vector<8x32xf32>
    %615 = math.exp %614 : vector<8x32xf32>
    %cst_111 = arith.constant 1.000000e+00 : f32
    %616 = vector.broadcast %cst_111 : f32 to vector<8x32xf32>
    %617 = arith.addf %616, %615 : vector<8x32xf32>
    %618 = arith.divf %616, %617 : vector<8x32xf32>
    %619 = vector.extract_strided_slice %513 {offsets = [24, 0], sizes = [8, 32], strides = [1, 1]} : vector<64x32xf32> to vector<8x32xf32>
    %620 = vector.extract_strided_slice %602 {offsets = [0, 64], sizes = [8, 32], strides = [1, 1]} : vector<8x96xf32> to vector<8x32xf32>
    %621 = arith.addf %620, %516 : vector<8x32xf32>
    %622 = arith.mulf %610, %621 : vector<8x32xf32>
    %623 = arith.addf %619, %622 : vector<8x32xf32>
    %624 = math.tanh %623 : vector<8x32xf32>
    %cst_112 = arith.constant 1.000000e+00 : f32
    %625 = vector.broadcast %cst_112 : f32 to vector<8x32xf32>
    %626 = arith.subf %625, %618 : vector<8x32xf32>
    %627 = arith.mulf %626, %624 : vector<8x32xf32>
    %628 = arith.mulf %618, %601 : vector<8x32xf32>
    %629 = arith.addf %627, %628 : vector<8x32xf32>
    %cst_113 = arith.constant dense<0.000000e+00> : vector<8x96xf32>
    %630 = tpu.matmul %629, %499, %cst_113 {dimension_numbers = #tpu.dot_dimension_numbers<[1], [0], [0], [1], [0, 0, 1, 1], [], []>} : vector<8x32xf32>, vector<32x96xf32>, vector<8x96xf32> -> vector<8x96xf32>
    %631 = vector.extract_strided_slice %508 {offsets = [32, 0], sizes = [8, 32], strides = [1, 1]} : vector<64x32xf32> to vector<8x32xf32>
    %632 = vector.extract_strided_slice %630 {offsets = [0, 0], sizes = [8, 32], strides = [1, 1]} : vector<8x96xf32> to vector<8x32xf32>
    %633 = arith.addf %631, %632 : vector<8x32xf32>
    %634 = arith.negf %633 : vector<8x32xf32>
    %635 = math.exp %634 : vector<8x32xf32>
    %cst_114 = arith.constant 1.000000e+00 : f32
    %636 = vector.broadcast %cst_114 : f32 to vector<8x32xf32>
    %637 = arith.addf %636, %635 : vector<8x32xf32>
    %638 = arith.divf %636, %637 : vector<8x32xf32>
    %639 = vector.extract_strided_slice %512 {offsets = [32, 0], sizes = [8, 32], strides = [1, 1]} : vector<64x32xf32> to vector<8x32xf32>
    %640 = vector.extract_strided_slice %630 {offsets = [0, 32], sizes = [8, 32], strides = [1, 1]} : vector<8x96xf32> to vector<8x32xf32>
    %641 = arith.addf %639, %640 : vector<8x32xf32>
    %642 = arith.negf %641 : vector<8x32xf32>
    %643 = math.exp %642 : vector<8x32xf32>
    %cst_115 = arith.constant 1.000000e+00 : f32
    %644 = vector.broadcast %cst_115 : f32 to vector<8x32xf32>
    %645 = arith.addf %644, %643 : vector<8x32xf32>
    %646 = arith.divf %644, %645 : vector<8x32xf32>
    %647 = vector.extract_strided_slice %513 {offsets = [32, 0], sizes = [8, 32], strides = [1, 1]} : vector<64x32xf32> to vector<8x32xf32>
    %648 = vector.extract_strided_slice %630 {offsets = [0, 64], sizes = [8, 32], strides = [1, 1]} : vector<8x96xf32> to vector<8x32xf32>
    %649 = arith.addf %648, %516 : vector<8x32xf32>
    %650 = arith.mulf %638, %649 : vector<8x32xf32>
    %651 = arith.addf %647, %650 : vector<8x32xf32>
    %652 = math.tanh %651 : vector<8x32xf32>
    %cst_116 = arith.constant 1.000000e+00 : f32
    %653 = vector.broadcast %cst_116 : f32 to vector<8x32xf32>
    %654 = arith.subf %653, %646 : vector<8x32xf32>
    %655 = arith.mulf %654, %652 : vector<8x32xf32>
    %656 = arith.mulf %646, %629 : vector<8x32xf32>
    %657 = arith.addf %655, %656 : vector<8x32xf32>
    %cst_117 = arith.constant dense<0.000000e+00> : vector<8x96xf32>
    %658 = tpu.matmul %657, %499, %cst_117 {dimension_numbers = #tpu.dot_dimension_numbers<[1], [0], [0], [1], [0, 0, 1, 1], [], []>} : vector<8x32xf32>, vector<32x96xf32>, vector<8x96xf32> -> vector<8x96xf32>
    %659 = vector.extract_strided_slice %508 {offsets = [40, 0], sizes = [8, 32], strides = [1, 1]} : vector<64x32xf32> to vector<8x32xf32>
    %660 = vector.extract_strided_slice %658 {offsets = [0, 0], sizes = [8, 32], strides = [1, 1]} : vector<8x96xf32> to vector<8x32xf32>
    %661 = arith.addf %659, %660 : vector<8x32xf32>
    %662 = arith.negf %661 : vector<8x32xf32>
    %663 = math.exp %662 : vector<8x32xf32>
    %cst_118 = arith.constant 1.000000e+00 : f32
    %664 = vector.broadcast %cst_118 : f32 to vector<8x32xf32>
    %665 = arith.addf %664, %663 : vector<8x32xf32>
    %666 = arith.divf %664, %665 : vector<8x32xf32>
    %667 = vector.extract_strided_slice %512 {offsets = [40, 0], sizes = [8, 32], strides = [1, 1]} : vector<64x32xf32> to vector<8x32xf32>
    %668 = vector.extract_strided_slice %658 {offsets = [0, 32], sizes = [8, 32], strides = [1, 1]} : vector<8x96xf32> to vector<8x32xf32>
    %669 = arith.addf %667, %668 : vector<8x32xf32>
    %670 = arith.negf %669 : vector<8x32xf32>
    %671 = math.exp %670 : vector<8x32xf32>
    %cst_119 = arith.constant 1.000000e+00 : f32
    %672 = vector.broadcast %cst_119 : f32 to vector<8x32xf32>
    %673 = arith.addf %672, %671 : vector<8x32xf32>
    %674 = arith.divf %672, %673 : vector<8x32xf32>
    %675 = vector.extract_strided_slice %513 {offsets = [40, 0], sizes = [8, 32], strides = [1, 1]} : vector<64x32xf32> to vector<8x32xf32>
    %676 = vector.extract_strided_slice %658 {offsets = [0, 64], sizes = [8, 32], strides = [1, 1]} : vector<8x96xf32> to vector<8x32xf32>
    %677 = arith.addf %676, %516 : vector<8x32xf32>
    %678 = arith.mulf %666, %677 : vector<8x32xf32>
    %679 = arith.addf %675, %678 : vector<8x32xf32>
    %680 = math.tanh %679 : vector<8x32xf32>
    %cst_120 = arith.constant 1.000000e+00 : f32
    %681 = vector.broadcast %cst_120 : f32 to vector<8x32xf32>
    %682 = arith.subf %681, %674 : vector<8x32xf32>
    %683 = arith.mulf %682, %680 : vector<8x32xf32>
    %684 = arith.mulf %674, %657 : vector<8x32xf32>
    %685 = arith.addf %683, %684 : vector<8x32xf32>
    %cst_121 = arith.constant dense<0.000000e+00> : vector<8x96xf32>
    %686 = tpu.matmul %685, %499, %cst_121 {dimension_numbers = #tpu.dot_dimension_numbers<[1], [0], [0], [1], [0, 0, 1, 1], [], []>} : vector<8x32xf32>, vector<32x96xf32>, vector<8x96xf32> -> vector<8x96xf32>
    %687 = vector.extract_strided_slice %508 {offsets = [48, 0], sizes = [8, 32], strides = [1, 1]} : vector<64x32xf32> to vector<8x32xf32>
    %688 = vector.extract_strided_slice %686 {offsets = [0, 0], sizes = [8, 32], strides = [1, 1]} : vector<8x96xf32> to vector<8x32xf32>
    %689 = arith.addf %687, %688 : vector<8x32xf32>
    %690 = arith.negf %689 : vector<8x32xf32>
    %691 = math.exp %690 : vector<8x32xf32>
    %cst_122 = arith.constant 1.000000e+00 : f32
    %692 = vector.broadcast %cst_122 : f32 to vector<8x32xf32>
    %693 = arith.addf %692, %691 : vector<8x32xf32>
    %694 = arith.divf %692, %693 : vector<8x32xf32>
    %695 = vector.extract_strided_slice %512 {offsets = [48, 0], sizes = [8, 32], strides = [1, 1]} : vector<64x32xf32> to vector<8x32xf32>
    %696 = vector.extract_strided_slice %686 {offsets = [0, 32], sizes = [8, 32], strides = [1, 1]} : vector<8x96xf32> to vector<8x32xf32>
    %697 = arith.addf %695, %696 : vector<8x32xf32>
    %698 = arith.negf %697 : vector<8x32xf32>
    %699 = math.exp %698 : vector<8x32xf32>
    %cst_123 = arith.constant 1.000000e+00 : f32
    %700 = vector.broadcast %cst_123 : f32 to vector<8x32xf32>
    %701 = arith.addf %700, %699 : vector<8x32xf32>
    %702 = arith.divf %700, %701 : vector<8x32xf32>
    %703 = vector.extract_strided_slice %513 {offsets = [48, 0], sizes = [8, 32], strides = [1, 1]} : vector<64x32xf32> to vector<8x32xf32>
    %704 = vector.extract_strided_slice %686 {offsets = [0, 64], sizes = [8, 32], strides = [1, 1]} : vector<8x96xf32> to vector<8x32xf32>
    %705 = arith.addf %704, %516 : vector<8x32xf32>
    %706 = arith.mulf %694, %705 : vector<8x32xf32>
    %707 = arith.addf %703, %706 : vector<8x32xf32>
    %708 = math.tanh %707 : vector<8x32xf32>
    %cst_124 = arith.constant 1.000000e+00 : f32
    %709 = vector.broadcast %cst_124 : f32 to vector<8x32xf32>
    %710 = arith.subf %709, %702 : vector<8x32xf32>
    %711 = arith.mulf %710, %708 : vector<8x32xf32>
    %712 = arith.mulf %702, %685 : vector<8x32xf32>
    %713 = arith.addf %711, %712 : vector<8x32xf32>
    %cst_125 = arith.constant dense<0.000000e+00> : vector<8x96xf32>
    %714 = tpu.matmul %713, %499, %cst_125 {dimension_numbers = #tpu.dot_dimension_numbers<[1], [0], [0], [1], [0, 0, 1, 1], [], []>} : vector<8x32xf32>, vector<32x96xf32>, vector<8x96xf32> -> vector<8x96xf32>
    %715 = vector.extract_strided_slice %508 {offsets = [56, 0], sizes = [8, 32], strides = [1, 1]} : vector<64x32xf32> to vector<8x32xf32>
    %716 = vector.extract_strided_slice %714 {offsets = [0, 0], sizes = [8, 32], strides = [1, 1]} : vector<8x96xf32> to vector<8x32xf32>
    %717 = arith.addf %715, %716 : vector<8x32xf32>
    %718 = arith.negf %717 : vector<8x32xf32>
    %719 = math.exp %718 : vector<8x32xf32>
    %cst_126 = arith.constant 1.000000e+00 : f32
    %720 = vector.broadcast %cst_126 : f32 to vector<8x32xf32>
    %721 = arith.addf %720, %719 : vector<8x32xf32>
    %722 = arith.divf %720, %721 : vector<8x32xf32>
    %723 = vector.extract_strided_slice %512 {offsets = [56, 0], sizes = [8, 32], strides = [1, 1]} : vector<64x32xf32> to vector<8x32xf32>
    %724 = vector.extract_strided_slice %714 {offsets = [0, 32], sizes = [8, 32], strides = [1, 1]} : vector<8x96xf32> to vector<8x32xf32>
    %725 = arith.addf %723, %724 : vector<8x32xf32>
    %726 = arith.negf %725 : vector<8x32xf32>
    %727 = math.exp %726 : vector<8x32xf32>
    %cst_127 = arith.constant 1.000000e+00 : f32
    %728 = vector.broadcast %cst_127 : f32 to vector<8x32xf32>
    %729 = arith.addf %728, %727 : vector<8x32xf32>
    %730 = arith.divf %728, %729 : vector<8x32xf32>
    %731 = vector.extract_strided_slice %513 {offsets = [56, 0], sizes = [8, 32], strides = [1, 1]} : vector<64x32xf32> to vector<8x32xf32>
    %732 = vector.extract_strided_slice %714 {offsets = [0, 64], sizes = [8, 32], strides = [1, 1]} : vector<8x96xf32> to vector<8x32xf32>
    %733 = arith.addf %732, %516 : vector<8x32xf32>
    %734 = arith.mulf %722, %733 : vector<8x32xf32>
    %735 = arith.addf %731, %734 : vector<8x32xf32>
    %736 = math.tanh %735 : vector<8x32xf32>
    %cst_128 = arith.constant 1.000000e+00 : f32
    %737 = vector.broadcast %cst_128 : f32 to vector<8x32xf32>
    %738 = arith.subf %737, %730 : vector<8x32xf32>
    %739 = arith.mulf %738, %736 : vector<8x32xf32>
    %740 = arith.mulf %730, %713 : vector<8x32xf32>
    %741 = arith.addf %739, %740 : vector<8x32xf32>
    %742 = tpu.concatenate %545, %573, %601, %629, %657, %685, %713, %741 in 0 : vector<8x32xf32>, vector<8x32xf32>, vector<8x32xf32>, vector<8x32xf32>, vector<8x32xf32>, vector<8x32xf32>, vector<8x32xf32>, vector<8x32xf32> -> vector<64x32xf32>
    %c0_129 = arith.constant 0 : index
    %c0_130 = arith.constant 0 : index
    %743 = vector.load %arg14[%c0_129, %c0_130] : memref<32x96xf32, #tpu.memory_space<vmem>>, vector<32x96xf32>
    %c0_131 = arith.constant 0 : index
    %c0_132 = arith.constant 0 : index
    %744 = vector.load %arg15[%c0_131, %c0_132] : memref<32x96xf32, #tpu.memory_space<vmem>>, vector<32x96xf32>
    %c0_133 = arith.constant 0 : index
    %c0_134 = arith.constant 0 : index
    %745 = vector.load %arg16[%c0_133, %c0_134] : memref<1x96xf32, #tpu.memory_space<vmem>>, vector<1x96xf32>
    %c0_135 = arith.constant 0 : index
    %c0_136 = arith.constant 0 : index
    %746 = vector.load %arg17[%c0_135, %c0_136] : memref<1x96xf32, #tpu.memory_space<vmem>>, vector<1x96xf32>
    %cst_137 = arith.constant dense<0.000000e+00> : vector<64x96xf32>
    %747 = tpu.matmul %742, %743, %cst_137 {dimension_numbers = #tpu.dot_dimension_numbers<[1], [0], [0], [1], [0, 0, 1, 1], [], []>} : vector<64x32xf32>, vector<32x96xf32>, vector<64x96xf32> -> vector<64x96xf32>
    %748 = vector.broadcast %745 : vector<1x96xf32> to vector<64x96xf32>
    %749 = arith.addf %747, %748 : vector<64x96xf32>
    %750 = vector.extract_strided_slice %749 {offsets = [0, 0], sizes = [64, 32], strides = [1, 1]} : vector<64x96xf32> to vector<64x32xf32>
    %751 = vector.extract_strided_slice %746 {offsets = [0, 0], sizes = [1, 32], strides = [1, 1]} : vector<1x96xf32> to vector<1x32xf32>
    %752 = vector.broadcast %751 : vector<1x32xf32> to vector<64x32xf32>
    %753 = arith.addf %750, %752 : vector<64x32xf32>
    %754 = vector.extract_strided_slice %749 {offsets = [0, 32], sizes = [64, 32], strides = [1, 1]} : vector<64x96xf32> to vector<64x32xf32>
    %755 = vector.extract_strided_slice %746 {offsets = [0, 32], sizes = [1, 32], strides = [1, 1]} : vector<1x96xf32> to vector<1x32xf32>
    %756 = vector.broadcast %755 : vector<1x32xf32> to vector<64x32xf32>
    %757 = arith.addf %754, %756 : vector<64x32xf32>
    %758 = vector.extract_strided_slice %749 {offsets = [0, 64], sizes = [64, 32], strides = [1, 1]} : vector<64x96xf32> to vector<64x32xf32>
    %759 = vector.extract_strided_slice %746 {offsets = [0, 64], sizes = [1, 32], strides = [1, 1]} : vector<1x96xf32> to vector<1x32xf32>
    %760 = vector.shape_cast %759 : vector<1x32xf32> to vector<1x32xf32>
    %761 = vector.broadcast %760 : vector<1x32xf32> to vector<8x32xf32>
    %cst_138 = arith.constant 0.000000e+00 : f32
    %762 = vector.broadcast %cst_138 : f32 to vector<8x32xf32>
    %cst_139 = arith.constant dense<0.000000e+00> : vector<8x96xf32>
    %763 = tpu.matmul %762, %744, %cst_139 {dimension_numbers = #tpu.dot_dimension_numbers<[1], [0], [0], [1], [0, 0, 1, 1], [], []>} : vector<8x32xf32>, vector<32x96xf32>, vector<8x96xf32> -> vector<8x96xf32>
    %764 = vector.extract_strided_slice %753 {offsets = [0, 0], sizes = [8, 32], strides = [1, 1]} : vector<64x32xf32> to vector<8x32xf32>
    %765 = vector.extract_strided_slice %763 {offsets = [0, 0], sizes = [8, 32], strides = [1, 1]} : vector<8x96xf32> to vector<8x32xf32>
    %766 = arith.addf %764, %765 : vector<8x32xf32>
    %767 = arith.negf %766 : vector<8x32xf32>
    %768 = math.exp %767 : vector<8x32xf32>
    %cst_140 = arith.constant 1.000000e+00 : f32
    %769 = vector.broadcast %cst_140 : f32 to vector<8x32xf32>
    %770 = arith.addf %769, %768 : vector<8x32xf32>
    %771 = arith.divf %769, %770 : vector<8x32xf32>
    %772 = vector.extract_strided_slice %757 {offsets = [0, 0], sizes = [8, 32], strides = [1, 1]} : vector<64x32xf32> to vector<8x32xf32>
    %773 = vector.extract_strided_slice %763 {offsets = [0, 32], sizes = [8, 32], strides = [1, 1]} : vector<8x96xf32> to vector<8x32xf32>
    %774 = arith.addf %772, %773 : vector<8x32xf32>
    %775 = arith.negf %774 : vector<8x32xf32>
    %776 = math.exp %775 : vector<8x32xf32>
    %cst_141 = arith.constant 1.000000e+00 : f32
    %777 = vector.broadcast %cst_141 : f32 to vector<8x32xf32>
    %778 = arith.addf %777, %776 : vector<8x32xf32>
    %779 = arith.divf %777, %778 : vector<8x32xf32>
    %780 = vector.extract_strided_slice %758 {offsets = [0, 0], sizes = [8, 32], strides = [1, 1]} : vector<64x32xf32> to vector<8x32xf32>
    %781 = vector.extract_strided_slice %763 {offsets = [0, 64], sizes = [8, 32], strides = [1, 1]} : vector<8x96xf32> to vector<8x32xf32>
    %782 = arith.addf %781, %761 : vector<8x32xf32>
    %783 = arith.mulf %771, %782 : vector<8x32xf32>
    %784 = arith.addf %780, %783 : vector<8x32xf32>
    %785 = math.tanh %784 : vector<8x32xf32>
    %cst_142 = arith.constant 1.000000e+00 : f32
    %786 = vector.broadcast %cst_142 : f32 to vector<8x32xf32>
    %787 = arith.subf %786, %779 : vector<8x32xf32>
    %788 = arith.mulf %787, %785 : vector<8x32xf32>
    %789 = arith.mulf %779, %762 : vector<8x32xf32>
    %790 = arith.addf %788, %789 : vector<8x32xf32>
    %cst_143 = arith.constant dense<0.000000e+00> : vector<8x96xf32>
    %791 = tpu.matmul %790, %744, %cst_143 {dimension_numbers = #tpu.dot_dimension_numbers<[1], [0], [0], [1], [0, 0, 1, 1], [], []>} : vector<8x32xf32>, vector<32x96xf32>, vector<8x96xf32> -> vector<8x96xf32>
    %792 = vector.extract_strided_slice %753 {offsets = [8, 0], sizes = [8, 32], strides = [1, 1]} : vector<64x32xf32> to vector<8x32xf32>
    %793 = vector.extract_strided_slice %791 {offsets = [0, 0], sizes = [8, 32], strides = [1, 1]} : vector<8x96xf32> to vector<8x32xf32>
    %794 = arith.addf %792, %793 : vector<8x32xf32>
    %795 = arith.negf %794 : vector<8x32xf32>
    %796 = math.exp %795 : vector<8x32xf32>
    %cst_144 = arith.constant 1.000000e+00 : f32
    %797 = vector.broadcast %cst_144 : f32 to vector<8x32xf32>
    %798 = arith.addf %797, %796 : vector<8x32xf32>
    %799 = arith.divf %797, %798 : vector<8x32xf32>
    %800 = vector.extract_strided_slice %757 {offsets = [8, 0], sizes = [8, 32], strides = [1, 1]} : vector<64x32xf32> to vector<8x32xf32>
    %801 = vector.extract_strided_slice %791 {offsets = [0, 32], sizes = [8, 32], strides = [1, 1]} : vector<8x96xf32> to vector<8x32xf32>
    %802 = arith.addf %800, %801 : vector<8x32xf32>
    %803 = arith.negf %802 : vector<8x32xf32>
    %804 = math.exp %803 : vector<8x32xf32>
    %cst_145 = arith.constant 1.000000e+00 : f32
    %805 = vector.broadcast %cst_145 : f32 to vector<8x32xf32>
    %806 = arith.addf %805, %804 : vector<8x32xf32>
    %807 = arith.divf %805, %806 : vector<8x32xf32>
    %808 = vector.extract_strided_slice %758 {offsets = [8, 0], sizes = [8, 32], strides = [1, 1]} : vector<64x32xf32> to vector<8x32xf32>
    %809 = vector.extract_strided_slice %791 {offsets = [0, 64], sizes = [8, 32], strides = [1, 1]} : vector<8x96xf32> to vector<8x32xf32>
    %810 = arith.addf %809, %761 : vector<8x32xf32>
    %811 = arith.mulf %799, %810 : vector<8x32xf32>
    %812 = arith.addf %808, %811 : vector<8x32xf32>
    %813 = math.tanh %812 : vector<8x32xf32>
    %cst_146 = arith.constant 1.000000e+00 : f32
    %814 = vector.broadcast %cst_146 : f32 to vector<8x32xf32>
    %815 = arith.subf %814, %807 : vector<8x32xf32>
    %816 = arith.mulf %815, %813 : vector<8x32xf32>
    %817 = arith.mulf %807, %790 : vector<8x32xf32>
    %818 = arith.addf %816, %817 : vector<8x32xf32>
    %cst_147 = arith.constant dense<0.000000e+00> : vector<8x96xf32>
    %819 = tpu.matmul %818, %744, %cst_147 {dimension_numbers = #tpu.dot_dimension_numbers<[1], [0], [0], [1], [0, 0, 1, 1], [], []>} : vector<8x32xf32>, vector<32x96xf32>, vector<8x96xf32> -> vector<8x96xf32>
    %820 = vector.extract_strided_slice %753 {offsets = [16, 0], sizes = [8, 32], strides = [1, 1]} : vector<64x32xf32> to vector<8x32xf32>
    %821 = vector.extract_strided_slice %819 {offsets = [0, 0], sizes = [8, 32], strides = [1, 1]} : vector<8x96xf32> to vector<8x32xf32>
    %822 = arith.addf %820, %821 : vector<8x32xf32>
    %823 = arith.negf %822 : vector<8x32xf32>
    %824 = math.exp %823 : vector<8x32xf32>
    %cst_148 = arith.constant 1.000000e+00 : f32
    %825 = vector.broadcast %cst_148 : f32 to vector<8x32xf32>
    %826 = arith.addf %825, %824 : vector<8x32xf32>
    %827 = arith.divf %825, %826 : vector<8x32xf32>
    %828 = vector.extract_strided_slice %757 {offsets = [16, 0], sizes = [8, 32], strides = [1, 1]} : vector<64x32xf32> to vector<8x32xf32>
    %829 = vector.extract_strided_slice %819 {offsets = [0, 32], sizes = [8, 32], strides = [1, 1]} : vector<8x96xf32> to vector<8x32xf32>
    %830 = arith.addf %828, %829 : vector<8x32xf32>
    %831 = arith.negf %830 : vector<8x32xf32>
    %832 = math.exp %831 : vector<8x32xf32>
    %cst_149 = arith.constant 1.000000e+00 : f32
    %833 = vector.broadcast %cst_149 : f32 to vector<8x32xf32>
    %834 = arith.addf %833, %832 : vector<8x32xf32>
    %835 = arith.divf %833, %834 : vector<8x32xf32>
    %836 = vector.extract_strided_slice %758 {offsets = [16, 0], sizes = [8, 32], strides = [1, 1]} : vector<64x32xf32> to vector<8x32xf32>
    %837 = vector.extract_strided_slice %819 {offsets = [0, 64], sizes = [8, 32], strides = [1, 1]} : vector<8x96xf32> to vector<8x32xf32>
    %838 = arith.addf %837, %761 : vector<8x32xf32>
    %839 = arith.mulf %827, %838 : vector<8x32xf32>
    %840 = arith.addf %836, %839 : vector<8x32xf32>
    %841 = math.tanh %840 : vector<8x32xf32>
    %cst_150 = arith.constant 1.000000e+00 : f32
    %842 = vector.broadcast %cst_150 : f32 to vector<8x32xf32>
    %843 = arith.subf %842, %835 : vector<8x32xf32>
    %844 = arith.mulf %843, %841 : vector<8x32xf32>
    %845 = arith.mulf %835, %818 : vector<8x32xf32>
    %846 = arith.addf %844, %845 : vector<8x32xf32>
    %cst_151 = arith.constant dense<0.000000e+00> : vector<8x96xf32>
    %847 = tpu.matmul %846, %744, %cst_151 {dimension_numbers = #tpu.dot_dimension_numbers<[1], [0], [0], [1], [0, 0, 1, 1], [], []>} : vector<8x32xf32>, vector<32x96xf32>, vector<8x96xf32> -> vector<8x96xf32>
    %848 = vector.extract_strided_slice %753 {offsets = [24, 0], sizes = [8, 32], strides = [1, 1]} : vector<64x32xf32> to vector<8x32xf32>
    %849 = vector.extract_strided_slice %847 {offsets = [0, 0], sizes = [8, 32], strides = [1, 1]} : vector<8x96xf32> to vector<8x32xf32>
    %850 = arith.addf %848, %849 : vector<8x32xf32>
    %851 = arith.negf %850 : vector<8x32xf32>
    %852 = math.exp %851 : vector<8x32xf32>
    %cst_152 = arith.constant 1.000000e+00 : f32
    %853 = vector.broadcast %cst_152 : f32 to vector<8x32xf32>
    %854 = arith.addf %853, %852 : vector<8x32xf32>
    %855 = arith.divf %853, %854 : vector<8x32xf32>
    %856 = vector.extract_strided_slice %757 {offsets = [24, 0], sizes = [8, 32], strides = [1, 1]} : vector<64x32xf32> to vector<8x32xf32>
    %857 = vector.extract_strided_slice %847 {offsets = [0, 32], sizes = [8, 32], strides = [1, 1]} : vector<8x96xf32> to vector<8x32xf32>
    %858 = arith.addf %856, %857 : vector<8x32xf32>
    %859 = arith.negf %858 : vector<8x32xf32>
    %860 = math.exp %859 : vector<8x32xf32>
    %cst_153 = arith.constant 1.000000e+00 : f32
    %861 = vector.broadcast %cst_153 : f32 to vector<8x32xf32>
    %862 = arith.addf %861, %860 : vector<8x32xf32>
    %863 = arith.divf %861, %862 : vector<8x32xf32>
    %864 = vector.extract_strided_slice %758 {offsets = [24, 0], sizes = [8, 32], strides = [1, 1]} : vector<64x32xf32> to vector<8x32xf32>
    %865 = vector.extract_strided_slice %847 {offsets = [0, 64], sizes = [8, 32], strides = [1, 1]} : vector<8x96xf32> to vector<8x32xf32>
    %866 = arith.addf %865, %761 : vector<8x32xf32>
    %867 = arith.mulf %855, %866 : vector<8x32xf32>
    %868 = arith.addf %864, %867 : vector<8x32xf32>
    %869 = math.tanh %868 : vector<8x32xf32>
    %cst_154 = arith.constant 1.000000e+00 : f32
    %870 = vector.broadcast %cst_154 : f32 to vector<8x32xf32>
    %871 = arith.subf %870, %863 : vector<8x32xf32>
    %872 = arith.mulf %871, %869 : vector<8x32xf32>
    %873 = arith.mulf %863, %846 : vector<8x32xf32>
    %874 = arith.addf %872, %873 : vector<8x32xf32>
    %cst_155 = arith.constant dense<0.000000e+00> : vector<8x96xf32>
    %875 = tpu.matmul %874, %744, %cst_155 {dimension_numbers = #tpu.dot_dimension_numbers<[1], [0], [0], [1], [0, 0, 1, 1], [], []>} : vector<8x32xf32>, vector<32x96xf32>, vector<8x96xf32> -> vector<8x96xf32>
    %876 = vector.extract_strided_slice %753 {offsets = [32, 0], sizes = [8, 32], strides = [1, 1]} : vector<64x32xf32> to vector<8x32xf32>
    %877 = vector.extract_strided_slice %875 {offsets = [0, 0], sizes = [8, 32], strides = [1, 1]} : vector<8x96xf32> to vector<8x32xf32>
    %878 = arith.addf %876, %877 : vector<8x32xf32>
    %879 = arith.negf %878 : vector<8x32xf32>
    %880 = math.exp %879 : vector<8x32xf32>
    %cst_156 = arith.constant 1.000000e+00 : f32
    %881 = vector.broadcast %cst_156 : f32 to vector<8x32xf32>
    %882 = arith.addf %881, %880 : vector<8x32xf32>
    %883 = arith.divf %881, %882 : vector<8x32xf32>
    %884 = vector.extract_strided_slice %757 {offsets = [32, 0], sizes = [8, 32], strides = [1, 1]} : vector<64x32xf32> to vector<8x32xf32>
    %885 = vector.extract_strided_slice %875 {offsets = [0, 32], sizes = [8, 32], strides = [1, 1]} : vector<8x96xf32> to vector<8x32xf32>
    %886 = arith.addf %884, %885 : vector<8x32xf32>
    %887 = arith.negf %886 : vector<8x32xf32>
    %888 = math.exp %887 : vector<8x32xf32>
    %cst_157 = arith.constant 1.000000e+00 : f32
    %889 = vector.broadcast %cst_157 : f32 to vector<8x32xf32>
    %890 = arith.addf %889, %888 : vector<8x32xf32>
    %891 = arith.divf %889, %890 : vector<8x32xf32>
    %892 = vector.extract_strided_slice %758 {offsets = [32, 0], sizes = [8, 32], strides = [1, 1]} : vector<64x32xf32> to vector<8x32xf32>
    %893 = vector.extract_strided_slice %875 {offsets = [0, 64], sizes = [8, 32], strides = [1, 1]} : vector<8x96xf32> to vector<8x32xf32>
    %894 = arith.addf %893, %761 : vector<8x32xf32>
    %895 = arith.mulf %883, %894 : vector<8x32xf32>
    %896 = arith.addf %892, %895 : vector<8x32xf32>
    %897 = math.tanh %896 : vector<8x32xf32>
    %cst_158 = arith.constant 1.000000e+00 : f32
    %898 = vector.broadcast %cst_158 : f32 to vector<8x32xf32>
    %899 = arith.subf %898, %891 : vector<8x32xf32>
    %900 = arith.mulf %899, %897 : vector<8x32xf32>
    %901 = arith.mulf %891, %874 : vector<8x32xf32>
    %902 = arith.addf %900, %901 : vector<8x32xf32>
    %cst_159 = arith.constant dense<0.000000e+00> : vector<8x96xf32>
    %903 = tpu.matmul %902, %744, %cst_159 {dimension_numbers = #tpu.dot_dimension_numbers<[1], [0], [0], [1], [0, 0, 1, 1], [], []>} : vector<8x32xf32>, vector<32x96xf32>, vector<8x96xf32> -> vector<8x96xf32>
    %904 = vector.extract_strided_slice %753 {offsets = [40, 0], sizes = [8, 32], strides = [1, 1]} : vector<64x32xf32> to vector<8x32xf32>
    %905 = vector.extract_strided_slice %903 {offsets = [0, 0], sizes = [8, 32], strides = [1, 1]} : vector<8x96xf32> to vector<8x32xf32>
    %906 = arith.addf %904, %905 : vector<8x32xf32>
    %907 = arith.negf %906 : vector<8x32xf32>
    %908 = math.exp %907 : vector<8x32xf32>
    %cst_160 = arith.constant 1.000000e+00 : f32
    %909 = vector.broadcast %cst_160 : f32 to vector<8x32xf32>
    %910 = arith.addf %909, %908 : vector<8x32xf32>
    %911 = arith.divf %909, %910 : vector<8x32xf32>
    %912 = vector.extract_strided_slice %757 {offsets = [40, 0], sizes = [8, 32], strides = [1, 1]} : vector<64x32xf32> to vector<8x32xf32>
    %913 = vector.extract_strided_slice %903 {offsets = [0, 32], sizes = [8, 32], strides = [1, 1]} : vector<8x96xf32> to vector<8x32xf32>
    %914 = arith.addf %912, %913 : vector<8x32xf32>
    %915 = arith.negf %914 : vector<8x32xf32>
    %916 = math.exp %915 : vector<8x32xf32>
    %cst_161 = arith.constant 1.000000e+00 : f32
    %917 = vector.broadcast %cst_161 : f32 to vector<8x32xf32>
    %918 = arith.addf %917, %916 : vector<8x32xf32>
    %919 = arith.divf %917, %918 : vector<8x32xf32>
    %920 = vector.extract_strided_slice %758 {offsets = [40, 0], sizes = [8, 32], strides = [1, 1]} : vector<64x32xf32> to vector<8x32xf32>
    %921 = vector.extract_strided_slice %903 {offsets = [0, 64], sizes = [8, 32], strides = [1, 1]} : vector<8x96xf32> to vector<8x32xf32>
    %922 = arith.addf %921, %761 : vector<8x32xf32>
    %923 = arith.mulf %911, %922 : vector<8x32xf32>
    %924 = arith.addf %920, %923 : vector<8x32xf32>
    %925 = math.tanh %924 : vector<8x32xf32>
    %cst_162 = arith.constant 1.000000e+00 : f32
    %926 = vector.broadcast %cst_162 : f32 to vector<8x32xf32>
    %927 = arith.subf %926, %919 : vector<8x32xf32>
    %928 = arith.mulf %927, %925 : vector<8x32xf32>
    %929 = arith.mulf %919, %902 : vector<8x32xf32>
    %930 = arith.addf %928, %929 : vector<8x32xf32>
    %cst_163 = arith.constant dense<0.000000e+00> : vector<8x96xf32>
    %931 = tpu.matmul %930, %744, %cst_163 {dimension_numbers = #tpu.dot_dimension_numbers<[1], [0], [0], [1], [0, 0, 1, 1], [], []>} : vector<8x32xf32>, vector<32x96xf32>, vector<8x96xf32> -> vector<8x96xf32>
    %932 = vector.extract_strided_slice %753 {offsets = [48, 0], sizes = [8, 32], strides = [1, 1]} : vector<64x32xf32> to vector<8x32xf32>
    %933 = vector.extract_strided_slice %931 {offsets = [0, 0], sizes = [8, 32], strides = [1, 1]} : vector<8x96xf32> to vector<8x32xf32>
    %934 = arith.addf %932, %933 : vector<8x32xf32>
    %935 = arith.negf %934 : vector<8x32xf32>
    %936 = math.exp %935 : vector<8x32xf32>
    %cst_164 = arith.constant 1.000000e+00 : f32
    %937 = vector.broadcast %cst_164 : f32 to vector<8x32xf32>
    %938 = arith.addf %937, %936 : vector<8x32xf32>
    %939 = arith.divf %937, %938 : vector<8x32xf32>
    %940 = vector.extract_strided_slice %757 {offsets = [48, 0], sizes = [8, 32], strides = [1, 1]} : vector<64x32xf32> to vector<8x32xf32>
    %941 = vector.extract_strided_slice %931 {offsets = [0, 32], sizes = [8, 32], strides = [1, 1]} : vector<8x96xf32> to vector<8x32xf32>
    %942 = arith.addf %940, %941 : vector<8x32xf32>
    %943 = arith.negf %942 : vector<8x32xf32>
    %944 = math.exp %943 : vector<8x32xf32>
    %cst_165 = arith.constant 1.000000e+00 : f32
    %945 = vector.broadcast %cst_165 : f32 to vector<8x32xf32>
    %946 = arith.addf %945, %944 : vector<8x32xf32>
    %947 = arith.divf %945, %946 : vector<8x32xf32>
    %948 = vector.extract_strided_slice %758 {offsets = [48, 0], sizes = [8, 32], strides = [1, 1]} : vector<64x32xf32> to vector<8x32xf32>
    %949 = vector.extract_strided_slice %931 {offsets = [0, 64], sizes = [8, 32], strides = [1, 1]} : vector<8x96xf32> to vector<8x32xf32>
    %950 = arith.addf %949, %761 : vector<8x32xf32>
    %951 = arith.mulf %939, %950 : vector<8x32xf32>
    %952 = arith.addf %948, %951 : vector<8x32xf32>
    %953 = math.tanh %952 : vector<8x32xf32>
    %cst_166 = arith.constant 1.000000e+00 : f32
    %954 = vector.broadcast %cst_166 : f32 to vector<8x32xf32>
    %955 = arith.subf %954, %947 : vector<8x32xf32>
    %956 = arith.mulf %955, %953 : vector<8x32xf32>
    %957 = arith.mulf %947, %930 : vector<8x32xf32>
    %958 = arith.addf %956, %957 : vector<8x32xf32>
    %cst_167 = arith.constant dense<0.000000e+00> : vector<8x96xf32>
    %959 = tpu.matmul %958, %744, %cst_167 {dimension_numbers = #tpu.dot_dimension_numbers<[1], [0], [0], [1], [0, 0, 1, 1], [], []>} : vector<8x32xf32>, vector<32x96xf32>, vector<8x96xf32> -> vector<8x96xf32>
    %960 = vector.extract_strided_slice %753 {offsets = [56, 0], sizes = [8, 32], strides = [1, 1]} : vector<64x32xf32> to vector<8x32xf32>
    %961 = vector.extract_strided_slice %959 {offsets = [0, 0], sizes = [8, 32], strides = [1, 1]} : vector<8x96xf32> to vector<8x32xf32>
    %962 = arith.addf %960, %961 : vector<8x32xf32>
    %963 = arith.negf %962 : vector<8x32xf32>
    %964 = math.exp %963 : vector<8x32xf32>
    %cst_168 = arith.constant 1.000000e+00 : f32
    %965 = vector.broadcast %cst_168 : f32 to vector<8x32xf32>
    %966 = arith.addf %965, %964 : vector<8x32xf32>
    %967 = arith.divf %965, %966 : vector<8x32xf32>
    %968 = vector.extract_strided_slice %757 {offsets = [56, 0], sizes = [8, 32], strides = [1, 1]} : vector<64x32xf32> to vector<8x32xf32>
    %969 = vector.extract_strided_slice %959 {offsets = [0, 32], sizes = [8, 32], strides = [1, 1]} : vector<8x96xf32> to vector<8x32xf32>
    %970 = arith.addf %968, %969 : vector<8x32xf32>
    %971 = arith.negf %970 : vector<8x32xf32>
    %972 = math.exp %971 : vector<8x32xf32>
    %cst_169 = arith.constant 1.000000e+00 : f32
    %973 = vector.broadcast %cst_169 : f32 to vector<8x32xf32>
    %974 = arith.addf %973, %972 : vector<8x32xf32>
    %975 = arith.divf %973, %974 : vector<8x32xf32>
    %976 = vector.extract_strided_slice %758 {offsets = [56, 0], sizes = [8, 32], strides = [1, 1]} : vector<64x32xf32> to vector<8x32xf32>
    %977 = vector.extract_strided_slice %959 {offsets = [0, 64], sizes = [8, 32], strides = [1, 1]} : vector<8x96xf32> to vector<8x32xf32>
    %978 = arith.addf %977, %761 : vector<8x32xf32>
    %979 = arith.mulf %967, %978 : vector<8x32xf32>
    %980 = arith.addf %976, %979 : vector<8x32xf32>
    %981 = math.tanh %980 : vector<8x32xf32>
    %cst_170 = arith.constant 1.000000e+00 : f32
    %982 = vector.broadcast %cst_170 : f32 to vector<8x32xf32>
    %983 = arith.subf %982, %975 : vector<8x32xf32>
    %984 = arith.mulf %983, %981 : vector<8x32xf32>
    %985 = arith.mulf %975, %958 : vector<8x32xf32>
    %986 = arith.addf %984, %985 : vector<8x32xf32>
    %c0_171 = arith.constant 0 : index
    %c0_172 = arith.constant 0 : index
    %987 = vector.load %arg18[%c0_171, %c0_172] : memref<32x32xf32, #tpu.memory_space<vmem>>, vector<32x32xf32>
    %cst_173 = arith.constant dense<0.000000e+00> : vector<8x32xf32>
    %988 = tpu.matmul %986, %987, %cst_173 {dimension_numbers = #tpu.dot_dimension_numbers<[1], [0], [0], [1], [0, 0, 1, 1], [], []>} : vector<8x32xf32>, vector<32x32xf32>, vector<8x32xf32> -> vector<8x32xf32>
    %c0_174 = arith.constant 0 : index
    %c0_175 = arith.constant 0 : index
    %989 = vector.load %arg19[%c0_174, %c0_175] : memref<1x32xf32, #tpu.memory_space<vmem>>, vector<1x32xf32>
    %990 = vector.broadcast %989 : vector<1x32xf32> to vector<8x32xf32>
    %991 = arith.addf %988, %990 : vector<8x32xf32>
    %cst_176 = arith.constant 0.000000e+00 : f32
    %992 = vector.broadcast %cst_176 : f32 to vector<8x32xf32>
    %993 = arith.maximumf %991, %992 : vector<8x32xf32>
    %c0_177 = arith.constant 0 : index
    %c0_178 = arith.constant 0 : index
    %994 = vector.load %arg20[%c0_177, %c0_178] : memref<32x1xf32, #tpu.memory_space<vmem>>, vector<32x1xf32>
    %cst_179 = arith.constant dense<0.000000e+00> : vector<8x1xf32>
    %995 = tpu.matmul %993, %994, %cst_179 {dimension_numbers = #tpu.dot_dimension_numbers<[1], [0], [0], [1], [0, 0, 1, 1], [], []>} : vector<8x32xf32>, vector<32x1xf32>, vector<8x1xf32> -> vector<8x1xf32>
    %c0_180 = arith.constant 0 : index
    %c0_181 = arith.constant 0 : index
    %996 = vector.load %arg21[%c0_180, %c0_181] : memref<1x1xf32, #tpu.memory_space<vmem>>, vector<1x1xf32>
    %997 = vector.broadcast %996 : vector<1x1xf32> to vector<8x1xf32>
    %998 = arith.addf %995, %997 : vector<8x1xf32>
    %c0_182 = arith.constant 0 : index
    %c0_183 = arith.constant 0 : index
    %999 = vector.load %arg22[%c0_182, %c0_183] : memref<8x1xf32, #tpu.memory_space<vmem>>, vector<8x1xf32>
    tpu.vector_store %arg22[%c0_182, %c0_183], %998 {strides = array<i32>} : memref<8x1xf32, #tpu.memory_space<vmem>>, vector<8x1xf32>,
    return
  }
}

</mosaic_0001>

<bundles_post_ra>
// kernel: tpu_custom_call.1
= control target key start
LH: loop header
LB: loop body
LE: loop exit
PB: predicated region body
PF: predicated region fallthrough
CT: control target
= control target key end

     0   :  { %s6976_s0 = inlined_call_operand.vmem [shape: s32[64,1], index: 0, kind: input, shape index: {}]   ;;  %s6977_s1 = inlined_call_operand.vmem [shape: f32[50,32], index: 1, kind: input, shape index: {}]   ;;  %s6978_s2 = inlined_call_operand.vmem [shape: f32[32,96], index: 2, kind: input, shape index: {}]   ;;  %s6979_s3 = inlined_call_operand.vmem [shape: f32[32,96], index: 3, kind: input, shape index: {}]   ;;  %s6980_s4 = inlined_call_operand.hbm [shape: f32[1,96], index: 4, kind: input, shape index: {}]   ;;  %s6981_s5 = inlined_call_operand.hbm [shape: f32[1,96], index: 5, kind: input, shape index: {}]   ;;  %s6982_s6 = inlined_call_operand.vmem [shape: f32[32,96], index: 6, kind: input, shape index: {}]   ;;  %s6983_s7 = inlined_call_operand.vmem [shape: f32[32,96], index: 7, kind: input, shape index: {}]   ;;  %s6984_s8 = inlined_call_operand.hbm [shape: f32[1,96], index: 8, kind: input, shape index: {}]   ;;  %s6985_s9 = inlined_call_operand.hbm [shape: f32[1,96], index: 9, kind: input, shape index: {}]   ;;  %s6986_s10 = inlined_call_operand.vmem [shape: f32[32,96], index: 10, kind: input, shape index: {}]   ;;  %s6987_s11 = inlined_call_operand.vmem [shape: f32[32,96], index: 11, kind: input, shape index: {}]   ;;  %s6988_s12 = inlined_call_operand.hbm [shape: f32[1,96], index: 12, kind: input, shape index: {}]   ;;  %s6989_s13 = inlined_call_operand.hbm [shape: f32[1,96], index: 13, kind: input, shape index: {}]   ;;  %s6990_s14 = inlined_call_operand.vmem [shape: f32[32,96], index: 14, kind: input, shape index: {}]   ;;  %s6991_s15 = inlined_call_operand.hbm [shape: f32[32,96], index: 15, kind: input, shape index: {}]   ;;  %s6992_s16 = inlined_call_operand.hbm [shape: f32[1,96], index: 16, kind: input, shape index: {}]   ;;  %s6993_s17 = inlined_call_operand.hbm [shape: f32[1,96], index: 17, kind: input, shape index: {}]   ;;  %s6994_s18 = inlined_call_operand.vmem [shape: f32[32,32], index: 18, kind: input, shape index: {}]   ;;  %s6995_s19 = inlined_call_operand.vmem [shape: f32[1,32], index: 19, kind: input, shape index: {}]   ;;  %s6996_s20 = inlined_call_operand.vmem [shape: f32[32,1], index: 20, kind: input, shape index: {}]   ;;  %s6997_s21 = inlined_call_operand.<no memory space> [shape: f32[1,1], index: 21, kind: input, shape index: {}]   ;;  %s6998_s22 = inlined_call_operand.vmem [shape: f32[8,1], index: 22, kind: output, shape index: {}]  }
   0x1   :  { %7006 = sst [smem:[#allocation22_spill]] %s6976_s0  ;;  %v27_v0 = vstv %s6997_s21 }
   0x2   :  { %7007 = sst [smem:[#allocation23_spill]] %s6977_s1  ;;  %28 = vst [vmem:[#allocation2] sm:$0x1] %v27_v0 }
   0x3   :  { %7008 = sst [smem:[#allocation24_spill]] %s6978_s2 }
   0x4   :  { %7009 = sst [smem:[#allocation25_spill]] %s6979_s3 }
   0x5   :  { %7010 = sst [smem:[#allocation26_spill]] %s6980_s4 }
   0x6   :  { %7011 = sst [smem:[#allocation27_spill]] %s6981_s5 }
   0x7   :  { %7012 = sst [smem:[#allocation28_spill]] %s6982_s6 }
   0x8   :  { %29 = vsyncpa [#allocation4], 0 }
   0x9   :  { %30 = vsyncpa [#allocation6], 0 }
   0xa   :  { %31 = vsyncpa [#allocation9], 0 }
   0xb   :  { %32 = vsyncpa [#allocation12], 0 }
   0xc   :  { %33 = vsyncpa [#allocation15], 0  ;;  %s5888_s29 = smov [#allocation5]   ;;  %s5889_s4 = smov [#allocation8]  }
   0xd   :  { %s58_s30 = sshll.u32 %s5888_s29, 4  ;;  %s82_s0 = sshll.u32 %s5889_s4, 4  ;;  %s59_s30 = int_to_ptr.vmem [resolvable:$true] %s58_s30  ;;  %s83_s0 = int_to_ptr.vmem [resolvable:$true] %s82_s0 }
   0xe   :  { %s7013_s5 = sld [smem:[#allocation27_spill]] }
  0x14   :  { %s5680_s24 = scalar_lea.hbm %s7013_s5, 16 }
  0x15   :  { %p5681_p0 = scmp.ne.s32.totalorder %s7013_s5, %s5680_s24  ;;  %p5684_p1 = scmp.lt.u32.totalorder %s5680_s24, %s7013_s5 }
  0x17   :  { %p5686_p2 = pnand %p5684_p1, %p5681_p0 }
  0x19   :  { %5689 = shalt.err (!%p5686_p2)
}
  0x1a   :  { %s5690_s2 = scalar_lea.vmem %s59_s30, 16  ;;  %s5694_s27 = scalar_lea.vmem %s59_s30, 32 }
  0x1b   :  { %p5691_p3 = scmp.ne.s32.totalorder %s59_s30, %s5690_s2  ;;  %p5695_p4 = scmp.lt.s32.totalorder %s59_s30, %s59_s30 }
  0x1c   :  { %p5696_p5 = scmp.lt.s32.totalorder %s5694_s27, %s5690_s2 }
  0x1e   :  { %p5697_p6 = por %p5696_p5, %p5695_p4 }
  0x20   :  { %p5698_p7 = pnand %p5697_p6, %p5691_p3 }
  0x22   :  { %5701 = shalt.err (!%p5698_p7)
}
  0x23   :  { %61 = dma.hbm_to_vmem [thread:$0]  %s7013_s5, 16, %s59_s30, [#allocation6]  }
  0x24   :  { %s5702_s23 = scalar_lea.hbm %s6985_s9, 16 }
  0x25   :  { %p5703_p8 = scmp.ne.s32.totalorder %s6985_s9, %s5702_s23  ;;  %p5706_p9 = scmp.lt.u32.totalorder %s5702_s23, %s6985_s9 }
  0x27   :  { %p5708_p10 = pnand %p5706_p9, %p5703_p8 }
  0x29   :  { %5711 = shalt.err (!%p5708_p10)
}
  0x2a   :  { %s5712_s21 = scalar_lea.vmem %s83_s0, 16  ;;  %s5716_s26 = scalar_lea.vmem %s83_s0, 32 }
  0x2b   :  { %p5713_p11 = scmp.ne.s32.totalorder %s83_s0, %s5712_s21  ;;  %p5717_p12 = scmp.lt.s32.totalorder %s83_s0, %s83_s0 }
  0x2c   :  { %p5718_p13 = scmp.lt.s32.totalorder %s5716_s26, %s5712_s21 }
  0x2e   :  { %p5719_p0 = por %p5718_p13, %p5717_p12 }
  0x30   :  { %p5720_p1 = pnand %p5719_p0, %p5713_p11 }
  0x32   :  { %5723 = shalt.err (!%p5720_p1)
}
  0x33   :  { %85 = dma.hbm_to_vmem [thread:$0]  %s6985_s9, 16, %s83_s0, [#allocation9]  }
  0x34   :  { %s5890_s2 = smov [#allocation11]   ;;  %s5891_s3 = smov [#allocation14]  }
  0x35   :  { %s106_s27 = sshll.u32 %s5890_s2, 4  ;;  %s130_s28 = sshll.u32 %s5891_s3, 4  ;;  %s107_s27 = int_to_ptr.vmem [resolvable:$true] %s106_s27  ;;  %s131_s28 = int_to_ptr.vmem [resolvable:$true] %s130_s28 }
  0x36   :  { %s5724_s23 = scalar_lea.hbm %s6989_s13, 16 }
  0x37   :  { %p5725_p2 = scmp.ne.s32.totalorder %s6989_s13, %s5724_s23  ;;  %p5728_p3 = scmp.lt.u32.totalorder %s5724_s23, %s6989_s13 }
  0x39   :  { %p5730_p4 = pnand %p5728_p3, %p5725_p2 }
  0x3b   :  { %5733 = shalt.err (!%p5730_p4)
}
  0x3c   :  { %s5734_s9 = scalar_lea.vmem %s107_s27, 16  ;;  %s5738_s0 = scalar_lea.vmem %s107_s27, 32 }
  0x3d   :  { %p5735_p5 = scmp.ne.s32.totalorder %s107_s27, %s5734_s9  ;;  %p5739_p6 = scmp.lt.s32.totalorder %s107_s27, %s107_s27 }
  0x3e   :  { %p5740_p7 = scmp.lt.s32.totalorder %s5738_s0, %s5734_s9 }
  0x40   :  { %p5741_p8 = por %p5740_p7, %p5739_p6 }
  0x42   :  { %p5742_p9 = pnand %p5741_p8, %p5735_p5 }
  0x44   :  { %5745 = shalt.err (!%p5742_p9)
}
  0x45   :  { %109 = dma.hbm_to_vmem [thread:$0]  %s6989_s13, 16, %s107_s27, [#allocation12]  }
  0x46   :  { %s5746_s2 = scalar_lea.hbm %s6992_s16, 16 }
  0x47   :  { %p5747_p10 = scmp.ne.s32.totalorder %s6992_s16, %s5746_s2  ;;  %p5750_p11 = scmp.lt.u32.totalorder %s5746_s2, %s6992_s16 }
  0x49   :  { %p5752_p12 = pnand %p5750_p11, %p5747_p10 }
  0x4b   :  { %5755 = shalt.err (!%p5752_p12)
}
  0x4c   :  { %s5756_s1 = scalar_lea.vmem %s131_s28, 16  ;;  %s5760_s24 = scalar_lea.vmem %s131_s28, 32 }
  0x4d   :  { %p5757_p13 = scmp.ne.s32.totalorder %s131_s28, %s5756_s1  ;;  %p5761_p0 = scmp.lt.s32.totalorder %s131_s28, %s131_s28 }
  0x4e   :  { %p5762_p1 = scmp.lt.s32.totalorder %s5760_s24, %s5756_s1 }
  0x50   :  { %p5763_p2 = por %p5762_p1, %p5761_p0 }
  0x52   :  { %p5764_p3 = pnand %p5763_p2, %p5757_p13 }
  0x54   :  { %5767 = shalt.err (!%p5764_p3)
}
  0x55   :  { %133 = dma.hbm_to_vmem [thread:$0]  %s6992_s16, 16, %s131_s28, [#allocation15]  }
  0x56   :  { %s5892_s6 = smov [#allocation3]   ;;  %s5893_s9 = smov [#allocation7]  }
  0x57   :  { %s48_s25 = sshll.u32 %s5892_s6, 4  ;;  %s72_s0 = sshll.u32 %s5893_s9, 4  ;;  %s49_s25 = int_to_ptr.vmem [resolvable:$true] %s48_s25  ;;  %s73_s0 = int_to_ptr.vmem [resolvable:$true] %s72_s0 }
  0x58   :  { %s7014_s30 = sld [smem:[#allocation26_spill]] }
  0x5e   :  { %s5768_s5 = scalar_lea.hbm %s7014_s30, 16 }
  0x5f   :  { %p5769_p4 = scmp.ne.s32.totalorder %s7014_s30, %s5768_s5  ;;  %p5772_p5 = scmp.lt.u32.totalorder %s5768_s5, %s7014_s30 }
  0x61   :  { %p5774_p6 = pnand %p5772_p5, %p5769_p4 }
  0x63   :  { %5777 = shalt.err (!%p5774_p6)
}
  0x64   :  { %s5778_s16 = scalar_lea.vmem %s49_s25, 16  ;;  %s5782_s28 = scalar_lea.vmem %s49_s25, 32 }
  0x65   :  { %p5779_p7 = scmp.ne.s32.totalorder %s49_s25, %s5778_s16  ;;  %p5783_p8 = scmp.lt.s32.totalorder %s49_s25, %s49_s25 }
  0x66   :  { %p5784_p9 = scmp.lt.s32.totalorder %s5782_s28, %s5778_s16 }
  0x68   :  { %p5785_p10 = por %p5784_p9, %p5783_p8 }
  0x6a   :  { %p5786_p11 = pnand %p5785_p10, %p5779_p7 }
  0x6c   :  { %5789 = shalt.err (!%p5786_p11)
}
  0x6d   :  { %51 = dma.hbm_to_vmem [thread:$0]  %s7014_s30, 16, %s49_s25, [#allocation4]  }
  0x6e   :  { %s5790_s27 = scalar_lea.hbm %s6984_s8, 16 }
  0x6f   :  { %p5791_p12 = scmp.ne.s32.totalorder %s6984_s8, %s5790_s27  ;;  %p5794_p13 = scmp.lt.u32.totalorder %s5790_s27, %s6984_s8 }
  0x71   :  { %p5796_p0 = pnand %p5794_p13, %p5791_p12 }
  0x73   :  { %5799 = shalt.err (!%p5796_p0)
}
  0x74   :  { %s5800_s5 = scalar_lea.vmem %s73_s0, 16  ;;  %s5804_s2 = scalar_lea.vmem %s73_s0, 32 }
  0x75   :  { %p5801_p1 = scmp.ne.s32.totalorder %s73_s0, %s5800_s5  ;;  %p5805_p2 = scmp.lt.s32.totalorder %s73_s0, %s73_s0 }
  0x76   :  { %p5806_p3 = scmp.lt.s32.totalorder %s5804_s2, %s5800_s5 }
  0x78   :  { %p5807_p4 = por %p5806_p3, %p5805_p2 }
  0x7a   :  { %p5808_p5 = pnand %p5807_p4, %p5801_p1 }
  0x7c   :  { %5811 = shalt.err (!%p5808_p5)
}
  0x7d   :  { %75 = dma.hbm_to_vmem [thread:$0]  %s6984_s8, 16, %s73_s0, [#allocation6]  }
  0x7e   :  { %s5894_s3 = smov [#allocation10]   ;;  %s5895_s4 = smov [#allocation13]  }
  0x7f   :  { %s96_s29 = sshll.u32 %s5894_s3, 4  ;;  %s117_s16 = sshll.u32 %s5895_s4, 4  ;;  %s97_s29 = int_to_ptr.vmem [resolvable:$true] %s96_s29  ;;  %s6095_s16 = int_to_ptr.vmem [resolvable:$true] %s117_s16 }
  0x80   :  { %s5812_s1 = scalar_lea.hbm %s6988_s12, 16 }
  0x81   :  { %p5813_p6 = scmp.ne.s32.totalorder %s6988_s12, %s5812_s1  ;;  %p5816_p7 = scmp.lt.u32.totalorder %s5812_s1, %s6988_s12 }
  0x83   :  { %p5818_p8 = pnand %p5816_p7, %p5813_p6 }
  0x85   :  { %5821 = shalt.err (!%p5818_p8)
}
  0x86   :  { %s5822_s8 = scalar_lea.vmem %s97_s29, 16  ;;  %s5826_s0 = scalar_lea.vmem %s97_s29, 32 }
  0x87   :  { %p5823_p9 = scmp.ne.s32.totalorder %s97_s29, %s5822_s8  ;;  %p5827_p10 = scmp.lt.s32.totalorder %s97_s29, %s97_s29 }
  0x88   :  { %p5828_p11 = scmp.lt.s32.totalorder %s5826_s0, %s5822_s8 }
  0x8a   :  { %p5829_p12 = por %p5828_p11, %p5827_p10 }
  0x8c   :  { %p5830_p13 = pnand %p5829_p12, %p5823_p9 }
  0x8e   :  { %5833 = shalt.err (!%p5830_p13)
}
  0x8f   :  { %99 = dma.hbm_to_vmem [thread:$0]  %s6988_s12, 16, %s97_s29, [#allocation9]  }
  0x90   :  { %s5834_s2 = scalar_lea.hbm %s6991_s15, 512 }
  0x91   :  { %p5835_p0 = scmp.ne.s32.totalorder %s6991_s15, %s5834_s2  ;;  %p5838_p1 = scmp.lt.u32.totalorder %s5834_s2, %s6991_s15 }
  0x93   :  { %p5840_p2 = pnand %p5838_p1, %p5835_p0 }
  0x95   :  { %5843 = shalt.err (!%p5840_p2)
}
  0x96   :  { %s5844_s28 = scalar_lea.vmem %s6095_s16, 512  ;;  %p5849_p4 = scmp.lt.s32.totalorder %s6095_s16, %s6095_s16 }
  0x97   :  { %p5845_p3 = scmp.ne.s32.totalorder %s6095_s16, %s5844_s28  ;;  %p5850_p5 = scmp.lt.s32.totalorder %s5844_s28, %s5844_s28 }
  0x99   :  { %p5851_p6 = por %p5850_p5, %p5849_p4 }
  0x9b   :  { %p5852_p7 = pnand %p5851_p6, %p5845_p3 }
  0x9d   :  { %5855 = shalt.err (!%p5852_p7)
}
  0x9e   :  { %s5896_s12 = smov 128   ;;  %s5897_s29 = smov 8  }
  0x9f   :  { %123 = dma.hbm_to_vmem [thread:$0]  %s6991_s15, 512, %s6095_s16, [#allocation12], %s5896_s12, %s5896_s12, %s5897_s29  }
  0xa0   :  { %s5898_s24 = smov [#allocation16]   ;;  %s5856_s8 = scalar_lea.hbm %s6993_s17, 16 }
  0xa1   :  { %s140_s13 = sshll.u32 %s5898_s24, 4  ;;  %p5857_p8 = scmp.ne.s32.totalorder %s6993_s17, %s5856_s8  ;;  %s141_s13 = int_to_ptr.vmem [resolvable:$true] %s140_s13 }
  0xa2   :  { %p5860_p9 = scmp.lt.u32.totalorder %s5856_s8, %s6993_s17 }
  0xa4   :  { %p5862_p10 = pnand %p5860_p9, %p5857_p8 }
  0xa6   :  { %5865 = shalt.err (!%p5862_p10)
}
  0xa7   :  { %s5866_s5 = scalar_lea.vmem %s141_s13, 16  ;;  %s5870_s15 = scalar_lea.vmem %s141_s13, 32 }
  0xa8   :  { %p5867_p11 = scmp.ne.s32.totalorder %s141_s13, %s5866_s5  ;;  %p5871_p12 = scmp.lt.s32.totalorder %s141_s13, %s141_s13 }
  0xa9   :  { %p5872_p13 = scmp.lt.s32.totalorder %s5870_s15, %s5866_s5 }
  0xab   :  { %p5873_p0 = por %p5872_p13, %p5871_p12 }
  0xad   :  { %p5874_p1 = pnand %p5873_p0, %p5867_p11 }
  0xaf   :  { %5877 = shalt.err (!%p5874_p1)
}
  0xb0   :  { %143 = dma.hbm_to_vmem [thread:$0]  %s6993_s17, 16, %s141_s13, [#allocation15]  }
  0xb1   :  { %5878 = dma.done.wait [#allocation4], 16  }
  0xb2   :  { %5879 = vsyncadd [#allocation4], 4294967280 }
  0xb3   :  { %5880 = dma.done.wait [#allocation6], 32  }
  0xb4   :  { %5881 = vsyncadd [#allocation6], 4294967264 }
  0xb5   :  { %5882 = dma.done.wait [#allocation9], 32  }
  0xb6   :  { %5883 = vsyncadd [#allocation9], 4294967264 }
  0xb7   :  { %5884 = dma.done.wait [#allocation12], 528  }
  0xb8   :  { %5885 = vsyncadd [#allocation12], 4294966768 }
  0xb9   :  { %5886 = dma.done.wait [#allocation15], 32  }
  0xba   :  { %5887 = vsyncadd [#allocation15], 4294967264  ;;  %v5899_v1 = vmov 0   ;;  %s7015_s3 = sld [smem:[#allocation22_spill]]  ;;  %s7016_s13 = sld [smem:[#allocation23_spill]]  ;;  %vm269_vm0 = vcmask 1041408   ;;  %v194_v26 = vlaneseq }
  0xbb   :  { %5487 = vset.pattern.permute.xlu1 %v5899_v1  ;;  %5486 = vset.pattern.permute.xlu0 %v5899_v1  ;;  %s7017_s6 = sld [smem:[#allocation24_spill]]  ;;  %vm244_vm1 = vcmask 408576   ;;  %v5900_v30 = vmov 0.0   ;;  %v5901_v45 = vmov 0.0|0.0   ;;  %s7018_s15 = sld [smem:[#allocation25_spill]]  ;;  %vm5902_vm10 = vmmov 0  }
  0xbc   :  { %v195_v27 = vand.u32 127, %v194_v26  ;;  %vm394_vm11 = vcmask 261120   ;;  %v4404_v60 = vld [vmem:[#allocation3] ss:$0 sm:$0xff]  ;;  %s5903_s17 = smov 64   ;;  %s5904_s12 = smov 96  }
  0xbd   :  { %s7019_s1 = sld [smem:[#allocation28_spill]]  ;;  %vm4376_vm12 = vcmask 7168  }
  0xc0   :  { %v188_v2 = vld [vmem:[%s7015_s3 + $0x10] sm:$0xff]  ;;  %v186_v3 = vld [vmem:[%s7015_s3] sm:$0xff]  ;;  %v189_v4 = vld [vmem:[%s7015_s3 + $0x18] sm:$0xff] }
  0xc1   :  { %203 = vperm.xlu1 %5487, %v188_v2   ;;  %197 = vperm.xlu0 %5486, %v186_v3   ;;  %v187_v5 = vld [vmem:[%s7015_s3 + $0x8] sm:$0xff]  ;;  %v179_v6 = vld [vmem:[%s7016_s13] sm:$0xff]  ;;  %v181_v8 = vld [vmem:[%s7016_s13 + $0x10] sm:$0xff] }
  0xc2   :  { %v180_v7 = vld [vmem:[%s7016_s13 + $0x8] sm:$0xff]  ;;  %v182_v9 = vld [vmem:[%s7016_s13 + $0x18] sm:$0xff]  ;;  %v183_v12 = vld [vmem:[%s7016_s13 + $0x20] sm:$0xff] }
  0xc3   :  { %v5221_v10 = vpack.c.bf16 %v180_v7, %v179_v6  ;;  %v5225_v11 = vpack.c.bf16 %v182_v9, %v181_v8  ;;  %v184_v13 = vld [vmem:[%s7016_s13 + $0x28] sm:$0xff]  ;;  %v190_v15 = vld [vmem:[%s7015_s3 + $0x20] sm:$0xff]  ;;  %v193_v17 = vld [vmem:[%s7015_s3 + $0x38] sm:$0xff] }
  0xc4   :  { %v191_v14 = vld [vmem:[%s7015_s3 + $0x28] sm:$0xff]  ;;  %v5229_v16 = vpack.c.bf16 %v184_v13, %v183_v12  ;;  %v192_v18 = vld [vmem:[%s7015_s3 + $0x30] sm:$0xff]  ;;  %v378_v20 = vld [vmem:[%s7017_s6] sm:$0xff] }
  0xc5   :  { %206 = vperm.xlu1 %5487, %v189_v4   ;;  %200 = vperm.xlu0 %5486, %v187_v5   ;;  %v185_v19 = vld [vmem:[%s7016_s13 + $0x30] sm:$0x3]  ;;  %v379_v21 = vld [vmem:[%s7017_s6 + $0x8] sm:$0xff]  ;;  %v381_v24 = vld [vmem:[%s7017_s6 + $0x18] sm:$0xff] }
  0xc6   :  { %5222 = vmatprep.subr.bf16.mxu0 %v5221_v10  ;;  %v380_v22 = vld [vmem:[%s7017_s6 + $0x10] sm:$0xff]  ;;  %v5233_v23 = vpack.c.bf16 %v379_v21, %v378_v20  ;;  %v382_v46 = vld [vmem:[%s7018_s15] sm:$0xff]  ;;  %v383_v47 = vld [vmem:[%s7018_s15 + $0x8] sm:$0xff] }
  0xc7   :  { %5224 = vmatpush3.bf16.msra.mxu0 %v5221_v10  ;;  %v5237_v25 = vpack.c.bf16 %v381_v24, %v380_v22  ;;  %v6219_v48 = vpack.c.bf16 %v383_v47, %v382_v46  ;;  %v384_v49 = vld [vmem:[%s7018_s15 + $0x10] sm:$0xff]  ;;  %v385_v50 = vld [vmem:[%s7018_s15 + $0x18] sm:$0xff]  ;;  %v6270_v12 = vld [vmem:[#allocation5] ss:$0 sm:$0xff] }
  0xc8   :  { %5226 = vmatprep.subr.bf16.mxu0 %v5225_v11  ;;  %5234 = vmatprep.subr.bf16.mxu1 %v5233_v23  ;;  %v6229_v51 = vpack.c.bf16 %v385_v50, %v384_v49 }
  0xc9   :  { %212 = vperm.xlu1 %5487, %v191_v14   ;;  %209 = vperm.xlu0 %5486, %v190_v15  }
  0xca   :  { %5236 = vmatpush3.bf16.msra.mxu1 %v5233_v23 }
  0xcb   :  { %5228 = vmatpush3.bf16.msra.mxu0 %v5225_v11  ;;  %5238 = vmatprep.subr.bf16.mxu1 %v5237_v25 }
  0xcc   :  { %5230 = vmatprep.subr.bf16.mxu0 %v5229_v16 }
  0xcd   :  { %218 = vperm.xlu1 %5487, %v193_v17   ;;  %215 = vperm.xlu0 %5486, %v192_v18  }
  0xce   :  { %5240 = vmatpush3.bf16.msra.mxu1 %v5237_v25 }
  0xcf   :  { %5232 = vmatpush3.bf16.msra.mxu0 %v5229_v16  ;;  %5241 = vmatprep.subr.bf16.mxu1 %v5901_v45 }
  0xd0   :  { %4753 = vmatprep.subr.msk.mxu0 %vm269_vm0, %v185_v19 }
  0xd3   :  { %4754 = vmatpush3.msk.msra.mxu0 %vm269_vm0, %v185_v19 }
  0xd4   :  { %5247 = vmatprep.subr.bf16.mxu0 %v5901_v45 }
 0x140   :  { %v204_v28 = vpop.permute.xlu1 %203  ;;  %v198_v29 = vpop.permute.xlu0 %197 }
 0x141   :  { %vm220_vm2 = vcmp.eq.s32.totalorder %v198_v29, %v195_v27  ;;  %vm222_vm3 = vcmp.eq.s32.totalorder %v204_v28, %v195_v27 }
 0x142   :  { %v4387_v31 = vsel %vm220_vm2, 1.0, %v5900_v30  ;;  %v4389_v34 = vsel %vm222_vm3, 1.0, %v5900_v30 }
 0x143   :  { %4755 = vmatprep.mubr.msk.f32.mxu0 %vm244_vm1, %v4387_v31 }
 0x144   :  { %v207_v32 = vpop.permute.xlu1 %206  ;;  %v201_v33 = vpop.permute.xlu0 %200 }
 0x145   :  { %vm221_vm4 = vcmp.eq.s32.totalorder %v201_v33, %v195_v27  ;;  %vm223_vm5 = vcmp.eq.s32.totalorder %v207_v32, %v195_v27 }
 0x146   :  { %v4388_v35 = vsel %vm221_vm4, 1.0, %v5900_v30  ;;  %v4390_v38 = vsel %vm223_vm5, 1.0, %v5900_v30 }
 0x147   :  { %4756 = vmatmul.mubr.msk.f32.vlgmr.msra.gmra.mrb[0].mxu0 %vm244_vm1, %v4388_v35 }
 0x148   :  { %v213_v36 = vpop.permute.xlu1 %212  ;;  %v210_v37 = vpop.permute.xlu0 %209  ;;  %4758 = vmatprep.mubr.msk.f32.mxu0 %vm244_vm1, %v4389_v34  ;;  %5249 = vmatpush3.bf16.msra.mxu0 %v6219_v48 }
 0x149   :  { %vm224_vm6 = vcmp.eq.s32.totalorder %v210_v37, %v195_v27  ;;  %vm225_vm7 = vcmp.eq.s32.totalorder %v213_v36, %v195_v27  ;;  %5250 = vmatprep.subr.bf16.mxu0 %v5901_v45 }
 0x14a   :  { %v4391_v39 = vsel %vm224_vm6, 1.0, %v5900_v30  ;;  %v4392_v42 = vsel %vm225_vm7, 1.0, %v5900_v30 }
 0x14b   :  { %4759 = vmatmul.mubr.msk.f32.gmra.mrb[2].mxu0 %vm244_vm1, %v4390_v38 }
 0x14c   :  { %v219_v40 = vpop.permute.xlu1 %218  ;;  %v216_v41 = vpop.permute.xlu0 %215  ;;  %4761 = vmatprep.mubr.msk.f32.mxu0 %vm244_vm1, %v4391_v39  ;;  %5252 = vmatpush3.bf16.msra.mxu0 %v6229_v51 }
 0x14d   :  { %vm226_vm8 = vcmp.eq.s32.totalorder %v216_v41, %v195_v27  ;;  %vm227_vm9 = vcmp.eq.s32.totalorder %v219_v40, %v195_v27  ;;  %5259 = vmatprep.subr.bf16.mxu0 %v5901_v45 }
 0x14e   :  { %v4393_v43 = vsel %vm226_vm8, 1.0, %v5900_v30  ;;  %v4394_v44 = vsel %vm227_vm9, 1.0, %v5900_v30 }
 0x14f   :  { %4762 = vmatmul.mubr.msk.f32.gmra.mrb[4].mxu0 %vm244_vm1, %v4392_v42 }
 0x150   :  { %4764 = vmatprep.mubr.msk.f32.mxu0 %vm244_vm1, %v4393_v43 }
 0x153   :  { %4765 = vmatmul.mubr.msk.f32.gmra.mrb[6].mxu0 %vm244_vm1, %v4394_v44 }
 0x154   :  { %4806 = vmatprep.mubr.msk.f32.mxu0 %vm5902_vm10, %v5900_v30 }
 0x21a   :  { %v4757_v52 = vpop.f32.mrb[0].mxu0 }
 0x21b   :  { %v339_v53 = vpop.f32.mrb[1].mxu0 }
 0x21c   :  { %4775 = vmatprep.mubr.msk.f32.mxu1 %vm394_vm11, %v339_v53 }
 0x21d   :  { %4776 = vmatmul.mubr.msk.f32.vlgmr.msra.gmra.mrb[0].mxu1 %vm394_vm11, %v4757_v52 }
 0x21e   :  { %5243 = vmatpush3.bf16.msra.mxu1 %v6219_v48  ;;  %v4760_v54 = vpop.f32.mrb[2].mxu0 }
 0x21f   :  { %v349_v55 = vpop.f32.mrb[3].mxu0  ;;  %5244 = vmatprep.subr.bf16.mxu1 %v5901_v45 }
 0x220   :  { %4778 = vmatprep.mubr.msk.f32.mxu1 %vm394_vm11, %v349_v55 }
 0x221   :  { %4779 = vmatmul.mubr.msk.f32.gmra.mrb[2].mxu1 %vm394_vm11, %v4760_v54 }
 0x222   :  { %v4763_v56 = vpop.f32.mrb[4].mxu0  ;;  %5246 = vmatpush3.bf16.msra.mxu1 %v6229_v51 }
 0x223   :  { %v359_v57 = vpop.f32.mrb[5].mxu0  ;;  %5253 = vmatprep.subr.bf16.mxu1 %v5901_v45 }
 0x224   :  { %4781 = vmatprep.mubr.msk.f32.mxu1 %vm394_vm11, %v359_v57 }
 0x225   :  { %4782 = vmatmul.mubr.msk.f32.gmra.mrb[4].mxu1 %vm394_vm11, %v4763_v56 }
 0x226   :  { %v4766_v58 = vpop.f32.mrb[6].mxu0 }
 0x227   :  { %v369_v59 = vpop.f32.mrb[7].mxu0 }
 0x228   :  { %4784 = vmatprep.mubr.msk.f32.mxu1 %vm394_vm11, %v369_v59 }
 0x229   :  { %4785 = vmatmul.mubr.msk.f32.gmra.mrb[6].mxu1 %vm394_vm11, %v4766_v58 }
 0x22a   :  { %4795 = vmatprep.mubr.msk.f32.mxu1 %vm5902_vm10, %v5900_v30 }
 0x22d   :  { %4796 = vmatmul.mubr.f32.vlgmr.msra.gmra.mrb[8].mxu1 %v5900_v30 }
 0x22e   :  { %5255 = vmatpush3.bf16.msra.mxu1 %v6219_v48  ;;  %4817 = vmatprep.mubr.msk.f32.mxu1 %vm5902_vm10, %v5900_v30 }
 0x22f   :  { %5256 = vmatprep.subr.bf16.mxu1 %v5901_v45 }
 0x232   :  { %5258 = vmatpush3.bf16.msra.mxu1 %v6229_v51 }
 0x233   :  { %5265 = vmatprep.subr.bf16.mxu1 %v5901_v45 }
 0x2f0   :  { %v4777_v61 = vpop.f32.mrb[0].mxu1 }
 0x2f1   :  { %v6256_v62 = vadd.f32 %v4777_v61, %v4404_v60  ;;  %v485_v63 = vpop.f32.mrb[1].mxu1 }
 0x2f2   :  { %v486_v16 = vadd.f32 %v4404_v60, %v485_v63 }
 0x2f3   :  { %v531_v38 = vadd.f32 %v6270_v12, %v6256_v62 }
 0x2f4   :  { %v4780_v0 = vpop.f32.mrb[2].mxu1  ;;  %v530_v17 = vadd.f32 %v6270_v12, %v486_v16 }
 0x2f5   :  { %v6258_v1 = vadd.f32 %v4780_v0, %v4404_v60  ;;  %v495_v2 = vpop.f32.mrb[3].mxu1 }
 0x2f6   :  { %v6260_v3 = vadd.f32 %v4404_v60, %v495_v2 }
 0x2f8   :  { %v4783_v4 = vpop.f32.mrb[4].mxu1  ;;  %v532_v61 = vadd.f32 %v6270_v12, %v6260_v3 }
 0x2f9   :  { %v6262_v5 = vadd.f32 %v4783_v4, %v4404_v60  ;;  %v505_v6 = vpop.f32.mrb[5].mxu1 }
 0x2fa   :  { %v6264_v7 = vadd.f32 %v4404_v60, %v505_v6 }
 0x2fc   :  { %v4786_v8 = vpop.f32.mrb[6].mxu1 }
 0x2fd   :  { %v6266_v9 = vadd.f32 %v4786_v8, %v4404_v60  ;;  %v515_v10 = vpop.f32.mrb[7].mxu1 }
 0x2fe   :  { %v6268_v11 = vadd.f32 %v4404_v60, %v515_v10 }
 0x300   :  { %v607_v13 = vpop.f32.mrb[8].mxu1 }
 0x301   :  { %v618_v14 = vadd.f32 %v6270_v12, %v607_v13  ;;  %v4797_v15 = vpop.f32.mrb[9].mxu1  ;;  %v611_v18 = vadd.f32 %v607_v13, %v530_v17 }
 0x303   :  { %620 = vrot.lane.b32.xlu0 %v618_v14, %s5903_s17  ;;  %v4414_v19 = vmul.f32 -1.442695, %v611_v18 }
 0x305   :  { %5488 = vpow2.f32 %v4414_v19 }
 0x30f   :  { %v5489_v20 = vpop.eup %5488 }
 0x310   :  { %v615_v21 = vadd.f32 1.0, %v5489_v20 }
 0x312   :  { %5490 = vrcp.f32 %v615_v21 }
 0x31c   :  { %v5491_v22 = vpop.eup %5490 }
 0x31d   :  { %v630_v28 = vsub.f32 1.0, %v5491_v22  ;;  %v636_v31 = vmul.f32 0.0, %v5491_v22 }
 0x375   :  { %v621_v23 = vpop.permute.xlu0 %620 }
 0x376   :  { %v623_v24 = vmul.f32 %v5491_v22, %v621_v23  ;;  %v533_v23 = vadd.f32 %v6270_v12, %v6258_v1 }
 0x378   :  { %625 = vrot.lane.b32.xlu1 %v623_v24, %s5903_s17 }
 0x3ea   :  { %v626_v25 = vpop.permute.xlu1 %625 }
 0x3eb   :  { %v628_v26 = vadd.f32 %v626_v25, %v486_v16 }
 0x3ed   :  { %5492 = vtanh.f32 %v628_v26 }
 0x3f7   :  { %v5493_v27 = vpop.eup %5492 }
 0x3f8   :  { %632 = vrot.lane.b32.xlu0 %v5493_v27, %s5904_s12 }
 0x46a   :  { %v633_v29 = vpop.permute.xlu0 %632 }
 0x46b   :  { %v635_v32 = vmul.f32 %v633_v29, %v630_v28 }
 0x46d   :  { %v637_v33 = vadd.f32 %v636_v31, %v635_v32 }
 0x46f   :  { %639 = vrot.lane.b32.xlu1 %v637_v33, %s5904_s12 }
 0x4e1   :  { %v6278_v34 = vpop.permute.xlu1 %639 }
 0x4e2   :  { %4807 = vmatmul.mubr.msk.f32.vlgmr.msra.gmra.mrb[8].mxu0 %vm394_vm11, %v6278_v34 }
 0x4e3   :  { %5261 = vmatpush3.bf16.msra.mxu0 %v6219_v48  ;;  %4828 = vmatprep.mubr.msk.f32.mxu0 %vm5902_vm10, %v5900_v30 }
 0x4e4   :  { %5262 = vmatprep.subr.bf16.mxu0 %v5901_v45 }
 0x4e7   :  { %5264 = vmatpush3.bf16.msra.mxu0 %v6229_v51 }
 0x4e8   :  { %5271 = vmatprep.subr.bf16.mxu0 %v5901_v45 }
 0x5b5   :  { %v709_v35 = vpop.f32.mrb[8].mxu0 }
 0x5b6   :  { %v720_v36 = vadd.f32 %v6270_v12, %v709_v35  ;;  %v4808_v37 = vpop.f32.mrb[9].mxu0  ;;  %v713_v39 = vadd.f32 %v709_v35, %v531_v38 }
 0x5b8   :  { %722 = vrot.lane.b32.xlu0 %v720_v36, %s5903_s17  ;;  %v4416_v40 = vmul.f32 -1.442695, %v713_v39 }
 0x5ba   :  { %5494 = vpow2.f32 %v4416_v40 }
 0x5c4   :  { %v5495_v41 = vpop.eup %5494 }
 0x5c5   :  { %v717_v42 = vadd.f32 1.0, %v5495_v41 }
 0x5c7   :  { %5496 = vrcp.f32 %v717_v42 }
 0x5d1   :  { %v5497_v43 = vpop.eup %5496 }
 0x5d2   :  { %v732_v52 = vsub.f32 1.0, %v5497_v43  ;;  %v738_v54 = vmul.f32 %v5497_v43, %v637_v33 }
 0x62a   :  { %v723_v44 = vpop.permute.xlu0 %722 }
 0x62b   :  { %v725_v46 = vmul.f32 %v5497_v43, %v723_v44  ;;  %v534_v44 = vadd.f32 %v6270_v12, %v6264_v7 }
 0x62d   :  { %727 = vrot.lane.b32.xlu1 %v725_v46, %s5903_s17 }
 0x69f   :  { %v728_v47 = vpop.permute.xlu1 %727 }
 0x6a0   :  { %v730_v49 = vadd.f32 %v728_v47, %v6256_v62 }
 0x6a2   :  { %5498 = vtanh.f32 %v730_v49 }
 0x6ac   :  { %v5499_v50 = vpop.eup %5498 }
 0x6ad   :  { %734 = vrot.lane.b32.xlu0 %v5499_v50, %s5904_s12 }
 0x71f   :  { %v735_v53 = vpop.permute.xlu0 %734 }
 0x720   :  { %v737_v55 = vmul.f32 %v735_v53, %v732_v52 }
 0x722   :  { %v739_v56 = vadd.f32 %v738_v54, %v737_v55 }
 0x724   :  { %741 = vrot.lane.b32.xlu1 %v739_v56, %s5904_s12 }
 0x796   :  { %v6296_v57 = vpop.permute.xlu1 %741 }
 0x797   :  { %4818 = vmatmul.mubr.msk.f32.vlgmr.msra.gmra.mrb[10].mxu1 %vm394_vm11, %v6296_v57 }
 0x798   :  { %5267 = vmatpush3.bf16.msra.mxu1 %v6219_v48  ;;  %4839 = vmatprep.mubr.msk.f32.mxu1 %vm5902_vm10, %v5900_v30 }
 0x799   :  { %5268 = vmatprep.subr.bf16.mxu1 %v5901_v45 }
 0x79c   :  { %5270 = vmatpush3.bf16.msra.mxu1 %v6229_v51 }
 0x79d   :  { %5277 = vmatprep.subr.bf16.mxu1 %v5901_v45 }
 0x86a   :  { %v811_v58 = vpop.f32.mrb[10].mxu1 }
 0x86b   :  { %v822_v59 = vadd.f32 %v6270_v12, %v811_v58  ;;  %v4819_v60 = vpop.f32.mrb[11].mxu1  ;;  %v815_v62 = vadd.f32 %v811_v58, %v532_v61 }
 0x86d   :  { %824 = vrot.lane.b32.xlu0 %v822_v59, %s5903_s17  ;;  %v4418_v63 = vmul.f32 -1.442695, %v815_v62 }
 0x86f   :  { %5500 = vpow2.f32 %v4418_v63 }
 0x879   :  { %v5501_v0 = vpop.eup %5500 }
 0x87a   :  { %v819_v2 = vadd.f32 1.0, %v5501_v0 }
 0x87c   :  { %5502 = vrcp.f32 %v819_v2 }
 0x886   :  { %v5503_v4 = vpop.eup %5502 }
 0x887   :  { %v834_v15 = vsub.f32 1.0, %v5503_v4  ;;  %v840_v17 = vmul.f32 %v5503_v4, %v739_v56 }
 0x8df   :  { %v825_v6 = vpop.permute.xlu0 %824 }
 0x8e0   :  { %v827_v8 = vmul.f32 %v5503_v4, %v825_v6  ;;  %v535_v6 = vadd.f32 %v6270_v12, %v6262_v5 }
 0x8e2   :  { %829 = vrot.lane.b32.xlu1 %v827_v8, %s5903_s17 }
 0x954   :  { %v830_v10 = vpop.permute.xlu1 %829 }
 0x955   :  { %v832_v13 = vadd.f32 %v830_v10, %v6260_v3 }
 0x957   :  { %5504 = vtanh.f32 %v832_v13 }
 0x961   :  { %v5505_v14 = vpop.eup %5504 }
 0x962   :  { %836 = vrot.lane.b32.xlu0 %v5505_v14, %s5904_s12 }
 0x9d4   :  { %v837_v16 = vpop.permute.xlu0 %836 }
 0x9d5   :  { %v839_v18 = vmul.f32 %v837_v16, %v834_v15 }
 0x9d7   :  { %v841_v19 = vadd.f32 %v840_v17, %v839_v18  ;;  %v1352_v18 = vld [vmem:[%s7019_s1] sm:$0xff] }
 0x9d9   :  { %843 = vrot.lane.b32.xlu1 %v841_v19, %s5904_s12 }
 0xa4b   :  { %v6314_v20 = vpop.permute.xlu1 %843 }
 0xa4c   :  { %4829 = vmatmul.mubr.msk.f32.vlgmr.msra.gmra.mrb[10].mxu0 %vm394_vm11, %v6314_v20 }
 0xa4d   :  { %5273 = vmatpush3.bf16.msra.mxu0 %v6219_v48  ;;  %4850 = vmatprep.mubr.msk.f32.mxu0 %vm5902_vm10, %v5900_v30 }
 0xa4e   :  { %5274 = vmatprep.subr.bf16.mxu0 %v5901_v45 }
 0xa51   :  { %5276 = vmatpush3.bf16.msra.mxu0 %v6229_v51 }
 0xa52   :  { %5283 = vmatprep.subr.bf16.mxu0 %v5901_v45 }
 0xb1f   :  { %v913_v3 = vpop.f32.mrb[10].mxu0 }
 0xb20   :  { %v924_v21 = vadd.f32 %v6270_v12, %v913_v3  ;;  %v4830_v22 = vpop.f32.mrb[11].mxu0  ;;  %v917_v24 = vadd.f32 %v913_v3, %v533_v23 }
 0xb22   :  { %926 = vrot.lane.b32.xlu0 %v924_v21, %s5903_s17  ;;  %v4420_v25 = vmul.f32 -1.442695, %v917_v24 }
 0xb24   :  { %5506 = vpow2.f32 %v4420_v25 }
 0xb2e   :  { %v5507_v26 = vpop.eup %5506 }
 0xb2f   :  { %v921_v27 = vadd.f32 1.0, %v5507_v26 }
 0xb31   :  { %5508 = vrcp.f32 %v921_v27  ;;  %v1355_v27 = vld [vmem:[%s7019_s1 + $0x18] sm:$0xff] }
 0xb3b   :  { %v5509_v28 = vpop.eup %5508 }
 0xb3c   :  { %v936_v36 = vsub.f32 1.0, %v5509_v28  ;;  %v942_v38 = vmul.f32 %v5509_v28, %v841_v19  ;;  %v1353_v19 = vld [vmem:[%s7019_s1 + $0x8] sm:$0xff] }
 0xb3d   :  { %v5289_v3 = vpack.c.bf16 %v1353_v19, %v1352_v18 }
 0xb94   :  { %v927_v29 = vpop.permute.xlu0 %926 }
 0xb95   :  { %v929_v31 = vmul.f32 %v5509_v28, %v927_v29 }
 0xb97   :  { %931 = vrot.lane.b32.xlu1 %v929_v31, %s5903_s17 }
 0xc09   :  { %v932_v32 = vpop.permute.xlu1 %931 }
 0xc0a   :  { %v934_v33 = vadd.f32 %v932_v32, %v6258_v1 }
 0xc0c   :  { %5510 = vtanh.f32 %v934_v33 }
 0xc16   :  { %v5511_v35 = vpop.eup %5510 }
 0xc17   :  { %938 = vrot.lane.b32.xlu0 %v5511_v35, %s5904_s12 }
 0xc89   :  { %v939_v37 = vpop.permute.xlu0 %938 }
 0xc8a   :  { %v941_v39 = vmul.f32 %v939_v37, %v936_v36 }
 0xc8c   :  { %v943_v40 = vadd.f32 %v942_v38, %v941_v39  ;;  %v536_v38 = vadd.f32 %v6270_v12, %v6268_v11 }
 0xc8e   :  { %945 = vrot.lane.b32.xlu1 %v943_v40, %s5904_s12 }
 0xd00   :  { %v6332_v41 = vpop.permute.xlu1 %945 }
 0xd01   :  { %4840 = vmatmul.mubr.msk.f32.vlgmr.msra.gmra.mrb[12].mxu1 %vm394_vm11, %v6332_v41 }
 0xd02   :  { %5279 = vmatpush3.bf16.msra.mxu1 %v6219_v48  ;;  %4861 = vmatprep.mubr.msk.f32.mxu1 %vm5902_vm10, %v5900_v30 }
 0xd03   :  { %5280 = vmatprep.subr.bf16.mxu1 %v5901_v45 }
 0xd06   :  { %5282 = vmatpush3.bf16.msra.mxu1 %v6229_v51 }
 0xd07   :  { %5290 = vmatprep.subr.bf16.mxu1 %v5289_v3 }
 0xdd4   :  { %v1015_v1 = vpop.f32.mrb[12].mxu1 }
 0xdd5   :  { %v1026_v42 = vadd.f32 %v6270_v12, %v1015_v1  ;;  %v4841_v43 = vpop.f32.mrb[13].mxu1  ;;  %v1019_v46 = vadd.f32 %v1015_v1, %v534_v44 }
 0xdd7   :  { %1028 = vrot.lane.b32.xlu0 %v1026_v42, %s5903_s17  ;;  %v4422_v47 = vmul.f32 -1.442695, %v1019_v46 }
 0xdd9   :  { %5512 = vpow2.f32 %v4422_v47 }
 0xde3   :  { %v5513_v49 = vpop.eup %5512 }
 0xde4   :  { %v1023_v50 = vadd.f32 1.0, %v5513_v49 }
 0xde6   :  { %5514 = vrcp.f32 %v1023_v50  ;;  %v1356_v50 = vld [vmem:[%s6983_s7] sm:$0xff] }
 0xdf0   :  { %v5515_v52 = vpop.eup %5514 }
 0xdf1   :  { %v1038_v59 = vsub.f32 1.0, %v5515_v52  ;;  %v1044_v61 = vmul.f32 %v5515_v52, %v943_v40 }
 0xe49   :  { %v1029_v53 = vpop.permute.xlu0 %1028 }
 0xe4a   :  { %v1031_v54 = vmul.f32 %v5515_v52, %v1029_v53  ;;  %v1357_v52 = vld [vmem:[%s6983_s7 + $0x8] sm:$0xff] }
 0xe4b   :  { %v6411_v53 = vpack.c.bf16 %v1357_v52, %v1356_v50 }
 0xe4c   :  { %1033 = vrot.lane.b32.xlu1 %v1031_v54, %s5903_s17  ;;  %v1359_v54 = vld [vmem:[%s6983_s7 + $0x18] sm:$0xff] }
 0xebe   :  { %v1034_v55 = vpop.permute.xlu1 %1033 }
 0xebf   :  { %v1036_v56 = vadd.f32 %v1034_v55, %v6264_v7 }
 0xec1   :  { %5516 = vtanh.f32 %v1036_v56 }
 0xecb   :  { %v5517_v58 = vpop.eup %5516 }
 0xecc   :  { %1040 = vrot.lane.b32.xlu0 %v5517_v58, %s5904_s12 }
 0xf3e   :  { %v1041_v60 = vpop.permute.xlu0 %1040 }
 0xf3f   :  { %v1043_v62 = vmul.f32 %v1041_v60, %v1038_v59 }
 0xf41   :  { %v1045_v63 = vadd.f32 %v1044_v61, %v1043_v62 }
 0xf43   :  { %1047 = vrot.lane.b32.xlu1 %v1045_v63, %s5904_s12 }
 0xfb5   :  { %v1048_v0 = vpop.permute.xlu1 %1047 }
 0xfb6   :  { %4851 = vmatmul.mubr.msk.f32.vlgmr.msra.gmra.mrb[12].mxu0 %vm394_vm11, %v1048_v0 }
 0xfb7   :  { %5285 = vmatpush3.bf16.msra.mxu0 %v6219_v48  ;;  %4872 = vmatprep.mubr.msk.f32.mxu0 %vm5902_vm10, %v5900_v30 }
 0xfb8   :  { %5286 = vmatprep.subr.bf16.mxu0 %v5901_v45 }
 0xfbb   :  { %5288 = vmatpush3.bf16.msra.mxu0 %v6229_v51 }
 0xfbc   :  { %5297 = vmatprep.subr.bf16.mxu0 %v5901_v45 }
0x1089   :  { %v1117_v7 = vpop.f32.mrb[12].mxu0 }
0x108a   :  { %v1128_v2 = vadd.f32 %v6270_v12, %v1117_v7  ;;  %v4852_v4 = vpop.f32.mrb[13].mxu0  ;;  %v1121_v8 = vadd.f32 %v1117_v7, %v535_v6  ;;  %v6444_v7 = vld [vmem:[#allocation8] ss:$0 sm:$0xff] }
0x108c   :  { %1130 = vrot.lane.b32.xlu0 %v1128_v2, %s5903_s17  ;;  %v4424_v48 = vmul.f32 -1.442695, %v1121_v8  ;;  %v6448_v8 = vld [vmem:[#allocation7] ss:$0 sm:$0xff] }
0x108e   :  { %5518 = vpow2.f32 %v4424_v48 }
0x1098   :  { %v5519_v10 = vpop.eup %5518 }
0x1099   :  { %v1125_v13 = vadd.f32 1.0, %v5519_v10 }
0x109b   :  { %5520 = vrcp.f32 %v1125_v13 }
0x10a5   :  { %v5521_v14 = vpop.eup %5520 }
0x10a6   :  { %v1140_v22 = vsub.f32 1.0, %v5521_v14  ;;  %v1146_v24 = vmul.f32 %v5521_v14, %v1045_v63 }
0x10fe   :  { %v1131_v15 = vpop.permute.xlu0 %1130 }
0x10ff   :  { %v1133_v51 = vmul.f32 %v5521_v14, %v1131_v15 }
0x1101   :  { %1135 = vrot.lane.b32.xlu1 %v1133_v51, %s5903_s17 }
0x1173   :  { %v1136_v16 = vpop.permute.xlu1 %1135 }
0x1174   :  { %v1138_v17 = vadd.f32 %v1136_v16, %v6262_v5  ;;  %v1354_v5 = vld [vmem:[%s7019_s1 + $0x10] sm:$0xff] }
0x1175   :  { %v5293_v28 = vpack.c.bf16 %v1355_v27, %v1354_v5 }
0x1176   :  { %5522 = vtanh.f32 %v1138_v17 }
0x1180   :  { %v5523_v21 = vpop.eup %5522 }
0x1181   :  { %1142 = vrot.lane.b32.xlu0 %v5523_v21, %s5904_s12 }
0x11f3   :  { %v1143_v23 = vpop.permute.xlu0 %1142 }
0x11f4   :  { %v1145_v25 = vmul.f32 %v1143_v23, %v1140_v22  ;;  %v537_v23 = vadd.f32 %v6270_v12, %v6266_v9 }
0x11f6   :  { %v1147_v26 = vadd.f32 %v1146_v24, %v1145_v25 }
0x11f8   :  { %1149 = vrot.lane.b32.xlu1 %v1147_v26, %s5904_s12 }
0x126a   :  { %v1150_v29 = vpop.permute.xlu1 %1149 }
0x126b   :  { %4862 = vmatmul.mubr.msk.f32.vlgmr.msra.gmra.mrb[14].mxu1 %vm394_vm11, %v1150_v29 }
0x126c   :  { %5292 = vmatpush3.bf16.msra.mxu1 %v5289_v3  ;;  %4883 = vmatprep.mubr.msk.f32.mxu1 %vm394_vm11, %v6278_v34 }
0x126d   :  { %5294 = vmatprep.subr.bf16.mxu1 %v5293_v28 }
0x1270   :  { %5296 = vmatpush3.bf16.msra.mxu1 %v5293_v28 }
0x1271   :  { %5309 = vmatprep.subr.bf16.mxu1 %v5901_v45 }
0x1273   :  { %4884 = vmatmul.mubr.msk.f32.vlgmr.msra.gmra.mrb[16].mxu1 %vm394_vm11, %v6296_v57 }
0x1274   :  { %4886 = vmatprep.mubr.msk.f32.mxu1 %vm394_vm11, %v6314_v20  ;;  %5311 = vmatpush3.bf16.msra.mxu1 %v6411_v53 }
0x1275   :  { %5312 = vmatprep.subr.bf16.mxu1 %v5901_v45 }
0x1277   :  { %4887 = vmatmul.mubr.msk.f32.gmra.mrb[18].mxu1 %vm394_vm11, %v6332_v41 }
0x1278   :  { %4889 = vmatprep.mubr.msk.f32.mxu1 %vm394_vm11, %v1048_v0 }
0x127b   :  { %4890 = vmatmul.mubr.msk.f32.gmra.mrb[20].mxu1 %vm394_vm11, %v1150_v29 }
0x133e   :  { %v1219_v31 = vpop.f32.mrb[14].mxu1 }
0x133f   :  { %v1230_v34 = vadd.f32 %v6270_v12, %v1219_v31  ;;  %v4863_v32 = vpop.f32.mrb[15].mxu1  ;;  %v1223_v39 = vadd.f32 %v1219_v31, %v536_v38 }
0x1341   :  { %1232 = vrot.lane.b32.xlu0 %v1230_v34, %s5903_s17  ;;  %v4426_v40 = vmul.f32 -1.442695, %v1223_v39 }
0x1343   :  { %5524 = vpow2.f32 %v4426_v40 }
0x1346   :  { %v6390_v33 = vpop.f32.mrb[16].mxu1 }
0x1347   :  { %v1439_v35 = vpop.f32.mrb[17].mxu1  ;;  %v1445_v52 = vadd.f32 %v6390_v33, %v6448_v8 }
0x1348   :  { %v1440_v48 = vadd.f32 %v6448_v8, %v1439_v35 }
0x134a   :  { %v6392_v57 = vpop.f32.mrb[18].mxu1  ;;  %v1484_v10 = vadd.f32 %v6444_v7, %v1440_v48 }
0x134b   :  { %v6394_v36 = vpop.f32.mrb[19].mxu1 }
0x134d   :  { %v5525_v41 = vpop.eup %5524 }
0x134e   :  { %v6396_v20 = vpop.f32.mrb[20].mxu1  ;;  %v1227_v1 = vadd.f32 1.0, %v5525_v41 }
0x134f   :  { %v6398_v37 = vpop.f32.mrb[21].mxu1 }
0x1350   :  { %5526 = vrcp.f32 %v1227_v1 }
0x135a   :  { %v5527_v42 = vpop.eup %5526 }
0x135b   :  { %v1242_v56 = vsub.f32 1.0, %v5527_v42  ;;  %v1248_v59 = vmul.f32 %v5527_v42, %v1147_v26 }
0x13b3   :  { %v1233_v43 = vpop.permute.xlu0 %1232 }
0x13b4   :  { %v1235_v44 = vmul.f32 %v5527_v42, %v1233_v43 }
0x13b6   :  { %1237 = vrot.lane.b32.xlu1 %v1235_v44, %s5903_s17 }
0x1428   :  { %v1238_v46 = vpop.permute.xlu1 %1237 }
0x1429   :  { %v1240_v47 = vadd.f32 %v1238_v46, %v6268_v11  ;;  %v1358_v11 = vld [vmem:[%s6983_s7 + $0x10] sm:$0xff] }
0x142a   :  { %v6421_v55 = vpack.c.bf16 %v1359_v54, %v1358_v11  ;;  %v1485_v11 = vadd.f32 %v6444_v7, %v1445_v52 }
0x142b   :  { %5528 = vtanh.f32 %v1240_v47 }
0x142c   :  { %5314 = vmatpush3.bf16.msra.mxu1 %v6421_v55 }
0x142d   :  { %5321 = vmatprep.subr.bf16.mxu1 %v5901_v45 }
0x1435   :  { %v5529_v49 = vpop.eup %5528 }
0x1436   :  { %1244 = vrot.lane.b32.xlu0 %v5529_v49, %s5904_s12 }
0x14a8   :  { %v1245_v58 = vpop.permute.xlu0 %1244 }
0x14a9   :  { %v1247_v60 = vmul.f32 %v1245_v58, %v1242_v56 }
0x14ab   :  { %v6425_v61 = vadd.f32 %v1248_v59, %v1247_v60 }
0x14ad   :  { %1251 = vrot.lane.b32.xlu1 %v6425_v61, %s5904_s12 }
0x151f   :  { %v1252_v62 = vpop.permute.xlu1 %1251 }
0x1520   :  { %4873 = vmatmul.mubr.msk.f32.vlgmr.msra.gmra.mrb[14].mxu0 %vm394_vm11, %v1252_v62  ;;  %4892 = vmatprep.mubr.msk.f32.mxu1 %vm394_vm11, %v1252_v62 }
0x1521   :  { %5299 = vmatpush3.bf16.msra.mxu0 %v6411_v53  ;;  %4903 = vmatprep.mubr.msk.f32.mxu0 %vm5902_vm10, %v5900_v30 }
0x1522   :  { %5300 = vmatprep.subr.bf16.mxu0 %v5901_v45 }
0x1525   :  { %5302 = vmatpush3.bf16.msra.mxu0 %v6421_v55 }
0x1526   :  { %5303 = vmatprep.subr.bf16.mxu0 %v5901_v45 }
0x1528   :  { %4904 = vmatmul.mubr.f32.vlgmr.msra.gmra.mrb[16].mxu0 %v5900_v30 }
0x1529   :  { %5305 = vmatpush3.bf16.msra.mxu0 %v6411_v53  ;;  %4914 = vmatprep.mubr.msk.f32.mxu0 %vm5902_vm10, %v5900_v30 }
0x152a   :  { %5306 = vmatprep.subr.bf16.mxu0 %v5901_v45 }
0x152d   :  { %5308 = vmatpush3.bf16.msra.mxu0 %v6421_v55 }
0x152e   :  { %5315 = vmatprep.subr.bf16.mxu0 %v5901_v45 }
0x15f3   :  { %v1321_v63 = vpop.f32.mrb[14].mxu0 }
0x15f4   :  { %v4874_v0 = vpop.f32.mrb[15].mxu0  ;;  %v1332_v22 = vadd.f32 %v6270_v12, %v1321_v63  ;;  %v1325_v24 = vadd.f32 %v1321_v63, %v537_v23 }
0x15f6   :  { %v4428_v25 = vmul.f32 -1.442695, %v1325_v24 }
0x15fb   :  { %v1558_v2 = vpop.f32.mrb[16].mxu0 }
0x15fc   :  { %v1569_v4 = vadd.f32 %v6444_v7, %v1558_v2  ;;  %v4905_v6 = vpop.f32.mrb[17].mxu0  ;;  %v1562_v13 = vadd.f32 %v1558_v2, %v1484_v10 }
0x15fe   :  { %1571 = vrot.lane.b32.xlu0 %v1569_v4, %s5903_s17  ;;  %v4439_v14 = vmul.f32 -1.442695, %v1562_v13 }
0x1600   :  { %5530 = vpow2.f32 %v4439_v14 }
0x160a   :  { %v5531_v15 = vpop.eup %5530 }
0x160b   :  { %v1566_v51 = vadd.f32 1.0, %v5531_v15 }
0x160d   :  { %5532 = vrcp.f32 %v1566_v51 }
0x1617   :  { %v5533_v16 = vpop.eup %5532 }
0x1618   :  { %v1581_v27 = vsub.f32 1.0, %v5533_v16  ;;  %v1587_v29 = vmul.f32 0.0, %v5533_v16 }
0x1670   :  { %v1572_v17 = vpop.permute.xlu0 %1571 }
0x1671   :  { %v1574_v18 = vmul.f32 %v5533_v16, %v1572_v17 }
0x1673   :  { %1576 = vrot.lane.b32.xlu1 %v1574_v18, %s5903_s17  ;;  %v1450_v18 = vadd.f32 %v6448_v8, %v6394_v36 }
0x16e5   :  { %v1577_v19 = vpop.permute.xlu1 %1576 }
0x16e6   :  { %v1579_v3 = vadd.f32 %v1577_v19, %v1440_v48  ;;  %v1486_v19 = vadd.f32 %v6444_v7, %v1450_v18 }
0x16e8   :  { %5534 = vtanh.f32 %v1579_v3 }
0x16e9   :  { %5536 = vpow2.f32 %v4428_v25 }
0x16f2   :  { %v5535_v21 = vpop.eup %5534 }
0x16f3   :  { %1583 = vrot.lane.b32.xlu0 %v5535_v21, %s5904_s12  ;;  %v5537_v26 = vpop.eup %5536 }
0x16f4   :  { %v1329_v5 = vadd.f32 1.0, %v5537_v26 }
0x16f6   :  { %5538 = vrcp.f32 %v1329_v5 }
0x16f7   :  { %1334 = vrot.lane.b32.xlu0 %v1332_v22, %s5903_s17 }
0x1700   :  { %v5539_v32 = vpop.eup %5538 }
0x1701   :  { %v1344_v1 = vsub.f32 1.0, %v5539_v32  ;;  %v1350_v43 = vmul.f32 %v5539_v32, %v6425_v61 }
0x1765   :  { %v1584_v28 = vpop.permute.xlu0 %1583 }
0x1766   :  { %v1586_v31 = vmul.f32 %v1584_v28, %v1581_v27 }
0x1768   :  { %v1588_v34 = vadd.f32 %v1587_v29, %v1586_v31 }
0x1769   :  { %v1335_v35 = vpop.permute.xlu0 %1334 }
0x176a   :  { %v1337_v38 = vmul.f32 %v5539_v32, %v1335_v35  ;;  %1590 = vrot.lane.b32.xlu1 %v1588_v34, %s5904_s12 }
0x176c   :  { %1339 = vrot.lane.b32.xlu0 %v1337_v38, %s5903_s17 }
0x17dc   :  { %v6460_v39 = vpop.permute.xlu1 %1590 }
0x17dd   :  { %4915 = vmatmul.mubr.msk.f32.vlgmr.msra.gmra.mrb[18].mxu0 %vm394_vm11, %v6460_v39 }
0x17de   :  { %v1340_v12 = vpop.permute.xlu0 %1339  ;;  %5317 = vmatpush3.bf16.msra.mxu0 %v6411_v53  ;;  %4936 = vmatprep.mubr.msk.f32.mxu0 %vm5902_vm10, %v5900_v30 }
0x17df   :  { %v1342_v40 = vadd.f32 %v1340_v12, %v6266_v9  ;;  %5318 = vmatprep.subr.bf16.mxu0 %v5901_v45 }
0x17e1   :  { %5540 = vtanh.f32 %v1342_v40 }
0x17e2   :  { %5320 = vmatpush3.bf16.msra.mxu0 %v6421_v55 }
0x17e3   :  { %5327 = vmatprep.subr.bf16.mxu0 %v5901_v45 }
0x17eb   :  { %v5541_v41 = vpop.eup %5540 }
0x17ec   :  { %1346 = vrot.lane.b32.xlu0 %v5541_v41, %s5904_s12  ;;  %v1455_v41 = vadd.f32 %v6392_v57, %v6448_v8 }
0x185e   :  { %v1347_v42 = vpop.permute.xlu0 %1346 }
0x185f   :  { %v1349_v44 = vmul.f32 %v1347_v42, %v1344_v1  ;;  %v1487_v1 = vadd.f32 %v6444_v7, %v1455_v41 }
0x1861   :  { %v1351_v46 = vadd.f32 %v1350_v43, %v1349_v44 }
0x1863   :  { %1369 = vrot.lane.b32.xlu0 %v1351_v46, %s5904_s12 }
0x18b0   :  { %v1660_v47 = vpop.f32.mrb[18].mxu0 }
0x18b1   :  { %v1671_v9 = vadd.f32 %v6444_v7, %v1660_v47  ;;  %v4916_v49 = vpop.f32.mrb[19].mxu0  ;;  %v1664_v54 = vadd.f32 %v1660_v47, %v1485_v11 }
0x18b3   :  { %1673 = vrot.lane.b32.xlu1 %v1671_v9, %s5903_s17  ;;  %v4441_v56 = vmul.f32 -1.442695, %v1664_v54 }
0x18b5   :  { %5542 = vpow2.f32 %v4441_v56 }
0x18bf   :  { %v5543_v58 = vpop.eup %5542 }
0x18c0   :  { %v1668_v59 = vadd.f32 1.0, %v5543_v58 }
0x18c2   :  { %5544 = vrcp.f32 %v1668_v59 }
0x18cc   :  { %v5545_v60 = vpop.eup %5544 }
0x18cd   :  { %v1683_v6 = vsub.f32 1.0, %v5545_v60  ;;  %v1689_v10 = vmul.f32 %v5545_v60, %v1588_v34 }
0x18d5   :  { %v1370_v50 = vpop.permute.xlu0 %1369 }
0x18d6   :  { %4893 = vmatmul.mubr.msk.f32.gmra.mrb[22].mxu1 %vm394_vm11, %v1370_v50 }
0x18d7   :  { %4925 = vmatprep.mubr.msk.f32.mxu1 %vm5902_vm10, %v5900_v30 }
0x1925   :  { %v1674_v61 = vpop.permute.xlu1 %1673 }
0x1926   :  { %v1676_v62 = vmul.f32 %v5545_v60, %v1674_v61 }
0x1928   :  { %1678 = vrot.lane.b32.xlu1 %v1676_v62, %s5903_s17 }
0x199a   :  { %v1679_v63 = vpop.permute.xlu1 %1678 }
0x199b   :  { %v1681_v0 = vadd.f32 %v1679_v63, %v1445_v52 }
0x199d   :  { %5546 = vtanh.f32 %v1681_v0  ;;  %v1460_v0 = vadd.f32 %v6448_v8, %v6398_v37 }
0x19a7   :  { %v5547_v2 = vpop.eup %5546 }
0x19a8   :  { %1685 = vrot.lane.b32.xlu1 %v5547_v2, %s5904_s12  ;;  %v1488_v2 = vadd.f32 %v6444_v7, %v1460_v0 }
0x19a9   :  { %v6484_v33 = vpop.f32.mrb[22].mxu1 }
0x19aa   :  { %v6486_v4 = vpop.f32.mrb[23].mxu1 }
0x1a1a   :  { %v1686_v48 = vpop.permute.xlu1 %1685 }
0x1a1b   :  { %v1688_v13 = vmul.f32 %v1686_v48, %v1683_v6 }
0x1a1d   :  { %v1690_v14 = vadd.f32 %v1689_v10, %v1688_v13 }
0x1a1f   :  { %1692 = vrot.lane.b32.xlu1 %v1690_v14, %s5904_s12 }
0x1a91   :  { %v6489_v15 = vpop.permute.xlu1 %1692 }
0x1a92   :  { %4926 = vmatmul.mubr.msk.f32.vlgmr.msra.gmra.mrb[24].mxu1 %vm394_vm11, %v6489_v15 }
0x1a93   :  { %5323 = vmatpush3.bf16.msra.mxu1 %v6411_v53  ;;  %4947 = vmatprep.mubr.msk.f32.mxu1 %vm5902_vm10, %v5900_v30 }
0x1a94   :  { %5324 = vmatprep.subr.bf16.mxu1 %v5901_v45 }
0x1a97   :  { %5326 = vmatpush3.bf16.msra.mxu1 %v6421_v55 }
0x1a98   :  { %5333 = vmatprep.subr.bf16.mxu1 %v5901_v45 }
0x1b65   :  { %v1762_v51 = vpop.f32.mrb[24].mxu1 }
0x1b66   :  { %v1773_v16 = vadd.f32 %v6444_v7, %v1762_v51  ;;  %v4927_v17 = vpop.f32.mrb[25].mxu1  ;;  %v1766_v3 = vadd.f32 %v1762_v51, %v1486_v19 }
0x1b68   :  { %1775 = vrot.lane.b32.xlu0 %v1773_v16, %s5903_s17  ;;  %v4443_v21 = vmul.f32 -1.442695, %v1766_v3 }
0x1b6a   :  { %5548 = vpow2.f32 %v4443_v21 }
0x1b74   :  { %v5549_v22 = vpop.eup %5548 }
0x1b75   :  { %v1770_v23 = vadd.f32 1.0, %v5549_v22 }
0x1b77   :  { %5550 = vrcp.f32 %v1770_v23 }
0x1b81   :  { %v5551_v24 = vpop.eup %5550 }
0x1b82   :  { %v1785_v36 = vsub.f32 1.0, %v5551_v24  ;;  %v1791_v31 = vmul.f32 %v5551_v24, %v1690_v14 }
0x1bda   :  { %v1776_v25 = vpop.permute.xlu0 %1775 }
0x1bdb   :  { %v1778_v26 = vmul.f32 %v5551_v24, %v1776_v25 }
0x1bdd   :  { %1780 = vrot.lane.b32.xlu1 %v1778_v26, %s5903_s17 }
0x1c4f   :  { %v1781_v5 = vpop.permute.xlu1 %1780 }
0x1c50   :  { %v1783_v27 = vadd.f32 %v1781_v5, %v1450_v18 }
0x1c52   :  { %5552 = vtanh.f32 %v1783_v27  ;;  %v1465_v27 = vadd.f32 %v6396_v20, %v6448_v8  ;;  %v2303_v20 = vld [vmem:[%s6986_s10] sm:$0xff] }
0x1c5c   :  { %v5553_v28 = vpop.eup %5552 }
0x1c5d   :  { %1787 = vrot.lane.b32.xlu0 %v5553_v28, %s5904_s12 }
0x1ccf   :  { %v1788_v29 = vpop.permute.xlu0 %1787 }
0x1cd0   :  { %v1790_v34 = vmul.f32 %v1788_v29, %v1785_v36 }
0x1cd2   :  { %v1792_v32 = vadd.f32 %v1791_v31, %v1790_v34 }
0x1cd4   :  { %1794 = vrot.lane.b32.xlu1 %v1792_v32, %s5904_s12 }
0x1d46   :  { %v6507_v35 = vpop.permute.xlu1 %1794 }
0x1d47   :  { %4937 = vmatmul.mubr.msk.f32.vlgmr.msra.gmra.mrb[20].mxu0 %vm394_vm11, %v6507_v35 }
0x1d48   :  { %5329 = vmatpush3.bf16.msra.mxu0 %v6411_v53  ;;  %4958 = vmatprep.mubr.msk.f32.mxu0 %vm5902_vm10, %v5900_v30 }
0x1d49   :  { %5330 = vmatprep.subr.bf16.mxu0 %v5901_v45 }
0x1d4c   :  { %5332 = vmatpush3.bf16.msra.mxu0 %v6421_v55 }
0x1d4d   :  { %5339 = vmatprep.subr.bf16.mxu0 %v5901_v45 }
0x1e1a   :  { %v1864_v38 = vpop.f32.mrb[20].mxu0 }
0x1e1b   :  { %v1875_v12 = vadd.f32 %v6444_v7, %v1864_v38  ;;  %v4938_v40 = vpop.f32.mrb[21].mxu0  ;;  %v1868_v42 = vadd.f32 %v1864_v38, %v1487_v1 }
0x1e1c   :  { %v2304_v40 = vld [vmem:[%s6986_s10 + $0x8] sm:$0xff] }
0x1e1d   :  { %1877 = vrot.lane.b32.xlu0 %v1875_v12, %s5903_s17  ;;  %v4445_v43 = vmul.f32 -1.442695, %v1868_v42 }
0x1e1f   :  { %5554 = vpow2.f32 %v4445_v43 }
0x1e29   :  { %v5555_v44 = vpop.eup %5554 }
0x1e2a   :  { %v1872_v46 = vadd.f32 1.0, %v5555_v44 }
0x1e2c   :  { %5556 = vrcp.f32 %v1872_v46 }
0x1e36   :  { %v5557_v47 = vpop.eup %5556 }
0x1e37   :  { %v1887_v57 = vsub.f32 1.0, %v5557_v47  ;;  %v1893_v56 = vmul.f32 %v5557_v47, %v1792_v32 }
0x1e8f   :  { %v1878_v9 = vpop.permute.xlu0 %1877 }
0x1e90   :  { %v1880_v49 = vmul.f32 %v5557_v47, %v1878_v9  ;;  %v2305_v9 = vld [vmem:[%s6986_s10 + $0x10] sm:$0xff] }
0x1e92   :  { %1882 = vrot.lane.b32.xlu1 %v1880_v49, %s5903_s17  ;;  %v2306_v49 = vld [vmem:[%s6986_s10 + $0x18] sm:$0xff] }
0x1f04   :  { %v1883_v50 = vpop.permute.xlu1 %1882 }
0x1f05   :  { %v1885_v52 = vadd.f32 %v1883_v50, %v1455_v41  ;;  %v5345_v41 = vpack.c.bf16 %v2304_v40, %v2303_v20  ;;  %v5349_v50 = vpack.c.bf16 %v2306_v49, %v2305_v9 }
0x1f07   :  { %5558 = vtanh.f32 %v1885_v52 }
0x1f11   :  { %v5559_v11 = vpop.eup %5558 }
0x1f12   :  { %1889 = vrot.lane.b32.xlu0 %v5559_v11, %s5904_s12 }
0x1f84   :  { %v1890_v54 = vpop.permute.xlu0 %1889 }
0x1f85   :  { %v1892_v58 = vmul.f32 %v1890_v54, %v1887_v57 }
0x1f87   :  { %v1894_v59 = vadd.f32 %v1893_v56, %v1892_v58 }
0x1f89   :  { %1896 = vrot.lane.b32.xlu1 %v1894_v59, %s5904_s12 }
0x1ffb   :  { %v6525_v60 = vpop.permute.xlu1 %1896 }
0x1ffc   :  { %4948 = vmatmul.mubr.msk.f32.vlgmr.msra.gmra.mrb[26].mxu1 %vm394_vm11, %v6525_v60 }
0x1ffd   :  { %5335 = vmatpush3.bf16.msra.mxu1 %v6411_v53  ;;  %4969 = vmatprep.mubr.msk.f32.mxu1 %vm5902_vm10, %v5900_v30 }
0x1ffe   :  { %5336 = vmatprep.subr.bf16.mxu1 %v5901_v45 }
0x2001   :  { %5338 = vmatpush3.bf16.msra.mxu1 %v6421_v55 }
0x2002   :  { %5346 = vmatprep.subr.bf16.mxu1 %v5345_v41 }
0x20cf   :  { %v1966_v61 = vpop.f32.mrb[26].mxu1 }
0x20d0   :  { %v1977_v62 = vadd.f32 %v6444_v7, %v1966_v61  ;;  %v4949_v63 = vpop.f32.mrb[27].mxu1  ;;  %v1970_v6 = vadd.f32 %v1966_v61, %v1488_v2 }
0x20d2   :  { %1979 = vrot.lane.b32.xlu0 %v1977_v62, %s5903_s17  ;;  %v4447_v48 = vmul.f32 -1.442695, %v1970_v6 }
0x20d4   :  { %5560 = vpow2.f32 %v4447_v48 }
0x20de   :  { %v5561_v10 = vpop.eup %5560 }
0x20df   :  { %v1974_v13 = vadd.f32 1.0, %v5561_v10 }
0x20e1   :  { %5562 = vrcp.f32 %v1974_v13 }
0x20eb   :  { %v5563_v14 = vpop.eup %5562 }
0x20ec   :  { %v1989_v37 = vsub.f32 1.0, %v5563_v14  ;;  %v1995_v21 = vmul.f32 %v5563_v14, %v1894_v59 }
0x2144   :  { %v1980_v51 = vpop.permute.xlu0 %1979 }
0x2145   :  { %v1982_v16 = vmul.f32 %v5563_v14, %v1980_v51 }
0x2147   :  { %1984 = vrot.lane.b32.xlu1 %v1982_v16, %s5903_s17  ;;  %v2308_v16 = vld [vmem:[%s6987_s11 + $0x8] sm:$0xff] }
0x21b9   :  { %v1985_v17 = vpop.permute.xlu1 %1984 }
0x21ba   :  { %v1987_v18 = vadd.f32 %v1985_v17, %v1460_v0 }
0x21bc   :  { %5564 = vtanh.f32 %v1987_v18  ;;  %v2309_v18 = vld [vmem:[%s6987_s11 + $0x10] sm:$0xff] }
0x21c6   :  { %v5565_v19 = vpop.eup %5564 }
0x21c7   :  { %1991 = vrot.lane.b32.xlu0 %v5565_v19, %s5904_s12  ;;  %v2310_v19 = vld [vmem:[%s6987_s11 + $0x18] sm:$0xff] }
0x2239   :  { %v1992_v3 = vpop.permute.xlu0 %1991 }
0x223a   :  { %v1994_v22 = vmul.f32 %v1992_v3, %v1989_v37  ;;  %v6614_v37 = vpack.c.bf16 %v2310_v19, %v2309_v18 }
0x223c   :  { %v1996_v23 = vadd.f32 %v1995_v21, %v1994_v22 }
0x223e   :  { %1998 = vrot.lane.b32.xlu1 %v1996_v23, %s5904_s12 }
0x22b0   :  { %v1999_v24 = vpop.permute.xlu1 %1998 }
0x22b1   :  { %4959 = vmatmul.mubr.msk.f32.vlgmr.msra.gmra.mrb[22].mxu0 %vm394_vm11, %v1999_v24 }
0x22b2   :  { %5341 = vmatpush3.bf16.msra.mxu0 %v6411_v53  ;;  %4980 = vmatprep.mubr.msk.f32.mxu0 %vm5902_vm10, %v5900_v30  ;;  %v1489_v53 = vadd.f32 %v6444_v7, %v1465_v27 }
0x22b3   :  { %5342 = vmatprep.subr.bf16.mxu0 %v5901_v45 }
0x22b6   :  { %5344 = vmatpush3.bf16.msra.mxu0 %v6421_v55 }
0x22b7   :  { %5353 = vmatprep.subr.bf16.mxu0 %v5901_v45 }
0x2384   :  { %v2068_v25 = vpop.f32.mrb[22].mxu0 }
0x2385   :  { %v2079_v26 = vadd.f32 %v6444_v7, %v2068_v25  ;;  %v4960_v5 = vpop.f32.mrb[23].mxu0  ;;  %v2072_v28 = vadd.f32 %v2068_v25, %v1489_v53 }
0x2387   :  { %2081 = vrot.lane.b32.xlu0 %v2079_v26, %s5903_s17  ;;  %v4449_v36 = vmul.f32 -1.442695, %v2072_v28 }
0x2389   :  { %5566 = vpow2.f32 %v4449_v36 }
0x2393   :  { %v5567_v29 = vpop.eup %5566 }
0x2394   :  { %v2076_v31 = vadd.f32 1.0, %v5567_v29  ;;  %v6641_v29 = vld [vmem:[#allocation10] ss:$0 sm:$0xff] }
0x2396   :  { %5568 = vrcp.f32 %v2076_v31 }
0x23a0   :  { %v5569_v55 = vpop.eup %5568 }
0x23a1   :  { %v2091_v42 = vsub.f32 1.0, %v5569_v55  ;;  %v2097_v44 = vmul.f32 %v5569_v55, %v1996_v23 }
0x23f9   :  { %v2082_v34 = vpop.permute.xlu0 %2081 }
0x23fa   :  { %v2084_v32 = vmul.f32 %v5569_v55, %v2082_v34 }
0x23fc   :  { %2086 = vrot.lane.b32.xlu1 %v2084_v32, %s5903_s17 }
0x246e   :  { %v2087_v38 = vpop.permute.xlu1 %2086 }
0x246f   :  { %v2089_v12 = vadd.f32 %v2087_v38, %v1465_v27  ;;  %v6637_v27 = vld [vmem:[#allocation11] ss:$0 sm:$0xff] }
0x2471   :  { %5570 = vtanh.f32 %v2089_v12 }
0x247b   :  { %v5571_v1 = vpop.eup %5570 }
0x247c   :  { %2093 = vrot.lane.b32.xlu0 %v5571_v1, %s5904_s12 }
0x24ee   :  { %v2094_v43 = vpop.permute.xlu0 %2093 }
0x24ef   :  { %v2096_v46 = vmul.f32 %v2094_v43, %v2091_v42 }
0x24f1   :  { %v2098_v47 = vadd.f32 %v2097_v44, %v2096_v46  ;;  %v1475_v46 = vadd.f32 %v6484_v33, %v6448_v8 }
0x24f3   :  { %2100 = vrot.lane.b32.xlu1 %v2098_v47, %s5904_s12 }
0x2565   :  { %v2101_v52 = vpop.permute.xlu1 %2100 }
0x2566   :  { %4970 = vmatmul.mubr.msk.f32.vlgmr.msra.gmra.mrb[28].mxu1 %vm394_vm11, %v2101_v52 }
0x2567   :  { %5348 = vmatpush3.bf16.msra.mxu1 %v5345_v41  ;;  %4991 = vmatprep.mubr.msk.f32.mxu1 %vm394_vm11, %v6460_v39 }
0x2568   :  { %5350 = vmatprep.subr.bf16.mxu1 %v5349_v50 }
0x256b   :  { %5352 = vmatpush3.bf16.msra.mxu1 %v5349_v50 }
0x256c   :  { %5365 = vmatprep.subr.bf16.mxu1 %v5901_v45 }
0x256e   :  { %4992 = vmatmul.mubr.msk.f32.vlgmr.msra.gmra.mrb[30].mxu1 %vm394_vm11, %v6489_v15 }
0x256f   :  { %4994 = vmatprep.mubr.msk.f32.mxu1 %vm394_vm11, %v6507_v35 }
0x2572   :  { %4995 = vmatmul.mubr.msk.f32.gmra.mrb[32].mxu1 %vm394_vm11, %v6525_v60  ;;  %v1470_v60 = vadd.f32 %v6448_v8, %v6486_v4  ;;  %v2307_v4 = vld [vmem:[%s6987_s11] sm:$0xff] }
0x2573   :  { %4997 = vmatprep.mubr.msk.f32.mxu1 %vm394_vm11, %v1999_v24  ;;  %v6604_v17 = vpack.c.bf16 %v2308_v16, %v2307_v4 }
0x2574   :  { %v1490_v61 = vadd.f32 %v6444_v7, %v1470_v60 }
0x2575   :  { %5367 = vmatpush3.bf16.msra.mxu1 %v6604_v17 }
0x2576   :  { %4998 = vmatmul.mubr.msk.f32.gmra.mrb[34].mxu1 %vm394_vm11, %v2101_v52  ;;  %5368 = vmatprep.subr.bf16.mxu1 %v5901_v45 }
0x2579   :  { %5370 = vmatpush3.bf16.msra.mxu1 %v6614_v37 }
0x257a   :  { %5377 = vmatprep.subr.bf16.mxu1 %v5901_v45 }
0x2639   :  { %v2170_v11 = vpop.f32.mrb[28].mxu1 }
0x263a   :  { %v2181_v39 = vadd.f32 %v6444_v7, %v2170_v11  ;;  %v4971_v57 = vpop.f32.mrb[29].mxu1  ;;  %v2174_v62 = vadd.f32 %v2170_v11, %v1490_v61 }
0x263c   :  { %2183 = vrot.lane.b32.xlu0 %v2181_v39, %s5903_s17  ;;  %v4451_v63 = vmul.f32 -1.442695, %v2174_v62 }
0x263e   :  { %5572 = vpow2.f32 %v4451_v63 }
0x2641   :  { %v6583_v54 = vpop.f32.mrb[30].mxu1 }
0x2642   :  { %v2390_v56 = vpop.f32.mrb[31].mxu1  ;;  %v2396_v18 = vadd.f32 %v6583_v54, %v6641_v29 }
0x2643   :  { %v2391_v31 = vadd.f32 %v6641_v29, %v2390_v56 }
0x2644   :  { %v2436_v19 = vadd.f32 %v6637_v27, %v2396_v18 }
0x2645   :  { %v6585_v15 = vpop.f32.mrb[32].mxu1  ;;  %v2435_v55 = vadd.f32 %v6637_v27, %v2391_v31 }
0x2646   :  { %v6587_v58 = vpop.f32.mrb[33].mxu1 }
0x2648   :  { %v5573_v0 = vpop.eup %5572 }
0x2649   :  { %v6589_v35 = vpop.f32.mrb[34].mxu1  ;;  %v2178_v2 = vadd.f32 1.0, %v5573_v0 }
0x264a   :  { %v6591_v59 = vpop.f32.mrb[35].mxu1 }
0x264b   :  { %5574 = vrcp.f32 %v2178_v2 }
0x2655   :  { %v5575_v6 = vpop.eup %5574 }
0x2656   :  { %v2193_v3 = vsub.f32 1.0, %v5575_v6  ;;  %v2199_v22 = vmul.f32 %v5575_v6, %v2098_v47  ;;  %v1491_v47 = vadd.f32 %v6444_v7, %v1475_v46 }
0x26ae   :  { %v2184_v48 = vpop.permute.xlu0 %2183 }
0x26af   :  { %v2186_v10 = vmul.f32 %v5575_v6, %v2184_v48 }
0x26b1   :  { %2188 = vrot.lane.b32.xlu1 %v2186_v10, %s5903_s17 }
0x2723   :  { %v2189_v13 = vpop.permute.xlu1 %2188 }
0x2724   :  { %v2191_v14 = vadd.f32 %v2189_v13, %v1470_v60 }
0x2726   :  { %5576 = vtanh.f32 %v2191_v14 }
0x2730   :  { %v5577_v51 = vpop.eup %5576 }
0x2731   :  { %2195 = vrot.lane.b32.xlu0 %v5577_v51, %s5904_s12 }
0x27a3   :  { %v2196_v21 = vpop.permute.xlu0 %2195 }
0x27a4   :  { %v2198_v23 = vmul.f32 %v2196_v21, %v2193_v3 }
0x27a6   :  { %v6618_v24 = vadd.f32 %v2199_v22, %v2198_v23 }
0x27a8   :  { %2202 = vrot.lane.b32.xlu1 %v6618_v24, %s5904_s12 }
0x281a   :  { %v2203_v25 = vpop.permute.xlu1 %2202 }
0x281b   :  { %4981 = vmatmul.mubr.msk.f32.vlgmr.msra.gmra.mrb[24].mxu0 %vm394_vm11, %v2203_v25  ;;  %5000 = vmatprep.mubr.msk.f32.mxu1 %vm394_vm11, %v2203_v25 }
0x281c   :  { %5355 = vmatpush3.bf16.msra.mxu0 %v6604_v17  ;;  %5011 = vmatprep.mubr.msk.f32.mxu0 %vm5902_vm10, %v5900_v30 }
0x281d   :  { %5356 = vmatprep.subr.bf16.mxu0 %v5901_v45 }
0x2820   :  { %5358 = vmatpush3.bf16.msra.mxu0 %v6614_v37 }
0x2821   :  { %5359 = vmatprep.subr.bf16.mxu0 %v5901_v45 }
0x2823   :  { %5012 = vmatmul.mubr.f32.vlgmr.msra.gmra.mrb[26].mxu0 %v5900_v30 }
0x2824   :  { %5361 = vmatpush3.bf16.msra.mxu0 %v6604_v17  ;;  %5022 = vmatprep.mubr.msk.f32.mxu0 %vm5902_vm10, %v5900_v30 }
0x2825   :  { %5362 = vmatprep.subr.bf16.mxu0 %v5901_v45 }
0x2828   :  { %5364 = vmatpush3.bf16.msra.mxu0 %v6614_v37 }
0x2829   :  { %5371 = vmatprep.subr.bf16.mxu0 %v5901_v45 }
0x28ee   :  { %v2272_v26 = vpop.f32.mrb[24].mxu0 }
0x28ef   :  { %v4982_v5 = vpop.f32.mrb[25].mxu0  ;;  %v2283_v44 = vadd.f32 %v6444_v7, %v2272_v26  ;;  %v2276_v9 = vadd.f32 %v2272_v26, %v1491_v47 }
0x28f1   :  { %v4453_v49 = vmul.f32 -1.442695, %v2276_v9 }
0x28f6   :  { %v2509_v53 = vpop.f32.mrb[26].mxu0 }
0x28f7   :  { %v2520_v28 = vadd.f32 %v6637_v27, %v2509_v53  ;;  %v5013_v36 = vpop.f32.mrb[27].mxu0  ;;  %v2513_v34 = vadd.f32 %v2509_v53, %v2435_v55 }
0x28f9   :  { %2522 = vrot.lane.b32.xlu0 %v2520_v28, %s5903_s17  ;;  %v4464_v32 = vmul.f32 -1.442695, %v2513_v34 }
0x28fb   :  { %5578 = vpow2.f32 %v4464_v32 }
0x2905   :  { %v5579_v38 = vpop.eup %5578 }
0x2906   :  { %v2517_v12 = vadd.f32 1.0, %v5579_v38 }
0x2908   :  { %5580 = vrcp.f32 %v2517_v12 }
0x2912   :  { %v5581_v20 = vpop.eup %5580 }
0x2913   :  { %v2532_v11 = vsub.f32 1.0, %v5581_v20  ;;  %v2538_v57 = vmul.f32 0.0, %v5581_v20 }
0x296b   :  { %v2523_v40 = vpop.permute.xlu0 %2522 }
0x296c   :  { %v2525_v41 = vmul.f32 %v5581_v20, %v2523_v40 }
0x296e   :  { %2527 = vrot.lane.b32.xlu1 %v2525_v41, %s5903_s17 }
0x29e0   :  { %v2528_v1 = vpop.permute.xlu1 %2527 }
0x29e1   :  { %v2530_v42 = vadd.f32 %v2528_v1, %v2391_v31  ;;  %v2401_v1 = vadd.f32 %v6641_v29, %v6587_v58 }
0x29e3   :  { %5582 = vtanh.f32 %v2530_v42  ;;  %v2437_v42 = vadd.f32 %v6637_v27, %v2401_v1 }
0x29e4   :  { %5584 = vpow2.f32 %v4453_v49 }
0x29ed   :  { %v5583_v43 = vpop.eup %5582 }
0x29ee   :  { %2534 = vrot.lane.b32.xlu0 %v5583_v43, %s5904_s12  ;;  %v5585_v50 = vpop.eup %5584 }
0x29ef   :  { %v2280_v52 = vadd.f32 1.0, %v5585_v50 }
0x29f1   :  { %5586 = vrcp.f32 %v2280_v52 }
0x29f2   :  { %2285 = vrot.lane.b32.xlu0 %v2283_v44, %s5903_s17 }
0x29fb   :  { %v5587_v61 = vpop.eup %5586 }
0x29fc   :  { %v2295_v2 = vsub.f32 1.0, %v5587_v61  ;;  %v2301_v48 = vmul.f32 %v5587_v61, %v6618_v24 }
0x2a60   :  { %v2535_v39 = vpop.permute.xlu0 %2534 }
0x2a61   :  { %v2537_v56 = vmul.f32 %v2535_v39, %v2532_v11 }
0x2a63   :  { %v2539_v60 = vadd.f32 %v2538_v57, %v2537_v56 }
0x2a64   :  { %v2286_v62 = vpop.permute.xlu0 %2285 }
0x2a65   :  { %v2288_v63 = vmul.f32 %v5587_v61, %v2286_v62  ;;  %2541 = vrot.lane.b32.xlu1 %v2539_v60, %s5904_s12 }
0x2a67   :  { %2290 = vrot.lane.b32.xlu0 %v2288_v63, %s5903_s17 }
0x2ad7   :  { %v6654_v8 = vpop.permute.xlu1 %2541 }
0x2ad8   :  { %5023 = vmatmul.mubr.msk.f32.vlgmr.msra.gmra.mrb[28].mxu0 %vm394_vm11, %v6654_v8 }
0x2ad9   :  { %v2291_v7 = vpop.permute.xlu0 %2290  ;;  %5373 = vmatpush3.bf16.msra.mxu0 %v6604_v17  ;;  %5044 = vmatprep.mubr.msk.f32.mxu0 %vm5902_vm10, %v5900_v30 }
0x2ada   :  { %v2293_v33 = vadd.f32 %v2291_v7, %v1475_v46  ;;  %5374 = vmatprep.subr.bf16.mxu0 %v5901_v45 }
0x2adc   :  { %5588 = vtanh.f32 %v2293_v33 }
0x2add   :  { %5376 = vmatpush3.bf16.msra.mxu0 %v6614_v37 }
0x2ade   :  { %5383 = vmatprep.subr.bf16.mxu0 %v5901_v45 }
0x2ae6   :  { %v5589_v0 = vpop.eup %5588 }
0x2ae7   :  { %2297 = vrot.lane.b32.xlu0 %v5589_v0, %s5904_s12  ;;  %v2406_v0 = vadd.f32 %v6585_v15, %v6641_v29 }
0x2b59   :  { %v2298_v6 = vpop.permute.xlu0 %2297 }
0x2b5a   :  { %v2300_v10 = vmul.f32 %v2298_v6, %v2295_v2  ;;  %v2438_v2 = vadd.f32 %v6637_v27, %v2406_v0 }
0x2b5c   :  { %v2302_v13 = vadd.f32 %v2301_v48, %v2300_v10 }
0x2b5e   :  { %2320 = vrot.lane.b32.xlu0 %v2302_v13, %s5904_s12 }
0x2bab   :  { %v2611_v14 = vpop.f32.mrb[28].mxu0 }
0x2bac   :  { %v2622_v51 = vadd.f32 %v6637_v27, %v2611_v14  ;;  %v5024_v4 = vpop.f32.mrb[29].mxu0  ;;  %v2615_v3 = vadd.f32 %v2611_v14, %v2436_v19 }
0x2bae   :  { %2624 = vrot.lane.b32.xlu1 %v2622_v51, %s5903_s17  ;;  %v4466_v21 = vmul.f32 -1.442695, %v2615_v3 }
0x2bb0   :  { %5590 = vpow2.f32 %v4466_v21 }
0x2bba   :  { %v5591_v22 = vpop.eup %5590 }
0x2bbb   :  { %v2619_v23 = vadd.f32 1.0, %v5591_v22 }
0x2bbd   :  { %5592 = vrcp.f32 %v2619_v23 }
0x2bc7   :  { %v5593_v24 = vpop.eup %5592 }
0x2bc8   :  { %v2634_v31 = vsub.f32 1.0, %v5593_v24  ;;  %v2640_v34 = vmul.f32 %v5593_v24, %v2539_v60 }
0x2bd0   :  { %v2321_v16 = vpop.permute.xlu0 %2320 }
0x2bd1   :  { %5001 = vmatmul.mubr.msk.f32.gmra.mrb[36].mxu1 %vm394_vm11, %v2321_v16 }
0x2bd2   :  { %5033 = vmatprep.mubr.msk.f32.mxu1 %vm5902_vm10, %v5900_v30 }
0x2c20   :  { %v2625_v25 = vpop.permute.xlu1 %2624 }
0x2c21   :  { %v2627_v26 = vmul.f32 %v5593_v24, %v2625_v25 }
0x2c23   :  { %2629 = vrot.lane.b32.xlu1 %v2627_v26, %s5903_s17 }
0x2c95   :  { %v2630_v5 = vpop.permute.xlu1 %2629 }
0x2c96   :  { %v2632_v53 = vadd.f32 %v2630_v5, %v2396_v18 }
0x2c98   :  { %5594 = vtanh.f32 %v2632_v53  ;;  %v2411_v53 = vadd.f32 %v6641_v29, %v6591_v59 }
0x2ca2   :  { %v5595_v28 = vpop.eup %5594 }
0x2ca3   :  { %2636 = vrot.lane.b32.xlu1 %v5595_v28, %s5904_s12  ;;  %v2439_v28 = vadd.f32 %v6637_v27, %v2411_v53 }
0x2ca4   :  { %v6677_v54 = vpop.f32.mrb[36].mxu1 }
0x2ca5   :  { %v6679_v36 = vpop.f32.mrb[37].mxu1 }
0x2d15   :  { %v2637_v55 = vpop.permute.xlu1 %2636 }
0x2d16   :  { %v2639_v32 = vmul.f32 %v2637_v55, %v2634_v31 }
0x2d18   :  { %v2641_v38 = vadd.f32 %v2640_v34, %v2639_v32 }
0x2d1a   :  { %2643 = vrot.lane.b32.xlu1 %v2641_v38, %s5904_s12 }
0x2d8c   :  { %v6682_v12 = vpop.permute.xlu1 %2643 }
0x2d8d   :  { %5034 = vmatmul.mubr.msk.f32.vlgmr.msra.gmra.mrb[38].mxu1 %vm394_vm11, %v6682_v12 }
0x2d8e   :  { %5379 = vmatpush3.bf16.msra.mxu1 %v6604_v17  ;;  %5055 = vmatprep.mubr.msk.f32.mxu1 %vm5902_vm10, %v5900_v30 }
0x2d8f   :  { %5380 = vmatprep.subr.bf16.mxu1 %v5901_v45 }
0x2d92   :  { %5382 = vmatpush3.bf16.msra.mxu1 %v6614_v37 }
0x2d93   :  { %5389 = vmatprep.subr.bf16.mxu1 %v5901_v45 }
0x2e60   :  { %v2713_v20 = vpop.f32.mrb[38].mxu1 }
0x2e61   :  { %v2724_v40 = vadd.f32 %v6637_v27, %v2713_v20  ;;  %v5035_v41 = vpop.f32.mrb[39].mxu1  ;;  %v2717_v43 = vadd.f32 %v2713_v20, %v2437_v42 }
0x2e63   :  { %2726 = vrot.lane.b32.xlu0 %v2724_v40, %s5903_s17  ;;  %v4468_v44 = vmul.f32 -1.442695, %v2717_v43 }
0x2e65   :  { %5596 = vpow2.f32 %v4468_v44 }
0x2e6f   :  { %v5597_v46 = vpop.eup %5596 }
0x2e70   :  { %v2721_v47 = vadd.f32 1.0, %v5597_v46 }
0x2e72   :  { %5598 = vrcp.f32 %v2721_v47 }
0x2e7c   :  { %v5599_v9 = vpop.eup %5598 }
0x2e7d   :  { %v2736_v58 = vsub.f32 1.0, %v5599_v9  ;;  %v2742_v56 = vmul.f32 %v5599_v9, %v2641_v38 }
0x2ed5   :  { %v2727_v49 = vpop.permute.xlu0 %2726 }
0x2ed6   :  { %v2729_v50 = vmul.f32 %v5599_v9, %v2727_v49 }
0x2ed8   :  { %2731 = vrot.lane.b32.xlu1 %v2729_v50, %s5903_s17 }
0x2f4a   :  { %v2732_v52 = vpop.permute.xlu1 %2731 }
0x2f4b   :  { %v2734_v11 = vadd.f32 %v2732_v52, %v2401_v1 }
0x2f4d   :  { %5600 = vtanh.f32 %v2734_v11  ;;  %v2416_v11 = vadd.f32 %v6589_v35, %v6641_v29  ;;  %v3254_v35 = vld [vmem:[%s6990_s14] sm:$0xff] }
0x2f57   :  { %v5601_v39 = vpop.eup %5600 }
0x2f58   :  { %2738 = vrot.lane.b32.xlu0 %v5601_v39, %s5904_s12 }
0x2fca   :  { %v2739_v57 = vpop.permute.xlu0 %2738 }
0x2fcb   :  { %v2741_v60 = vmul.f32 %v2739_v57, %v2736_v58 }
0x2fcd   :  { %v2743_v61 = vadd.f32 %v2742_v56, %v2741_v60 }
0x2fcf   :  { %2745 = vrot.lane.b32.xlu1 %v2743_v61, %s5904_s12 }
0x3041   :  { %v6700_v62 = vpop.permute.xlu1 %2745 }
0x3042   :  { %5045 = vmatmul.mubr.msk.f32.vlgmr.msra.gmra.mrb[30].mxu0 %vm394_vm11, %v6700_v62 }
0x3043   :  { %5385 = vmatpush3.bf16.msra.mxu0 %v6604_v17  ;;  %5066 = vmatprep.mubr.msk.f32.mxu0 %vm5902_vm10, %v5900_v30 }
0x3044   :  { %5386 = vmatprep.subr.bf16.mxu0 %v5901_v45 }
0x3047   :  { %5388 = vmatpush3.bf16.msra.mxu0 %v6614_v37 }
0x3048   :  { %5395 = vmatprep.subr.bf16.mxu0 %v5901_v45 }
0x3115   :  { %v2815_v63 = vpop.f32.mrb[30].mxu0 }
0x3116   :  { %v2826_v7 = vadd.f32 %v6637_v27, %v2815_v63  ;;  %v5046_v33 = vpop.f32.mrb[31].mxu0  ;;  %v2819_v6 = vadd.f32 %v2815_v63, %v2438_v2 }
0x3117   :  { %v3255_v33 = vld [vmem:[%s6990_s14 + $0x8] sm:$0xff] }
0x3118   :  { %2828 = vrot.lane.b32.xlu0 %v2826_v7, %s5903_s17  ;;  %v4470_v48 = vmul.f32 -1.442695, %v2819_v6 }
0x311a   :  { %5602 = vpow2.f32 %v4470_v48 }
0x3124   :  { %v5603_v10 = vpop.eup %5602 }
0x3125   :  { %v2823_v13 = vadd.f32 1.0, %v5603_v10 }
0x3127   :  { %5604 = vrcp.f32 %v2823_v13 }
0x3131   :  { %v5605_v14 = vpop.eup %5604 }
0x3132   :  { %v2838_v15 = vsub.f32 1.0, %v5605_v14  ;;  %v2844_v21 = vmul.f32 %v5605_v14, %v2743_v61 }
0x318a   :  { %v2829_v51 = vpop.permute.xlu0 %2828 }
0x318b   :  { %v2831_v4 = vmul.f32 %v5605_v14, %v2829_v51  ;;  %v3256_v51 = vld [vmem:[%s6990_s14 + $0x10] sm:$0xff] }
0x318d   :  { %2833 = vrot.lane.b32.xlu1 %v2831_v4, %s5903_s17  ;;  %v3257_v4 = vld [vmem:[%s6990_s14 + $0x18] sm:$0xff] }
0x31ff   :  { %v2834_v16 = vpop.permute.xlu1 %2833 }
0x3200   :  { %v2836_v18 = vadd.f32 %v2834_v16, %v2406_v0  ;;  %v5401_v0 = vpack.c.bf16 %v3255_v33, %v3254_v35  ;;  %v5405_v16 = vpack.c.bf16 %v3257_v4, %v3256_v51 }
0x3202   :  { %5606 = vtanh.f32 %v2836_v18 }
0x320c   :  { %v5607_v19 = vpop.eup %5606 }
0x320d   :  { %2840 = vrot.lane.b32.xlu0 %v5607_v19, %s5904_s12 }
0x327f   :  { %v2841_v3 = vpop.permute.xlu0 %2840 }
0x3280   :  { %v2843_v22 = vmul.f32 %v2841_v3, %v2838_v15 }
0x3282   :  { %v2845_v23 = vadd.f32 %v2844_v21, %v2843_v22 }
0x3284   :  { %2847 = vrot.lane.b32.xlu1 %v2845_v23, %s5904_s12 }
0x32f6   :  { %v6718_v24 = vpop.permute.xlu1 %2847 }
0x32f7   :  { %5056 = vmatmul.mubr.msk.f32.vlgmr.msra.gmra.mrb[40].mxu1 %vm394_vm11, %v6718_v24 }
0x32f8   :  { %5391 = vmatpush3.bf16.msra.mxu1 %v6604_v17  ;;  %5077 = vmatprep.mubr.msk.f32.mxu1 %vm5902_vm10, %v5900_v30 }
0x32f9   :  { %5392 = vmatprep.subr.bf16.mxu1 %v5901_v45 }
0x32fc   :  { %5394 = vmatpush3.bf16.msra.mxu1 %v6614_v37 }
0x32fd   :  { %5402 = vmatprep.subr.bf16.mxu1 %v5401_v0 }
0x33ca   :  { %v2917_v25 = vpop.f32.mrb[40].mxu1 }
0x33cb   :  { %v2928_v26 = vadd.f32 %v6637_v27, %v2917_v25  ;;  %v5057_v5 = vpop.f32.mrb[41].mxu1  ;;  %v2921_v31 = vadd.f32 %v2917_v25, %v2439_v28 }
0x33cd   :  { %2930 = vrot.lane.b32.xlu0 %v2928_v26, %s5903_s17  ;;  %v4472_v55 = vmul.f32 -1.442695, %v2921_v31 }
0x33cf   :  { %5608 = vpow2.f32 %v4472_v55 }
0x33d9   :  { %v5609_v34 = vpop.eup %5608 }
0x33da   :  { %v2925_v32 = vadd.f32 1.0, %v5609_v34 }
0x33dc   :  { %5610 = vrcp.f32 %v2925_v32 }
0x33e6   :  { %v5611_v38 = vpop.eup %5610 }
0x33e7   :  { %v2940_v59 = vsub.f32 1.0, %v5611_v38  ;;  %v2946_v44 = vmul.f32 %v5611_v38, %v2845_v23 }
0x343f   :  { %v2931_v20 = vpop.permute.xlu0 %2930 }
0x3440   :  { %v2933_v40 = vmul.f32 %v5611_v38, %v2931_v20 }
0x3442   :  { %2935 = vrot.lane.b32.xlu1 %v2933_v40, %s5903_s17  ;;  %v3259_v40 = vld [vmem:[#allocation13 + $0x8] sm:$0xff] }
0x34b4   :  { %v2936_v41 = vpop.permute.xlu1 %2935 }
0x34b5   :  { %v2938_v1 = vadd.f32 %v2936_v41, %v2411_v53 }
0x34b7   :  { %5612 = vtanh.f32 %v2938_v1  ;;  %v3260_v1 = vld [vmem:[#allocation13 + $0x10] sm:$0xff] }
0x34c1   :  { %v5613_v42 = vpop.eup %5612 }
0x34c2   :  { %2942 = vrot.lane.b32.xlu0 %v5613_v42, %s5904_s12  ;;  %v3261_v42 = vld [vmem:[#allocation13 + $0x18] sm:$0xff] }
0x3534   :  { %v2943_v43 = vpop.permute.xlu0 %2942 }
0x3535   :  { %v2945_v46 = vmul.f32 %v2943_v43, %v2940_v59  ;;  %v6795_v59 = vpack.c.bf16 %v3261_v42, %v3260_v1 }
0x3537   :  { %v2947_v47 = vadd.f32 %v2946_v44, %v2945_v46 }
0x3539   :  { %2949 = vrot.lane.b32.xlu1 %v2947_v47, %s5904_s12 }
0x35ab   :  { %v2950_v9 = vpop.permute.xlu1 %2949 }
0x35ac   :  { %5067 = vmatmul.mubr.msk.f32.vlgmr.msra.gmra.mrb[32].mxu0 %vm394_vm11, %v2950_v9 }
0x35ad   :  { %5397 = vmatpush3.bf16.msra.mxu0 %v6604_v17  ;;  %5088 = vmatprep.mubr.msk.f32.mxu0 %vm5902_vm10, %v5900_v30  ;;  %v2440_v17 = vadd.f32 %v6637_v27, %v2416_v11 }
0x35ae   :  { %5398 = vmatprep.subr.bf16.mxu0 %v5901_v45 }
0x35b1   :  { %5400 = vmatpush3.bf16.msra.mxu0 %v6614_v37 }
0x35b2   :  { %5409 = vmatprep.subr.bf16.mxu0 %v5901_v45 }
0x367f   :  { %v3019_v49 = vpop.f32.mrb[32].mxu0 }
0x3680   :  { %v3030_v50 = vadd.f32 %v6637_v27, %v3019_v49  ;;  %v5068_v52 = vpop.f32.mrb[33].mxu0  ;;  %v3023_v39 = vadd.f32 %v3019_v49, %v2440_v17 }
0x3682   :  { %3032 = vrot.lane.b32.xlu0 %v3030_v50, %s5903_s17  ;;  %v4474_v58 = vmul.f32 -1.442695, %v3023_v39 }
0x3684   :  { %5614 = vpow2.f32 %v4474_v58 }
0x368e   :  { %v5615_v57 = vpop.eup %5614 }
0x368f   :  { %v3027_v56 = vadd.f32 1.0, %v5615_v57  ;;  %v6822_v57 = vld [vmem:[#allocation14] ss:$0 sm:$0xff] }
0x3691   :  { %5616 = vrcp.f32 %v3027_v56 }
0x369b   :  { %v5617_v37 = vpop.eup %5616 }
0x369c   :  { %v3042_v6 = vsub.f32 1.0, %v5617_v37  ;;  %v3048_v10 = vmul.f32 %v5617_v37, %v2947_v47 }
0x36f4   :  { %v3033_v60 = vpop.permute.xlu0 %3032 }
0x36f5   :  { %v3035_v61 = vmul.f32 %v5617_v37, %v3033_v60 }
0x36f7   :  { %3037 = vrot.lane.b32.xlu1 %v3035_v61, %s5903_s17 }
0x3769   :  { %v3038_v63 = vpop.permute.xlu1 %3037 }
0x376a   :  { %v3040_v7 = vadd.f32 %v3038_v63, %v2416_v11  ;;  %v6818_v11 = vld [vmem:[#allocation16] ss:$0 sm:$0xff] }
0x376c   :  { %5618 = vtanh.f32 %v3040_v7 }
0x3776   :  { %v5619_v2 = vpop.eup %5618 }
0x3777   :  { %3044 = vrot.lane.b32.xlu0 %v5619_v2, %s5904_s12 }
0x37e9   :  { %v3045_v48 = vpop.permute.xlu0 %3044 }
0x37ea   :  { %v3047_v13 = vmul.f32 %v3045_v48, %v3042_v6 }
0x37ec   :  { %v3049_v14 = vadd.f32 %v3048_v10, %v3047_v13  ;;  %v2426_v13 = vadd.f32 %v6677_v54, %v6641_v29 }
0x37ee   :  { %3051 = vrot.lane.b32.xlu1 %v3049_v14, %s5904_s12 }
0x3860   :  { %v3052_v18 = vpop.permute.xlu1 %3051 }
0x3861   :  { %5078 = vmatmul.mubr.msk.f32.vlgmr.msra.gmra.mrb[42].mxu1 %vm394_vm11, %v3052_v18 }
0x3862   :  { %5404 = vmatpush3.bf16.msra.mxu1 %v5401_v0  ;;  %5099 = vmatprep.mubr.msk.f32.mxu1 %vm394_vm11, %v6654_v8 }
0x3863   :  { %5406 = vmatprep.subr.bf16.mxu1 %v5405_v16 }
0x3866   :  { %5408 = vmatpush3.bf16.msra.mxu1 %v5405_v16 }
0x3867   :  { %5421 = vmatprep.subr.bf16.mxu1 %v5901_v45 }
0x3869   :  { %5100 = vmatmul.mubr.msk.f32.vlgmr.msra.gmra.mrb[44].mxu1 %vm394_vm11, %v6682_v12 }
0x386a   :  { %5102 = vmatprep.mubr.msk.f32.mxu1 %vm394_vm11, %v6700_v62 }
0x386d   :  { %5103 = vmatmul.mubr.msk.f32.gmra.mrb[46].mxu1 %vm394_vm11, %v6718_v24  ;;  %v2421_v24 = vadd.f32 %v6641_v29, %v6679_v36  ;;  %v3258_v36 = vld [vmem:[#allocation13] sm:$0xff] }
0x386e   :  { %5105 = vmatprep.mubr.msk.f32.mxu1 %vm394_vm11, %v2950_v9  ;;  %v6791_v41 = vpack.c.bf16 %v3259_v40, %v3258_v36 }
0x386f   :  { %v2441_v25 = vadd.f32 %v6637_v27, %v2421_v24 }
0x3870   :  { %5423 = vmatpush3.bf16.msra.mxu1 %v6791_v41 }
0x3871   :  { %5106 = vmatmul.mubr.msk.f32.gmra.mrb[48].mxu1 %vm394_vm11, %v3052_v18  ;;  %5424 = vmatprep.subr.bf16.mxu1 %v5901_v45 }
0x3874   :  { %5426 = vmatpush3.bf16.msra.mxu1 %v6795_v59 }
0x3875   :  { %5433 = vmatprep.subr.bf16.mxu1 %v5901_v45 }
0x3934   :  { %v3121_v19 = vpop.f32.mrb[42].mxu1 }
0x3935   :  { %v3132_v8 = vadd.f32 %v6637_v27, %v3121_v19  ;;  %v5079_v15 = vpop.f32.mrb[43].mxu1  ;;  %v3125_v26 = vadd.f32 %v3121_v19, %v2441_v25 }
0x3937   :  { %3134 = vrot.lane.b32.xlu0 %v3132_v8, %s5903_s17  ;;  %v4476_v5 = vmul.f32 -1.442695, %v3125_v26 }
0x3939   :  { %5620 = vpow2.f32 %v4476_v5 }
0x393c   :  { %v6776_v3 = vpop.f32.mrb[44].mxu1 }
0x393d   :  { %v3341_v21 = vpop.f32.mrb[45].mxu1  ;;  %v3347_v1 = vadd.f32 %v6776_v3, %v6822_v57 }
0x393e   :  { %v3342_v56 = vadd.f32 %v6822_v57, %v3341_v21 }
0x393f   :  { %v3387_v42 = vadd.f32 %v6818_v11, %v3347_v1 }
0x3940   :  { %v6778_v12 = vpop.f32.mrb[46].mxu1  ;;  %v3386_v37 = vadd.f32 %v6818_v11, %v3342_v56 }
0x3941   :  { %v6780_v22 = vpop.f32.mrb[47].mxu1 }
0x3943   :  { %v5621_v53 = vpop.eup %5620 }
0x3944   :  { %v6782_v62 = vpop.f32.mrb[48].mxu1  ;;  %v3129_v28 = vadd.f32 1.0, %v5621_v53 }
0x3945   :  { %v6784_v23 = vpop.f32.mrb[49].mxu1 }
0x3946   :  { %5622 = vrcp.f32 %v3129_v28 }
0x3950   :  { %v5623_v31 = vpop.eup %5622 }
0x3951   :  { %v3144_v43 = vsub.f32 1.0, %v5623_v31  ;;  %v3150_v46 = vmul.f32 %v5623_v31, %v3049_v14  ;;  %v2442_v14 = vadd.f32 %v6637_v27, %v2426_v13 }
0x39a9   :  { %v3135_v55 = vpop.permute.xlu0 %3134 }
0x39aa   :  { %v3137_v34 = vmul.f32 %v5623_v31, %v3135_v55 }
0x39ac   :  { %3139 = vrot.lane.b32.xlu1 %v3137_v34, %s5903_s17 }
0x3a1e   :  { %v3140_v32 = vpop.permute.xlu1 %3139 }
0x3a1f   :  { %v3142_v38 = vadd.f32 %v3140_v32, %v2421_v24 }
0x3a21   :  { %5624 = vtanh.f32 %v3142_v38 }
0x3a2b   :  { %v5625_v20 = vpop.eup %5624 }
0x3a2c   :  { %3146 = vrot.lane.b32.xlu0 %v5625_v20, %s5904_s12 }
0x3a9e   :  { %v3147_v44 = vpop.permute.xlu0 %3146 }
0x3a9f   :  { %v3149_v47 = vmul.f32 %v3147_v44, %v3144_v43 }
0x3aa1   :  { %v6799_v9 = vadd.f32 %v3150_v46, %v3149_v47 }
0x3aa3   :  { %3153 = vrot.lane.b32.xlu1 %v6799_v9, %s5904_s12 }
0x3b15   :  { %v3154_v49 = vpop.permute.xlu1 %3153 }
0x3b16   :  { %5089 = vmatmul.mubr.msk.f32.vlgmr.msra.gmra.mrb[34].mxu0 %vm394_vm11, %v3154_v49  ;;  %5108 = vmatprep.mubr.msk.f32.mxu1 %vm394_vm11, %v3154_v49 }
0x3b17   :  { %5411 = vmatpush3.bf16.msra.mxu0 %v6791_v41  ;;  %5119 = vmatprep.mubr.msk.f32.mxu0 %vm5902_vm10, %v5900_v30 }
0x3b18   :  { %5412 = vmatprep.subr.bf16.mxu0 %v5901_v45 }
0x3b1b   :  { %5414 = vmatpush3.bf16.msra.mxu0 %v6795_v59 }
0x3b1c   :  { %5415 = vmatprep.subr.bf16.mxu0 %v5901_v45 }
0x3b1e   :  { %5120 = vmatmul.mubr.f32.vlgmr.msra.gmra.mrb[36].mxu0 %v5900_v30 }
0x3b1f   :  { %5417 = vmatpush3.bf16.msra.mxu0 %v6791_v41  ;;  %5130 = vmatprep.mubr.msk.f32.mxu0 %vm5902_vm10, %v5900_v30 }
0x3b20   :  { %5418 = vmatprep.subr.bf16.mxu0 %v5901_v45 }
0x3b23   :  { %5420 = vmatpush3.bf16.msra.mxu0 %v6795_v59 }
0x3b24   :  { %5427 = vmatprep.subr.bf16.mxu0 %v5901_v45 }
0x3be9   :  { %v3223_v50 = vpop.f32.mrb[34].mxu0 }
0x3bea   :  { %v5090_v52 = vpop.f32.mrb[35].mxu0  ;;  %v3234_v10 = vadd.f32 %v6637_v27, %v3223_v50  ;;  %v3227_v51 = vadd.f32 %v3223_v50, %v2442_v14 }
0x3bec   :  { %v4478_v4 = vmul.f32 -1.442695, %v3227_v51 }
0x3bf1   :  { %v3460_v17 = vpop.f32.mrb[36].mxu0 }
0x3bf2   :  { %v3471_v39 = vadd.f32 %v6818_v11, %v3460_v17  ;;  %v5121_v58 = vpop.f32.mrb[37].mxu0  ;;  %v3464_v60 = vadd.f32 %v3460_v17, %v3386_v37 }
0x3bf4   :  { %3473 = vrot.lane.b32.xlu0 %v3471_v39, %s5903_s17  ;;  %v4489_v61 = vmul.f32 -1.442695, %v3464_v60 }
0x3bf6   :  { %5626 = vpow2.f32 %v4489_v61 }
0x3c00   :  { %v5627_v63 = vpop.eup %5626 }
0x3c01   :  { %v3468_v7 = vadd.f32 1.0, %v5627_v63 }
0x3c03   :  { %5628 = vrcp.f32 %v3468_v7 }
0x3c0d   :  { %v5629_v35 = vpop.eup %5628 }
0x3c0e   :  { %v3483_v19 = vsub.f32 1.0, %v5629_v35  ;;  %v3489_v15 = vmul.f32 0.0, %v5629_v35 }
0x3c66   :  { %v3474_v33 = vpop.permute.xlu0 %3473 }
0x3c67   :  { %v3476_v0 = vmul.f32 %v5629_v35, %v3474_v33 }
0x3c69   :  { %3478 = vrot.lane.b32.xlu1 %v3476_v0, %s5903_s17 }
0x3cdb   :  { %v3479_v2 = vpop.permute.xlu1 %3478 }
0x3cdc   :  { %v3481_v6 = vadd.f32 %v3479_v2, %v3342_v56  ;;  %v3352_v2 = vadd.f32 %v6822_v57, %v6780_v22 }
0x3cde   :  { %5630 = vtanh.f32 %v3481_v6  ;;  %v3388_v6 = vadd.f32 %v6818_v11, %v3352_v2 }
0x3cdf   :  { %5632 = vpow2.f32 %v4478_v4 }
0x3ce8   :  { %v5631_v48 = vpop.eup %5630 }
0x3ce9   :  { %3485 = vrot.lane.b32.xlu0 %v5631_v48, %s5904_s12  ;;  %v5633_v16 = vpop.eup %5632 }
0x3cea   :  { %v3231_v18 = vadd.f32 1.0, %v5633_v16 }
0x3cec   :  { %5634 = vrcp.f32 %v3231_v18 }
0x3ced   :  { %3236 = vrot.lane.b32.xlu0 %v3234_v10, %s5903_s17 }
0x3cf6   :  { %v5635_v25 = vpop.eup %5634 }
0x3cf7   :  { %v3246_v28 = vsub.f32 1.0, %v5635_v25  ;;  %v3252_v55 = vmul.f32 %v5635_v25, %v6799_v9 }
0x3d5b   :  { %v3486_v8 = vpop.permute.xlu0 %3485 }
0x3d5c   :  { %v3488_v21 = vmul.f32 %v3486_v8, %v3483_v19 }
0x3d5e   :  { %v3490_v24 = vadd.f32 %v3489_v15, %v3488_v21 }
0x3d5f   :  { %v3237_v26 = vpop.permute.xlu0 %3236 }
0x3d60   :  { %v3239_v5 = vmul.f32 %v5635_v25, %v3237_v26  ;;  %3492 = vrot.lane.b32.xlu1 %v3490_v24, %s5904_s12 }
0x3d62   :  { %3241 = vrot.lane.b32.xlu0 %v3239_v5, %s5903_s17 }
0x3dd2   :  { %v3493_v29 = vpop.permute.xlu1 %3492 }
0x3dd3   :  { %5131 = vmatmul.mubr.msk.f32.vlgmr.msra.gmra.mrb[38].mxu0 %vm394_vm11, %v3493_v29 }
0x3dd4   :  { %v3242_v27 = vpop.permute.xlu0 %3241  ;;  %5429 = vmatpush3.bf16.msra.mxu0 %v6791_v41  ;;  %5152 = vmatprep.mubr.msk.f32.mxu0 %vm5902_vm10, %v5900_v30 }
0x3dd5   :  { %v3244_v54 = vadd.f32 %v3242_v27, %v2426_v13  ;;  %5430 = vmatprep.subr.bf16.mxu0 %v5901_v45 }
0x3dd7   :  { %5636 = vtanh.f32 %v3244_v54  ;;  %v3357_v54 = vadd.f32 %v6778_v12, %v6822_v57 }
0x3dd8   :  { %5432 = vmatpush3.bf16.msra.mxu0 %v6795_v59 }
0x3dd9   :  { %5439 = vmatprep.subr.bf16.mxu0 %v5901_v45 }
0x3de1   :  { %v5637_v53 = vpop.eup %5636 }
0x3de2   :  { %3248 = vrot.lane.b32.xlu0 %v5637_v53, %s5904_s12  ;;  %v3389_v53 = vadd.f32 %v6818_v11, %v3357_v54 }
0x3e54   :  { %v3249_v31 = vpop.permute.xlu0 %3248 }
0x3e55   :  { %v3251_v34 = vmul.f32 %v3249_v31, %v3246_v28 }
0x3e57   :  { %v3253_v32 = vadd.f32 %v3252_v55, %v3251_v34 }
0x3e59   :  { %3271 = vrot.lane.b32.xlu0 %v3253_v32, %s5904_s12 }
0x3ea6   :  { %v3562_v38 = vpop.f32.mrb[38].mxu0 }
0x3ea7   :  { %v3573_v20 = vadd.f32 %v6818_v11, %v3562_v38  ;;  %v5132_v36 = vpop.f32.mrb[39].mxu0  ;;  %v3566_v43 = vadd.f32 %v3562_v38, %v3387_v42 }
0x3ea9   :  { %3575 = vrot.lane.b32.xlu1 %v3573_v20, %s5903_s17  ;;  %v4491_v44 = vmul.f32 -1.442695, %v3566_v43 }
0x3eab   :  { %5638 = vpow2.f32 %v4491_v44 }
0x3eb5   :  { %v5639_v46 = vpop.eup %5638 }
0x3eb6   :  { %v3570_v47 = vadd.f32 1.0, %v5639_v46 }
0x3eb8   :  { %5640 = vrcp.f32 %v3570_v47 }
0x3ec2   :  { %v5641_v9 = vpop.eup %5640 }
0x3ec3   :  { %v3585_v56 = vsub.f32 1.0, %v5641_v9  ;;  %v3591_v60 = vmul.f32 %v5641_v9, %v3490_v24 }
0x3ecb   :  { %v3272_v40 = vpop.permute.xlu0 %3271 }
0x3ecc   :  { %5109 = vmatmul.mubr.msk.f32.gmra.mrb[50].mxu1 %vm394_vm11, %v3272_v40 }
0x3ecd   :  { %5141 = vmatprep.mubr.msk.f32.mxu1 %vm5902_vm10, %v5900_v30 }
0x3f1b   :  { %v3576_v49 = vpop.permute.xlu1 %3575 }
0x3f1c   :  { %v3578_v50 = vmul.f32 %v5641_v9, %v3576_v49 }
0x3f1e   :  { %3580 = vrot.lane.b32.xlu1 %v3578_v50, %s5903_s17 }
0x3f90   :  { %v3581_v52 = vpop.permute.xlu1 %3580 }
0x3f91   :  { %v3583_v17 = vadd.f32 %v3581_v52, %v3347_v1  ;;  %v3362_v52 = vadd.f32 %v6822_v57, %v6784_v23 }
0x3f93   :  { %5642 = vtanh.f32 %v3583_v17  ;;  %v3390_v17 = vadd.f32 %v6818_v11, %v3362_v52 }
0x3f9d   :  { %v5643_v39 = vpop.eup %5642 }
0x3f9e   :  { %3587 = vrot.lane.b32.xlu1 %v5643_v39, %s5904_s12 }
0x3f9f   :  { %v6855_v3 = vpop.f32.mrb[50].mxu1 }
0x3fa0   :  { %v6857_v58 = vpop.f32.mrb[51].mxu1 }
0x4010   :  { %v3588_v37 = vpop.permute.xlu1 %3587 }
0x4011   :  { %v3590_v61 = vmul.f32 %v3588_v37, %v3585_v56 }
0x4013   :  { %v3592_v63 = vadd.f32 %v3591_v60, %v3590_v61 }
0x4015   :  { %3594 = vrot.lane.b32.xlu1 %v3592_v63, %s5904_s12 }
0x4087   :  { %v3595_v7 = vpop.permute.xlu1 %3594 }
0x4088   :  { %5142 = vmatmul.mubr.msk.f32.vlgmr.msra.gmra.mrb[52].mxu1 %vm394_vm11, %v3595_v7 }
0x4089   :  { %5435 = vmatpush3.bf16.msra.mxu1 %v6791_v41  ;;  %5163 = vmatprep.mubr.msk.f32.mxu1 %vm5902_vm10, %v5900_v30 }
0x408a   :  { %5436 = vmatprep.subr.bf16.mxu1 %v5901_v45 }
0x408d   :  { %5438 = vmatpush3.bf16.msra.mxu1 %v6795_v59 }
0x408e   :  { %5445 = vmatprep.subr.bf16.mxu1 %v5901_v45 }
0x415b   :  { %v3664_v35 = vpop.f32.mrb[52].mxu1 }
0x415c   :  { %v3675_v33 = vadd.f32 %v6818_v11, %v3664_v35  ;;  %v5143_v0 = vpop.f32.mrb[53].mxu1  ;;  %v3668_v48 = vadd.f32 %v3664_v35, %v3388_v6 }
0x415e   :  { %3677 = vrot.lane.b32.xlu0 %v3675_v33, %s5903_s17  ;;  %v4493_v10 = vmul.f32 -1.442695, %v3668_v48 }
0x4160   :  { %5644 = vpow2.f32 %v4493_v10 }
0x416a   :  { %v5645_v13 = vpop.eup %5644 }
0x416b   :  { %v3672_v14 = vadd.f32 1.0, %v5645_v13 }
0x416d   :  { %5646 = vrcp.f32 %v3672_v14 }
0x4177   :  { %v5647_v51 = vpop.eup %5646 }
0x4178   :  { %v3687_v22 = vsub.f32 1.0, %v5647_v51  ;;  %v3693_v21 = vmul.f32 %v5647_v51, %v3592_v63 }
0x41d0   :  { %v3678_v4 = vpop.permute.xlu0 %3677 }
0x41d1   :  { %v3680_v16 = vmul.f32 %v5647_v51, %v3678_v4 }
0x41d3   :  { %3682 = vrot.lane.b32.xlu1 %v3680_v16, %s5903_s17  ;;  %v3367_v16 = vadd.f32 %v6782_v62, %v6822_v57 }
0x4245   :  { %v3683_v18 = vpop.permute.xlu1 %3682 }
0x4246   :  { %v3685_v19 = vadd.f32 %v3683_v18, %v3352_v2 }
0x4248   :  { %5648 = vtanh.f32 %v3685_v19 }
0x4252   :  { %v5649_v8 = vpop.eup %5648 }
0x4253   :  { %3689 = vrot.lane.b32.xlu0 %v5649_v8, %s5904_s12 }
0x42c5   :  { %v3690_v15 = vpop.permute.xlu0 %3689 }
0x42c6   :  { %v3692_v24 = vmul.f32 %v3690_v15, %v3687_v22 }
0x42c8   :  { %v3694_v25 = vadd.f32 %v3693_v21, %v3692_v24 }
0x42ca   :  { %3696 = vrot.lane.b32.xlu1 %v3694_v25, %s5904_s12 }
0x433c   :  { %v3697_v26 = vpop.permute.xlu1 %3696 }
0x433d   :  { %5153 = vmatmul.mubr.msk.f32.vlgmr.msra.gmra.mrb[40].mxu0 %vm394_vm11, %v3697_v26 }
0x433e   :  { %5441 = vmatpush3.bf16.msra.mxu0 %v6791_v41  ;;  %5174 = vmatprep.mubr.msk.f32.mxu0 %vm5902_vm10, %v5900_v30 }
0x433f   :  { %5442 = vmatprep.subr.bf16.mxu0 %v5901_v45 }
0x4342   :  { %5444 = vmatpush3.bf16.msra.mxu0 %v6795_v59 }
0x4343   :  { %5451 = vmatprep.subr.bf16.mxu0 %v5901_v45 }
0x4410   :  { %v3766_v5 = vpop.f32.mrb[40].mxu0 }
0x4411   :  { %v3777_v29 = vadd.f32 %v6818_v11, %v3766_v5  ;;  %v5154_v27 = vpop.f32.mrb[41].mxu0  ;;  %v3770_v28 = vadd.f32 %v3766_v5, %v3389_v53 }
0x4413   :  { %3779 = vrot.lane.b32.xlu0 %v3777_v29, %s5903_s17  ;;  %v4495_v31 = vmul.f32 -1.442695, %v3770_v28 }
0x4415   :  { %5650 = vpow2.f32 %v4495_v31 }
0x441f   :  { %v5651_v55 = vpop.eup %5650 }
0x4420   :  { %v3774_v34 = vadd.f32 1.0, %v5651_v55 }
0x4422   :  { %5652 = vrcp.f32 %v3774_v34  ;;  %v3372_v34 = vadd.f32 %v6822_v57, %v6857_v58 }
0x442c   :  { %v5653_v32 = vpop.eup %5652 }
0x442d   :  { %v3789_v12 = vsub.f32 1.0, %v5653_v32  ;;  %v3795_v43 = vmul.f32 %v5653_v32, %v3694_v25 }
0x4485   :  { %v3780_v38 = vpop.permute.xlu0 %3779 }
0x4486   :  { %v3782_v20 = vmul.f32 %v5653_v32, %v3780_v38  ;;  %v3392_v32 = vadd.f32 %v6818_v11, %v3372_v34 }
0x4488   :  { %3784 = vrot.lane.b32.xlu1 %v3782_v20, %s5903_s17 }
0x44fa   :  { %v3785_v36 = vpop.permute.xlu1 %3784 }
0x44fb   :  { %v3787_v40 = vadd.f32 %v3785_v36, %v3357_v54 }
0x44fd   :  { %5654 = vtanh.f32 %v3787_v40 }
0x4507   :  { %v5655_v1 = vpop.eup %5654 }
0x4508   :  { %3791 = vrot.lane.b32.xlu0 %v5655_v1, %s5904_s12 }
0x457a   :  { %v3792_v42 = vpop.permute.xlu0 %3791 }
0x457b   :  { %v3794_v44 = vmul.f32 %v3792_v42, %v3789_v12 }
0x457d   :  { %v3796_v46 = vadd.f32 %v3795_v43, %v3794_v44 }
0x457f   :  { %3798 = vrot.lane.b32.xlu1 %v3796_v46, %s5904_s12 }
0x45f1   :  { %v3799_v47 = vpop.permute.xlu1 %3798 }
0x45f2   :  { %5164 = vmatmul.mubr.msk.f32.vlgmr.msra.gmra.mrb[54].mxu1 %vm394_vm11, %v3799_v47 }
0x45f3   :  { %5447 = vmatpush3.bf16.msra.mxu1 %v6791_v41  ;;  %5185 = vmatprep.mubr.msk.f32.mxu1 %vm5902_vm10, %v5900_v30 }
0x45f4   :  { %5448 = vmatprep.subr.bf16.mxu1 %v5901_v45 }
0x45f7   :  { %5450 = vmatpush3.bf16.msra.mxu1 %v6795_v59 }
0x45f8   :  { %5457 = vmatprep.subr.bf16.mxu1 %v5901_v45 }
0x46c5   :  { %v3868_v9 = vpop.f32.mrb[54].mxu1 }
0x46c6   :  { %v3879_v49 = vadd.f32 %v6818_v11, %v3868_v9  ;;  %v5165_v50 = vpop.f32.mrb[55].mxu1  ;;  %v3872_v39 = vadd.f32 %v3868_v9, %v3390_v17 }
0x46c8   :  { %3881 = vrot.lane.b32.xlu0 %v3879_v49, %s5903_s17  ;;  %v4497_v56 = vmul.f32 -1.442695, %v3872_v39 }
0x46ca   :  { %5656 = vpow2.f32 %v4497_v56 }
0x46d4   :  { %v5657_v37 = vpop.eup %5656 }
0x46d5   :  { %v3876_v60 = vadd.f32 1.0, %v5657_v37  ;;  %v3377_v37 = vadd.f32 %v6855_v3, %v6822_v57  ;;  %v4205_v57 = vld [vmem:[%s6994_s18] sm:$0xff]  ;;  %v4207_v3 = vld [vmem:[%s6994_s18 + $0x10] sm:$0xff] }
0x46d7   :  { %5658 = vrcp.f32 %v3876_v60  ;;  %v3393_v60 = vadd.f32 %v6818_v11, %v3377_v37 }
0x46e1   :  { %v5659_v61 = vpop.eup %5658 }
0x46e2   :  { %v3891_v23 = vsub.f32 1.0, %v5659_v61  ;;  %v3897_v6 = vmul.f32 %v5659_v61, %v3796_v46 }
0x473a   :  { %v3882_v63 = vpop.permute.xlu0 %3881 }
0x473b   :  { %v3884_v7 = vmul.f32 %v5659_v61, %v3882_v63 }
0x473d   :  { %3886 = vrot.lane.b32.xlu1 %v3884_v7, %s5903_s17 }
0x47af   :  { %v3887_v35 = vpop.permute.xlu1 %3886 }
0x47b0   :  { %v3889_v33 = vadd.f32 %v3887_v35, %v3362_v52 }
0x47b2   :  { %5660 = vtanh.f32 %v3889_v33 }
0x47bc   :  { %v5661_v0 = vpop.eup %5660 }
0x47bd   :  { %3893 = vrot.lane.b32.xlu0 %v5661_v0, %s5904_s12 }
0x482f   :  { %v3894_v2 = vpop.permute.xlu0 %3893 }
0x4830   :  { %v3896_v48 = vmul.f32 %v3894_v2, %v3891_v23 }
0x4832   :  { %v3898_v10 = vadd.f32 %v3897_v6, %v3896_v48  ;;  %v4208_v48 = vld [vmem:[%s6994_s18 + $0x18] sm:$0xff] }
0x4834   :  { %3900 = vrot.lane.b32.xlu1 %v3898_v10, %s5904_s12 }
0x48a6   :  { %v3901_v13 = vpop.permute.xlu1 %3900 }
0x48a7   :  { %5175 = vmatmul.mubr.msk.f32.vlgmr.msra.gmra.mrb[42].mxu0 %vm394_vm11, %v3901_v13 }
0x48a8   :  { %5453 = vmatpush3.bf16.msra.mxu0 %v6791_v41  ;;  %5196 = vmatprep.mubr.msk.f32.mxu0 %vm5902_vm10, %v5900_v30  ;;  %v3391_v41 = vadd.f32 %v6818_v11, %v3367_v16 }
0x48a9   :  { %5454 = vmatprep.subr.bf16.mxu0 %v5901_v45 }
0x48ac   :  { %5456 = vmatpush3.bf16.msra.mxu0 %v6795_v59 }
0x48ad   :  { %5463 = vmatprep.subr.bf16.mxu0 %v5901_v45 }
0x497a   :  { %v3970_v14 = vpop.f32.mrb[42].mxu0 }
0x497b   :  { %v3981_v51 = vadd.f32 %v6818_v11, %v3970_v14  ;;  %v5176_v4 = vpop.f32.mrb[43].mxu0  ;;  %v3974_v18 = vadd.f32 %v3970_v14, %v3391_v41  ;;  %v4292_v14 = vld [vmem:[%s6996_s20] sm:$0xff] }
0x497d   :  { %3983 = vrot.lane.b32.xlu0 %v3981_v51, %s5903_s17  ;;  %v4499_v19 = vmul.f32 -1.442695, %v3974_v18  ;;  %v4293_v51 = vld [vmem:[%s6996_s20 + $0x8] sm:$0xff] }
0x497e   :  { %v5464_v4 = vpack.c.bf16 %v4293_v51, %v4292_v14 }
0x497f   :  { %5662 = vpow2.f32 %v4499_v19 }
0x4989   :  { %v5663_v8 = vpop.eup %5662 }
0x498a   :  { %v3978_v22 = vadd.f32 1.0, %v5663_v8 }
0x498c   :  { %5664 = vrcp.f32 %v3978_v22 }
0x4996   :  { %v5665_v59 = vpop.eup %5664 }
0x4997   :  { %v3993_v62 = vsub.f32 1.0, %v5665_v59  ;;  %v3999_v29 = vmul.f32 %v5665_v59, %v3898_v10  ;;  %v5461_v10 = vpack.c.bf16 %v4208_v48, %v4207_v3 }
0x49ef   :  { %v3984_v15 = vpop.permute.xlu0 %3983 }
0x49f0   :  { %v3986_v21 = vmul.f32 %v5665_v59, %v3984_v15  ;;  %v4294_v59 = vld [vmem:[%s6996_s20 + $0x10] sm:$0xff]  ;;  %v4295_v15 = vld [vmem:[%s6996_s20 + $0x18] sm:$0xff] }
0x49f2   :  { %3988 = vrot.lane.b32.xlu1 %v3986_v21, %s5903_s17  ;;  %v5467_v21 = vpack.c.bf16 %v4295_v15, %v4294_v59 }
0x4a64   :  { %v3989_v24 = vpop.permute.xlu1 %3988 }
0x4a65   :  { %v3991_v25 = vadd.f32 %v3989_v24, %v3367_v16 }
0x4a67   :  { %5666 = vtanh.f32 %v3991_v25 }
0x4a71   :  { %v5667_v26 = vpop.eup %5666 }
0x4a72   :  { %3995 = vrot.lane.b32.xlu0 %v5667_v26, %s5904_s12 }
0x4ae4   :  { %v3996_v5 = vpop.permute.xlu0 %3995 }
0x4ae5   :  { %v3998_v27 = vmul.f32 %v3996_v5, %v3993_v62  ;;  %v4506_v5 = vld [vmem:[#allocation2] ss:$0 sm:$0xff] }
0x4ae7   :  { %v4000_v54 = vadd.f32 %v3999_v29, %v3998_v27 }
0x4ae9   :  { %4002 = vrot.lane.b32.xlu1 %v4000_v54, %s5904_s12 }
0x4b5b   :  { %v4003_v53 = vpop.permute.xlu1 %4002 }
0x4b5c   :  { %5186 = vmatmul.mubr.msk.f32.vlgmr.msra.gmra.mrb[56].mxu1 %vm394_vm11, %v4003_v53 }
0x4b5d   :  { %5207 = vmatprep.mubr.msk.f32.mxu1 %vm5902_vm10, %v5900_v30 }
0x4c2f   :  { %v4072_v28 = vpop.f32.mrb[56].mxu1 }
0x4c30   :  { %v4083_v31 = vadd.f32 %v6818_v11, %v4072_v28  ;;  %v5187_v55 = vpop.f32.mrb[57].mxu1  ;;  %v4076_v38 = vadd.f32 %v4072_v28, %v3392_v32 }
0x4c32   :  { %4085 = vrot.lane.b32.xlu0 %v4083_v31, %s5903_s17  ;;  %v4501_v20 = vmul.f32 -1.442695, %v4076_v38 }
0x4c34   :  { %5668 = vpow2.f32 %v4501_v20 }
0x4c3e   :  { %v5669_v36 = vpop.eup %5668 }
0x4c3f   :  { %v4080_v40 = vadd.f32 1.0, %v5669_v36 }
0x4c41   :  { %5670 = vrcp.f32 %v4080_v40 }
0x4c4b   :  { %v5671_v1 = vpop.eup %5670 }
0x4c4c   :  { %v4095_v58 = vsub.f32 1.0, %v5671_v1  ;;  %v4101_v9 = vmul.f32 %v5671_v1, %v4000_v54 }
0x4ca4   :  { %v4086_v12 = vpop.permute.xlu0 %4085 }
0x4ca5   :  { %v4088_v42 = vmul.f32 %v5671_v1, %v4086_v12 }
0x4ca7   :  { %4090 = vrot.lane.b32.xlu1 %v4088_v42, %s5903_s17 }
0x4d19   :  { %v4091_v43 = vpop.permute.xlu1 %4090 }
0x4d1a   :  { %v4093_v44 = vadd.f32 %v4091_v43, %v3372_v34 }
0x4d1c   :  { %5672 = vtanh.f32 %v4093_v44 }
0x4d26   :  { %v5673_v46 = vpop.eup %5672 }
0x4d27   :  { %4097 = vrot.lane.b32.xlu0 %v5673_v46, %s5904_s12 }
0x4d99   :  { %v4098_v47 = vpop.permute.xlu0 %4097 }
0x4d9a   :  { %v4100_v49 = vmul.f32 %v4098_v47, %v4095_v58 }
0x4d9c   :  { %v4102_v50 = vadd.f32 %v4101_v9, %v4100_v49 }
0x4d9e   :  { %4104 = vrot.lane.b32.xlu1 %v4102_v50, %s5904_s12 }
0x4e10   :  { %v4105_v52 = vpop.permute.xlu1 %4104 }
0x4e11   :  { %5197 = vmatmul.mubr.msk.f32.vlgmr.msra.gmra.mrb[44].mxu0 %vm394_vm11, %v4105_v52 }
0x4e12   :  { %5218 = vmatprep.mubr.msk.f32.mxu0 %vm5902_vm10, %v5900_v30  ;;  %5465 = vmatpush3.bf16.msra.mxu0 %v5464_v4 }
0x4e13   :  { %5466 = vmatprep.subr.bf16.mxu0 %v5901_v45 }
0x4e16   :  { %5468 = vmatpush3.bf16.msra.mxu0 %v5467_v21 }
0x4ee4   :  { %v4174_v17 = vpop.f32.mrb[44].mxu0 }
0x4ee5   :  { %v4185_v39 = vadd.f32 %v6818_v11, %v4174_v17  ;;  %v5198_v56 = vpop.f32.mrb[45].mxu0  ;;  %v4178_v61 = vadd.f32 %v4174_v17, %v3393_v60  ;;  %v4206_v11 = vld [vmem:[%s6994_s18 + $0x8] sm:$0xff] }
0x4ee6   :  { %v5458_v6 = vpack.c.bf16 %v4206_v11, %v4205_v57 }
0x4ee7   :  { %4187 = vrot.lane.b32.xlu0 %v4185_v39, %s5903_s17  ;;  %v4503_v63 = vmul.f32 -1.442695, %v4178_v61 }
0x4ee8   :  { %5459 = vmatpush3.bf16.msra.mxu1 %v5458_v6 }
0x4ee9   :  { %5674 = vpow2.f32 %v4503_v63  ;;  %5460 = vmatprep.subr.bf16.mxu1 %v5901_v45  ;;  %v4504_v45 = vld [vmem:[%s6995_s19] ss:$0 sm:$0xff] }
0x4eec   :  { %5462 = vmatpush3.bf16.msra.mxu1 %v5461_v10 }
0x4ef3   :  { %v5675_v7 = vpop.eup %5674 }
0x4ef4   :  { %v4182_v35 = vadd.f32 1.0, %v5675_v7 }
0x4ef6   :  { %5676 = vrcp.f32 %v4182_v35 }
0x4f00   :  { %v5677_v33 = vpop.eup %5676 }
0x4f01   :  { %v4197_v16 = vsub.f32 1.0, %v5677_v33  ;;  %v4203_v18 = vmul.f32 %v5677_v33, %v4102_v50 }
0x4f59   :  { %v4188_v0 = vpop.permute.xlu0 %4187 }
0x4f5a   :  { %v4190_v30 = vmul.f32 %v5677_v33, %v4188_v0 }
0x4f5c   :  { %4192 = vrot.lane.b32.xlu1 %v4190_v30, %s5903_s17 }
0x4fce   :  { %v4193_v23 = vpop.permute.xlu1 %4192 }
0x4fcf   :  { %v4195_v2 = vadd.f32 %v4193_v23, %v3377_v37 }
0x4fd1   :  { %5678 = vtanh.f32 %v4195_v2 }
0x4fdb   :  { %v5679_v13 = vpop.eup %5678 }
0x4fdc   :  { %4199 = vrot.lane.b32.xlu0 %v5679_v13, %s5904_s12 }
0x504e   :  { %v4200_v41 = vpop.permute.xlu0 %4199 }
0x504f   :  { %v4202_v19 = vmul.f32 %v4200_v41, %v4197_v16 }
0x5051   :  { %v4204_v8 = vadd.f32 %v4203_v18, %v4202_v19 }
0x5053   :  { %4217 = vrot.lane.b32.xlu1 %v4204_v8, %s5904_s12 }
0x50c5   :  { %v4218_v22 = vpop.permute.xlu1 %4217 }
0x50c6   :  { %5208 = vmatmul.mubr.msk.f32.vlgmr.msra.gmra.mrb[58].mxu1 %vm394_vm11, %v4218_v22 }
0x5199   :  { %v4287_v24 = vpop.f32.mrb[58].mxu1 }
0x519a   :  { %v4288_v25 = vadd.f32 %v4504_v45, %v4287_v24  ;;  %v5209_v26 = vpop.f32.mrb[59].mxu1 }
0x519c   :  { %v4291_v62 = vmax.f32 %v4288_v25, 0.0 }
0x519e   :  { %5219 = vmatmul.mubr.msk.f32.vlgmr.msra.gmra.mrb[46].mxu0 %vm394_vm11, %v4291_v62 }
0x5271   :  { %v4372_v29 = vpop.f32.mrb[46].mxu0 }
0x5272   :  { %v4373_v27 = vadd.f32 %v4506_v5, %v4372_v29  ;;  %v5220_v54 = vpop.f32.mrb[47].mxu0 }
0x5274   :  { %4377 = vst.msk [vmem:[%s6998_s22] sm:$0xff] %vm4376_vm12, %v4373_v27 }
0x5275   :  { %4382 = vsyncpa [#allocation4], 1 }
0x5276   :  { %4383 = vsyncpa [#allocation6], 1 }
0x5277   :  { %4384 = vsyncpa [#allocation9], 1 }
0x5278   :  { %4385 = vsyncpa [#allocation12], 1 }
0x5279   :  { %4386 = vsyncpa [#allocation15], 1 }

</bundles_post_ra>
